<compile_context>
chip_gen: v5e
topology: v5e:2x2
jax: 0.10.0
libtpu: 0.0.40
codegen_flags: <defaults>
</compile_context>

<pallas_src>
import functools

import numpy as np
import jax
import jax.numpy as jnp
from jax import lax
from jax.experimental import pallas as pl
from jax.experimental.pallas import tpu as pltpu

# ----------------------------------------------------------------------------
# Genotype (DARTS_V2 normal cell) — the kernel below is hand-specialized to it.
# ----------------------------------------------------------------------------
GENOTYPE_NORMAL = [
    ('sep_conv_3x3', 0), ('sep_conv_3x3', 1),
    ('sep_conv_3x3', 0), ('sep_conv_3x3', 1),
    ('sep_conv_3x3', 1), ('skip_connect', 0),
    ('skip_connect', 0), ('dil_conv_3x3', 2),
]
NORMAL_CONCAT = [2, 3, 4, 5]
STEPS = len(GENOTYPE_NORMAL) // 2


# ----------------------------------------------------------------------------
# Fused cell kernel (one grid step = one image, everything resident in VMEM)
# ----------------------------------------------------------------------------
def make_cell_kernel(H, W, C):
    HW = H * W

    def tap_shift(t, d):
        i, j = divmod(t, 3)
        return d * ((i - 1) * W + (j - 1))        # flattened source offset of tap t

    def kernel(s0_ref, s1_ref, prew_ref, preb_ref,
               w4_ref, p4_ref, b4_ref, w1_ref, p1_ref, b1_ref, out_ref):

        def relu_dw3x3(x, wt_ref, base, d):
            # ReLU -> depthwise 3x3 (stride 1, padding=d, dilation=d).
            # Each tap is a lane rotation of the ReLU'd input; zero padding and
            # the per-channel weight are folded into wt_ref (lane-replicated,
            # boundary-masked), so a tap = one roll (XLU) + one mul/add (VPU).
            xr = jnp.maximum(x, 0.0)
            acc = xr * wt_ref[base + 4]                       # centre tap, no shift
            for t in range(9):
                if t == 4:
                    continue
                shift = (-tap_shift(t, d)) % HW               # out[p] = xr[p + s]
                tap = pltpu.roll(xr, shift, axis=1)
                acc = acc + tap * wt_ref[base + t]
            return acc

        def pw1x1(h, wmat, bias):
            # 1x1 conv (BN scale pre-folded into wmat) + pre-replicated bias.
            return jnp.dot(wmat, h, preferred_element_type=jnp.float32) + bias

        # ---- preprocess0 / preprocess1 : ReLU -> block-diag 1x1 -> BN --------
        x_in = jnp.concatenate([s0_ref[0], s1_ref[0]], axis=0)     # (Cpp+Cp, HW)
        pre = pw1x1(jnp.maximum(x_in, 0.0), prew_ref[...], preb_ref[...])
        s0 = pre[:C]
        s1 = pre[C:]

        # ---- edges 0..3 (sep_conv_3x3 on s0,s1,s0,s1) stacked to 4C channels -
        x4 = jnp.concatenate([s0, s1, s0, s1], axis=0)              # (4C, HW)
        h = relu_dw3x3(x4, w4_ref, 0, 1)
        h = pw1x1(h, p4_ref[0], b4_ref[0])
        h = relu_dw3x3(h, w4_ref, 9, 1)
        h = pw1x1(h, p4_ref[1], b4_ref[1])
        s2 = h[0 * C:1 * C] + h[1 * C:2 * C]                        # step 0
        s3 = h[2 * C:3 * C] + h[3 * C:4 * C]                        # step 1

        # ---- step 2 : sep_conv_3x3(s1) + skip_connect(s0) --------------------
        g = relu_dw3x3(s1, w1_ref, 0, 1)
        g = pw1x1(g, p1_ref[0], b1_ref[0])
        g = relu_dw3x3(g, w1_ref, 9, 1)
        g = pw1x1(g, p1_ref[1], b1_ref[1])
        s4 = g + s0

        # ---- step 3 : skip_connect(s0) + dil_conv_3x3(s2) --------------------
        e = relu_dw3x3(s2, w1_ref, 18, 2)
        e = pw1x1(e, p1_ref[2], b1_ref[2])
        s5 = s0 + e

        # ---- concat(states[2..5]) : one dense (4C, HW) store ------------------
        out_ref[0, :, :] = jnp.concatenate([s2, s3, s4, s5], axis=0)

    return kernel


def fused_cell(s0, s1, prew, preb, wtap4, pw4, pwb4, wtapS, pwS, pwbS, *, H, W, C):
    """s0/s1: (N, C_in, H*W) -> (N, 4*C, H*W), one pallas_call."""
    N, C_pp, HW = s0.shape
    C_p = s1.shape[1]
    Cout = 4 * C

    flops = int(N * (2 * 9 * HW * (8 * C + 3 * C)                       # depthwise taps
                     + 2 * HW * (2 * C * (C_pp + C_p)                   # preprocess matmul
                                 + 2 * (4 * C) ** 2 + 3 * C * C)))      # pointwise matmuls
    bytes_accessed = int(4 * (s0.size + s1.size + N * Cout * HW
                              + prew.size + preb.size + wtap4.size + pw4.size
                              + pwb4.size + wtapS.size + pwS.size + pwbS.size))

    return pl.pallas_call(
        make_cell_kernel(H, W, C),
        out_shape=jax.ShapeDtypeStruct((N, Cout, HW), jnp.float32),
        grid=(N,),
        in_specs=[
            pl.BlockSpec((1, C_pp, HW), lambda n: (n, 0, 0)),
            pl.BlockSpec((1, C_p, HW), lambda n: (n, 0, 0)),
            pl.BlockSpec((2 * C, C_pp + C_p), lambda n: (0, 0)),
            pl.BlockSpec((2 * C, HW), lambda n: (0, 0)),
            pl.BlockSpec((18, 4 * C, HW), lambda n: (0, 0, 0)),
            pl.BlockSpec((2, 4 * C, 4 * C), lambda n: (0, 0, 0)),
            pl.BlockSpec((2, 4 * C, HW), lambda n: (0, 0, 0)),
            pl.BlockSpec((27, C, HW), lambda n: (0, 0, 0)),
            pl.BlockSpec((3, C, C), lambda n: (0, 0, 0)),
            pl.BlockSpec((3, C, HW), lambda n: (0, 0, 0)),
        ],
        out_specs=pl.BlockSpec((1, Cout, HW), lambda n: (n, 0, 0)),
        compiler_params=pltpu.CompilerParams(dimension_semantics=("parallel",)),
        cost_estimate=pl.CostEstimate(flops=flops, transcendentals=0,
                                      bytes_accessed=bytes_accessed),
    )(s0, s1, prew, preb, wtap4, pw4, pwb4, wtapS, pwS, pwbS)


# ----------------------------------------------------------------------------
# Parameter packing: fold BN scale into 1x1 weights, fold boundary masks and
# lane replication into depthwise tap weights, build block-diagonal matmuls.
# ----------------------------------------------------------------------------
def _tap_masks(H, W, d):
    """(9, H*W) 0/1 masks: tap t=3*i+j is valid where its (dilated) source is in-bounds."""
    hh = np.arange(H)[:, None]
    ww = np.arange(W)[None, :]
    masks = []
    for i in range(3):
        for j in range(3):
            sh, sw = (i - 1) * d, (j - 1) * d
            m = ((hh + sh >= 0) & (hh + sh < H) & (ww + sw >= 0) & (ww + sw < W))
            masks.append(m.reshape(H * W))
    return jnp.asarray(np.stack(masks), dtype=jnp.float32)


def _block_diag(mats):
    rows = sum(m.shape[0] for m in mats)
    cols = sum(m.shape[1] for m in mats)
    out = jnp.zeros((rows, cols), jnp.float32)
    r = c = 0
    for m in mats:
        out = out.at[r:r + m.shape[0], c:c + m.shape[1]].set(m)
        r += m.shape[0]
        c += m.shape[1]
    return out


def pack_params(params, H, W):
    HW = H * W
    C = params['pre0_w'].shape[1]
    mask1 = _tap_masks(H, W, 1)
    mask2 = _tap_masks(H, W, 2)
    ops = params['ops']

    def pw_mat(w, scale):                  # (Cin, Cout) -> (Cout, Cin) with BN scale folded
        return (w * scale[None, :]).T

    def rep_bias(b, rows):                 # (rows,) -> (rows, HW) lane-replicated
        return jnp.broadcast_to(b[:, None], (rows, HW))

    def fold_tap(dw, mask):                # (9, Cx) x (9, HW) -> (9, Cx, HW)
        return dw[:, :, None] * mask[:, None, :]

    # preprocess0 + preprocess1 as one block-diagonal 1x1
    prew = _block_diag([pw_mat(params['pre0_w'], params['pre0_scale']),
                        pw_mat(params['pre1_w'], params['pre1_scale'])])        # (2C, Cpp+Cp)
    preb = rep_bias(jnp.concatenate([params['pre0_bias'], params['pre1_bias']]), 2 * C)

    # edges 0..3 (all sep_conv_3x3 on inputs s0,s1,s0,s1), stacked along channels
    e03 = [ops[k] for k in range(4)]

    def stage(s):
        dw = jnp.concatenate([p[f'dw{s}'] for p in e03], axis=1)                # (9, 4C)
        wt = fold_tap(dw, mask1)                                                # (9, 4C, HW)
        pwm = _block_diag([pw_mat(p[f'pw{s}'], p[f'bn{s}_scale']) for p in e03])
        bias = rep_bias(jnp.concatenate([p[f'bn{s}_bias'] for p in e03]), 4 * C)
        return wt, pwm, bias

    wtA, pwA, pbA = stage(1)
    wtB, pwB, pbB = stage(2)
    wtap4 = jnp.concatenate([wtA, wtB], axis=0)          # (18, 4C, HW)
    pw4 = jnp.stack([pwA, pwB])                          # (2, 4C, 4C)
    pwb4 = jnp.stack([pbA, pbB])                         # (2, 4C, HW)

    # single-width convs: edge 4 (sep_conv_3x3, two stages) and edge 7 (dil_conv_3x3, d=2)
    p4, p7 = ops[4], ops[7]
    wtapS = jnp.concatenate([fold_tap(p4['dw1'], mask1),
                             fold_tap(p4['dw2'], mask1),
                             fold_tap(p7['dw'], mask2)], axis=0)                # (27, C, HW)
    pwS = jnp.stack([pw_mat(p4['pw1'], p4['bn1_scale']),
                     pw_mat(p4['pw2'], p4['bn2_scale']),
                     pw_mat(p7['pw'], p7['bn_scale'])])                         # (3, C, C)
    pwbS = jnp.stack([rep_bias(p4['bn1_bias'], C),
                      rep_bias(p4['bn2_bias'], C),
                      rep_bias(p7['bn_bias'], C)])                              # (3, C, HW)
    return prew, preb, wtap4, pw4, pwb4, wtapS, pwS, pwbS


def cell_forward_nchw(s0_nchw, s1_nchw, params, drop_prob=0.0):
    # self.training == False -> drop_path is skipped (drop_prob ignored), matching PyTorch eval.
    del drop_prob
    N, C_pp, H, W = s0_nchw.shape
    C_p = s1_nchw.shape[1]
    C = params['pre0_w'].shape[1]
    s0 = s0_nchw.reshape(N, C_pp, H * W).astype(jnp.float32)   # NCHW -> (N, C, HW): pure reshape
    s1 = s1_nchw.reshape(N, C_p, H * W).astype(jnp.float32)
    packed = pack_params(params, H, W)
    out = fused_cell(s0, s1, *packed, H=H, W=W, C=C)           # (N, 4C, HW)
    return out.reshape(N, 4 * C, H, W)                         # NCHW like PyTorch


# ----------------------------------------------------------------------------
# Pure-JAX reference (for correctness check)
# ----------------------------------------------------------------------------
def ref_pw_bn(x, w, scale, bias, apply_relu):
    h = jnp.maximum(x, 0.0) if apply_relu else x
    y = jnp.einsum('nhwc,cd->nhwd', h, w, precision=lax.Precision.HIGHEST)
    return y * scale + bias


def ref_relu_dw3x3(x, w9c, dil):
    h = jnp.maximum(x, 0.0)
    C = x.shape[-1]
    w = w9c.reshape(3, 3, C)[:, :, None, :]  # HWIO, I = Cin/groups = 1
    return lax.conv_general_dilated(
        h, w, (1, 1), [(dil, dil), (dil, dil)], rhs_dilation=(dil, dil),
        dimension_numbers=('NHWC', 'HWIO', 'NHWC'),
        feature_group_count=C, precision=lax.Precision.HIGHEST)


def ref_apply_op(name, x, p):
    if name == 'sep_conv_3x3':
        h = ref_relu_dw3x3(x, p['dw1'], 1)
        h = ref_pw_bn(h, p['pw1'], p['bn1_scale'], p['bn1_bias'], False)
        h = ref_relu_dw3x3(h, p['dw2'], 1)
        h = ref_pw_bn(h, p['pw2'], p['bn2_scale'], p['bn2_bias'], False)
        return h
    if name == 'dil_conv_3x3':
        h = ref_relu_dw3x3(x, p['dw'], 2)
        return ref_pw_bn(h, p['pw'], p['bn_scale'], p['bn_bias'], False)
    if name == 'skip_connect':
        return x
    raise ValueError(name)


def ref_cell_forward_nchw(s0_nchw, s1_nchw, params):
    s0 = jnp.transpose(s0_nchw, (0, 2, 3, 1))
    s1 = jnp.transpose(s1_nchw, (0, 2, 3, 1))
    s0 = ref_pw_bn(s0, params['pre0_w'], params['pre0_scale'], params['pre0_bias'], True)
    s1 = ref_pw_bn(s1, params['pre1_w'], params['pre1_scale'], params['pre1_bias'], True)
    states = [s0, s1]
    for i in range(STEPS):
        n1, i1 = GENOTYPE_NORMAL[2 * i]
        n2, i2 = GENOTYPE_NORMAL[2 * i + 1]
        states.append(ref_apply_op(n1, states[i1], params['ops'][2 * i]) +
                      ref_apply_op(n2, states[i2], params['ops'][2 * i + 1]))
    out = jnp.concatenate([states[i] for i in NORMAL_CONCAT], axis=-1)
    return jnp.transpose(out, (0, 3, 1, 2))


# ----------------------------------------------------------------------------
# Deterministic parameter init (synthetic; shapes follow the PyTorch module)
# ----------------------------------------------------------------------------
def init_params(key, C_pp, C_p, C):
    keys = iter(jax.random.split(key, 256))

    def conv(shape, s=0.1):
        return s * jax.random.normal(next(keys), shape, jnp.float32)

    def bn(c):
        gamma = 1.0 + 0.1 * jax.random.normal(next(keys), (c,), jnp.float32)
        beta = 0.1 * jax.random.normal(next(keys), (c,), jnp.float32)
        mean = 0.1 * jax.random.normal(next(keys), (c,), jnp.float32)
        var = 1.0 + 0.1 * jnp.abs(jax.random.normal(next(keys), (c,), jnp.float32))
        eps = 1e-5
        scale = gamma / jnp.sqrt(var + eps)
        bias = beta - mean * scale
        return scale, bias

    params = {'pre0_w': conv((C_pp, C)), 'pre1_w': conv((C_p, C))}
    params['pre0_scale'], params['pre0_bias'] = bn(C)
    params['pre1_scale'], params['pre1_bias'] = bn(C)
    ops = []
    for name, _ in GENOTYPE_NORMAL:
        if name == 'sep_conv_3x3':
            p = {'dw1': conv((9, C)), 'pw1': conv((C, C))}
            p['bn1_scale'], p['bn1_bias'] = bn(C)
            p['dw2'] = conv((9, C))
            p['pw2'] = conv((C, C))
            p['bn2_scale'], p['bn2_bias'] = bn(C)
        elif name == 'dil_conv_3x3':
            p = {'dw': conv((9, C)), 'pw': conv((C, C))}
            p['bn_scale'], p['bn_bias'] = bn(C)
        else:  # skip_connect
            p = {}
        ops.append(p)
    params['ops'] = ops
    return params


# ----------------------------------------------------------------------------
if __name__ == "__main__":
    key = jax.random.PRNGKey(0)
    k0, k1, kp = jax.random.split(key, 3)

    N, C_pp, C_p, C, H, W = 2, 16, 16, 16, 16, 16
    s0 = jax.random.normal(k0, (N, C_pp, H, W), jnp.float32)   # NCHW, like PyTorch
    s1 = jax.random.normal(k1, (N, C_p, H, W), jnp.float32)
    params = init_params(kp, C_pp, C_p, C)

    cell = jax.jit(functools.partial(cell_forward_nchw, drop_prob=0.2))
    out = cell(s0, s1, params)
    out = jax.block_until_ready(out)

    assert out.shape == (N, len(NORMAL_CONCAT) * C, H, W), out.shape

    ref = ref_cell_forward_nchw(s0, s1, params)
    max_diff = float(jnp.max(jnp.abs(out - ref)))
    # tolerance covers MXU f32 matmul pass decomposition vs HIGHEST-precision XLA reference
    assert max_diff < 2e-2, f"mismatch vs reference: {max_diff}"

    print("KERNEL_OK")
</pallas_src>

<mosaic_0001>
module attributes {stable_mosaic.version = 11 : i64} {
  func.func @kernel(%arg0: i32, %arg1: memref<1x16x256xf32, #tpu.memory_space<vmem>>, %arg2: memref<1x16x256xf32, #tpu.memory_space<vmem>>, %arg3: memref<32x32xf32, #tpu.memory_space<vmem>>, %arg4: memref<32x256xf32, #tpu.memory_space<vmem>>, %arg5: memref<18x64x256xf32, #tpu.memory_space<vmem>>, %arg6: memref<2x64x64xf32, #tpu.memory_space<vmem>>, %arg7: memref<2x64x256xf32, #tpu.memory_space<vmem>>, %arg8: memref<27x16x256xf32, #tpu.memory_space<vmem>>, %arg9: memref<3x16x16xf32, #tpu.memory_space<vmem>>, %arg10: memref<3x16x256xf32, #tpu.memory_space<vmem>>, %arg11: memref<1x64x256xf32, #tpu.memory_space<vmem>>) attributes {dimension_semantics = [#tpu.dimension_semantics<parallel>], iteration_bounds = array<i64: 2>, scalar_prefetch = 0 : i64, scratch_operands = 0 : i64, tpu.core_type = #tpu.core_type<tc>, window_params = [{transform_indices = @transform_0, window_bounds = array<i64: 1, 16, 256>}, {transform_indices = @transform_1, window_bounds = array<i64: 1, 16, 256>}, {pipeline_mode = #tpu.pipeline_mode<synchronous>, transform_indices = @transform_2, window_bounds = array<i64: 32, 32>}, {pipeline_mode = #tpu.pipeline_mode<synchronous>, transform_indices = @transform_3, window_bounds = array<i64: 32, 256>}, {pipeline_mode = #tpu.pipeline_mode<synchronous>, transform_indices = @transform_4, window_bounds = array<i64: 18, 64, 256>}, {pipeline_mode = #tpu.pipeline_mode<synchronous>, transform_indices = @transform_5, window_bounds = array<i64: 2, 64, 64>}, {pipeline_mode = #tpu.pipeline_mode<synchronous>, transform_indices = @transform_6, window_bounds = array<i64: 2, 64, 256>}, {pipeline_mode = #tpu.pipeline_mode<synchronous>, transform_indices = @transform_7, window_bounds = array<i64: 27, 16, 256>}, {pipeline_mode = #tpu.pipeline_mode<synchronous>, transform_indices = @transform_8, window_bounds = array<i64: 3, 16, 16>}, {pipeline_mode = #tpu.pipeline_mode<synchronous>, transform_indices = @transform_9, window_bounds = array<i64: 3, 16, 256>}, {transform_indices = @transform_10, window_bounds = array<i64: 1, 64, 256>}]} {
    %c0 = arith.constant 0 : index
    %c0_0 = arith.constant 0 : index
    %c0_1 = arith.constant 0 : index
    %0 = vector.load %arg1[%c0, %c0_0, %c0_1] : memref<1x16x256xf32, #tpu.memory_space<vmem>>, vector<1x16x256xf32>
    %1 = vector.shape_cast %0 : vector<1x16x256xf32> to vector<16x256xf32>
    %c0_2 = arith.constant 0 : index
    %c0_3 = arith.constant 0 : index
    %c0_4 = arith.constant 0 : index
    %2 = vector.load %arg2[%c0_2, %c0_3, %c0_4] : memref<1x16x256xf32, #tpu.memory_space<vmem>>, vector<1x16x256xf32>
    %3 = vector.shape_cast %2 : vector<1x16x256xf32> to vector<16x256xf32>
    %4 = tpu.concatenate %1, %3 in 0 : vector<16x256xf32>, vector<16x256xf32> -> vector<32x256xf32>
    %cst = arith.constant 0.000000e+00 : f32
    %5 = vector.broadcast %cst : f32 to vector<32x256xf32>
    %6 = arith.maximumf %4, %5 : vector<32x256xf32>
    %c0_5 = arith.constant 0 : index
    %c0_6 = arith.constant 0 : index
    %7 = vector.load %arg3[%c0_5, %c0_6] : memref<32x32xf32, #tpu.memory_space<vmem>>, vector<32x32xf32>
    %c0_7 = arith.constant 0 : index
    %c0_8 = arith.constant 0 : index
    %8 = vector.load %arg4[%c0_7, %c0_8] : memref<32x256xf32, #tpu.memory_space<vmem>>, vector<32x256xf32>
    %cst_9 = arith.constant dense<0.000000e+00> : vector<32x256xf32>
    %9 = tpu.matmul %7, %6, %cst_9 {dimension_numbers = #tpu.dot_dimension_numbers<[1], [0], [0], [1], [0, 0, 1, 1], [], []>} : vector<32x32xf32>, vector<32x256xf32>, vector<32x256xf32> -> vector<32x256xf32>
    %10 = arith.addf %9, %8 : vector<32x256xf32>
    %11 = vector.extract_strided_slice %10 {offsets = [0, 0], sizes = [16, 256], strides = [1, 1]} : vector<32x256xf32> to vector<16x256xf32>
    %12 = vector.extract_strided_slice %10 {offsets = [16, 0], sizes = [16, 256], strides = [1, 1]} : vector<32x256xf32> to vector<16x256xf32>
    %13 = tpu.concatenate %11, %12, %11, %12 in 0 : vector<16x256xf32>, vector<16x256xf32>, vector<16x256xf32>, vector<16x256xf32> -> vector<64x256xf32>
    %cst_10 = arith.constant 0.000000e+00 : f32
    %14 = vector.broadcast %cst_10 : f32 to vector<64x256xf32>
    %15 = arith.maximumf %13, %14 : vector<64x256xf32>
    %c4 = arith.constant 4 : index
    %c0_11 = arith.constant 0 : index
    %c0_12 = arith.constant 0 : index
    %16 = vector.load %arg5[%c4, %c0_11, %c0_12] : memref<18x64x256xf32, #tpu.memory_space<vmem>>, vector<1x64x256xf32>
    %17 = vector.shape_cast %16 : vector<1x64x256xf32> to vector<64x256xf32>
    %18 = arith.mulf %15, %17 : vector<64x256xf32>
    %c17_i32 = arith.constant 17 : i32
    %19 = tpu.dynamic_rotate %15 by %c17_i32 dim 1 : vector<64x256xf32>, i32 -> vector<64x256xf32>
    %c0_13 = arith.constant 0 : index
    %c0_14 = arith.constant 0 : index
    %c0_15 = arith.constant 0 : index
    %20 = vector.load %arg5[%c0_13, %c0_14, %c0_15] : memref<18x64x256xf32, #tpu.memory_space<vmem>>, vector<1x64x256xf32>
    %21 = vector.shape_cast %20 : vector<1x64x256xf32> to vector<64x256xf32>
    %22 = arith.mulf %19, %21 : vector<64x256xf32>
    %23 = arith.addf %18, %22 : vector<64x256xf32>
    %c16_i32 = arith.constant 16 : i32
    %24 = tpu.dynamic_rotate %15 by %c16_i32 dim 1 : vector<64x256xf32>, i32 -> vector<64x256xf32>
    %c1 = arith.constant 1 : index
    %c0_16 = arith.constant 0 : index
    %c0_17 = arith.constant 0 : index
    %25 = vector.load %arg5[%c1, %c0_16, %c0_17] : memref<18x64x256xf32, #tpu.memory_space<vmem>>, vector<1x64x256xf32>
    %26 = vector.shape_cast %25 : vector<1x64x256xf32> to vector<64x256xf32>
    %27 = arith.mulf %24, %26 : vector<64x256xf32>
    %28 = arith.addf %23, %27 : vector<64x256xf32>
    %c15_i32 = arith.constant 15 : i32
    %29 = tpu.dynamic_rotate %15 by %c15_i32 dim 1 : vector<64x256xf32>, i32 -> vector<64x256xf32>
    %c2 = arith.constant 2 : index
    %c0_18 = arith.constant 0 : index
    %c0_19 = arith.constant 0 : index
    %30 = vector.load %arg5[%c2, %c0_18, %c0_19] : memref<18x64x256xf32, #tpu.memory_space<vmem>>, vector<1x64x256xf32>
    %31 = vector.shape_cast %30 : vector<1x64x256xf32> to vector<64x256xf32>
    %32 = arith.mulf %29, %31 : vector<64x256xf32>
    %33 = arith.addf %28, %32 : vector<64x256xf32>
    %c1_i32 = arith.constant 1 : i32
    %34 = tpu.dynamic_rotate %15 by %c1_i32 dim 1 : vector<64x256xf32>, i32 -> vector<64x256xf32>
    %c3 = arith.constant 3 : index
    %c0_20 = arith.constant 0 : index
    %c0_21 = arith.constant 0 : index
    %35 = vector.load %arg5[%c3, %c0_20, %c0_21] : memref<18x64x256xf32, #tpu.memory_space<vmem>>, vector<1x64x256xf32>
    %36 = vector.shape_cast %35 : vector<1x64x256xf32> to vector<64x256xf32>
    %37 = arith.mulf %34, %36 : vector<64x256xf32>
    %38 = arith.addf %33, %37 : vector<64x256xf32>
    %c255_i32 = arith.constant 255 : i32
    %39 = tpu.dynamic_rotate %15 by %c255_i32 dim 1 : vector<64x256xf32>, i32 -> vector<64x256xf32>
    %c5 = arith.constant 5 : index
    %c0_22 = arith.constant 0 : index
    %c0_23 = arith.constant 0 : index
    %40 = vector.load %arg5[%c5, %c0_22, %c0_23] : memref<18x64x256xf32, #tpu.memory_space<vmem>>, vector<1x64x256xf32>
    %41 = vector.shape_cast %40 : vector<1x64x256xf32> to vector<64x256xf32>
    %42 = arith.mulf %39, %41 : vector<64x256xf32>
    %43 = arith.addf %38, %42 : vector<64x256xf32>
    %c241_i32 = arith.constant 241 : i32
    %44 = tpu.dynamic_rotate %15 by %c241_i32 dim 1 : vector<64x256xf32>, i32 -> vector<64x256xf32>
    %c6 = arith.constant 6 : index
    %c0_24 = arith.constant 0 : index
    %c0_25 = arith.constant 0 : index
    %45 = vector.load %arg5[%c6, %c0_24, %c0_25] : memref<18x64x256xf32, #tpu.memory_space<vmem>>, vector<1x64x256xf32>
    %46 = vector.shape_cast %45 : vector<1x64x256xf32> to vector<64x256xf32>
    %47 = arith.mulf %44, %46 : vector<64x256xf32>
    %48 = arith.addf %43, %47 : vector<64x256xf32>
    %c240_i32 = arith.constant 240 : i32
    %49 = tpu.dynamic_rotate %15 by %c240_i32 dim 1 : vector<64x256xf32>, i32 -> vector<64x256xf32>
    %c7 = arith.constant 7 : index
    %c0_26 = arith.constant 0 : index
    %c0_27 = arith.constant 0 : index
    %50 = vector.load %arg5[%c7, %c0_26, %c0_27] : memref<18x64x256xf32, #tpu.memory_space<vmem>>, vector<1x64x256xf32>
    %51 = vector.shape_cast %50 : vector<1x64x256xf32> to vector<64x256xf32>
    %52 = arith.mulf %49, %51 : vector<64x256xf32>
    %53 = arith.addf %48, %52 : vector<64x256xf32>
    %c239_i32 = arith.constant 239 : i32
    %54 = tpu.dynamic_rotate %15 by %c239_i32 dim 1 : vector<64x256xf32>, i32 -> vector<64x256xf32>
    %c8 = arith.constant 8 : index
    %c0_28 = arith.constant 0 : index
    %c0_29 = arith.constant 0 : index
    %55 = vector.load %arg5[%c8, %c0_28, %c0_29] : memref<18x64x256xf32, #tpu.memory_space<vmem>>, vector<1x64x256xf32>
    %56 = vector.shape_cast %55 : vector<1x64x256xf32> to vector<64x256xf32>
    %57 = arith.mulf %54, %56 : vector<64x256xf32>
    %58 = arith.addf %53, %57 : vector<64x256xf32>
    %c0_30 = arith.constant 0 : index
    %c0_31 = arith.constant 0 : index
    %c0_32 = arith.constant 0 : index
    %59 = vector.load %arg6[%c0_30, %c0_31, %c0_32] : memref<2x64x64xf32, #tpu.memory_space<vmem>>, vector<1x64x64xf32>
    %60 = vector.shape_cast %59 : vector<1x64x64xf32> to vector<64x64xf32>
    %c0_33 = arith.constant 0 : index
    %c0_34 = arith.constant 0 : index
    %c0_35 = arith.constant 0 : index
    %61 = vector.load %arg7[%c0_33, %c0_34, %c0_35] : memref<2x64x256xf32, #tpu.memory_space<vmem>>, vector<1x64x256xf32>
    %62 = vector.shape_cast %61 : vector<1x64x256xf32> to vector<64x256xf32>
    %cst_36 = arith.constant dense<0.000000e+00> : vector<64x256xf32>
    %63 = tpu.matmul %60, %58, %cst_36 {dimension_numbers = #tpu.dot_dimension_numbers<[1], [0], [0], [1], [0, 0, 1, 1], [], []>} : vector<64x64xf32>, vector<64x256xf32>, vector<64x256xf32> -> vector<64x256xf32>
    %64 = arith.addf %63, %62 : vector<64x256xf32>
    %cst_37 = arith.constant 0.000000e+00 : f32
    %65 = vector.broadcast %cst_37 : f32 to vector<64x256xf32>
    %66 = arith.maximumf %64, %65 : vector<64x256xf32>
    %c13 = arith.constant 13 : index
    %c0_38 = arith.constant 0 : index
    %c0_39 = arith.constant 0 : index
    %67 = vector.load %arg5[%c13, %c0_38, %c0_39] : memref<18x64x256xf32, #tpu.memory_space<vmem>>, vector<1x64x256xf32>
    %68 = vector.shape_cast %67 : vector<1x64x256xf32> to vector<64x256xf32>
    %69 = arith.mulf %66, %68 : vector<64x256xf32>
    %c17_i32_40 = arith.constant 17 : i32
    %70 = tpu.dynamic_rotate %66 by %c17_i32_40 dim 1 : vector<64x256xf32>, i32 -> vector<64x256xf32>
    %c9 = arith.constant 9 : index
    %c0_41 = arith.constant 0 : index
    %c0_42 = arith.constant 0 : index
    %71 = vector.load %arg5[%c9, %c0_41, %c0_42] : memref<18x64x256xf32, #tpu.memory_space<vmem>>, vector<1x64x256xf32>
    %72 = vector.shape_cast %71 : vector<1x64x256xf32> to vector<64x256xf32>
    %73 = arith.mulf %70, %72 : vector<64x256xf32>
    %74 = arith.addf %69, %73 : vector<64x256xf32>
    %c16_i32_43 = arith.constant 16 : i32
    %75 = tpu.dynamic_rotate %66 by %c16_i32_43 dim 1 : vector<64x256xf32>, i32 -> vector<64x256xf32>
    %c10 = arith.constant 10 : index
    %c0_44 = arith.constant 0 : index
    %c0_45 = arith.constant 0 : index
    %76 = vector.load %arg5[%c10, %c0_44, %c0_45] : memref<18x64x256xf32, #tpu.memory_space<vmem>>, vector<1x64x256xf32>
    %77 = vector.shape_cast %76 : vector<1x64x256xf32> to vector<64x256xf32>
    %78 = arith.mulf %75, %77 : vector<64x256xf32>
    %79 = arith.addf %74, %78 : vector<64x256xf32>
    %c15_i32_46 = arith.constant 15 : i32
    %80 = tpu.dynamic_rotate %66 by %c15_i32_46 dim 1 : vector<64x256xf32>, i32 -> vector<64x256xf32>
    %c11 = arith.constant 11 : index
    %c0_47 = arith.constant 0 : index
    %c0_48 = arith.constant 0 : index
    %81 = vector.load %arg5[%c11, %c0_47, %c0_48] : memref<18x64x256xf32, #tpu.memory_space<vmem>>, vector<1x64x256xf32>
    %82 = vector.shape_cast %81 : vector<1x64x256xf32> to vector<64x256xf32>
    %83 = arith.mulf %80, %82 : vector<64x256xf32>
    %84 = arith.addf %79, %83 : vector<64x256xf32>
    %c1_i32_49 = arith.constant 1 : i32
    %85 = tpu.dynamic_rotate %66 by %c1_i32_49 dim 1 : vector<64x256xf32>, i32 -> vector<64x256xf32>
    %c12 = arith.constant 12 : index
    %c0_50 = arith.constant 0 : index
    %c0_51 = arith.constant 0 : index
    %86 = vector.load %arg5[%c12, %c0_50, %c0_51] : memref<18x64x256xf32, #tpu.memory_space<vmem>>, vector<1x64x256xf32>
    %87 = vector.shape_cast %86 : vector<1x64x256xf32> to vector<64x256xf32>
    %88 = arith.mulf %85, %87 : vector<64x256xf32>
    %89 = arith.addf %84, %88 : vector<64x256xf32>
    %c255_i32_52 = arith.constant 255 : i32
    %90 = tpu.dynamic_rotate %66 by %c255_i32_52 dim 1 : vector<64x256xf32>, i32 -> vector<64x256xf32>
    %c14 = arith.constant 14 : index
    %c0_53 = arith.constant 0 : index
    %c0_54 = arith.constant 0 : index
    %91 = vector.load %arg5[%c14, %c0_53, %c0_54] : memref<18x64x256xf32, #tpu.memory_space<vmem>>, vector<1x64x256xf32>
    %92 = vector.shape_cast %91 : vector<1x64x256xf32> to vector<64x256xf32>
    %93 = arith.mulf %90, %92 : vector<64x256xf32>
    %94 = arith.addf %89, %93 : vector<64x256xf32>
    %c241_i32_55 = arith.constant 241 : i32
    %95 = tpu.dynamic_rotate %66 by %c241_i32_55 dim 1 : vector<64x256xf32>, i32 -> vector<64x256xf32>
    %c15 = arith.constant 15 : index
    %c0_56 = arith.constant 0 : index
    %c0_57 = arith.constant 0 : index
    %96 = vector.load %arg5[%c15, %c0_56, %c0_57] : memref<18x64x256xf32, #tpu.memory_space<vmem>>, vector<1x64x256xf32>
    %97 = vector.shape_cast %96 : vector<1x64x256xf32> to vector<64x256xf32>
    %98 = arith.mulf %95, %97 : vector<64x256xf32>
    %99 = arith.addf %94, %98 : vector<64x256xf32>
    %c240_i32_58 = arith.constant 240 : i32
    %100 = tpu.dynamic_rotate %66 by %c240_i32_58 dim 1 : vector<64x256xf32>, i32 -> vector<64x256xf32>
    %c16 = arith.constant 16 : index
    %c0_59 = arith.constant 0 : index
    %c0_60 = arith.constant 0 : index
    %101 = vector.load %arg5[%c16, %c0_59, %c0_60] : memref<18x64x256xf32, #tpu.memory_space<vmem>>, vector<1x64x256xf32>
    %102 = vector.shape_cast %101 : vector<1x64x256xf32> to vector<64x256xf32>
    %103 = arith.mulf %100, %102 : vector<64x256xf32>
    %104 = arith.addf %99, %103 : vector<64x256xf32>
    %c239_i32_61 = arith.constant 239 : i32
    %105 = tpu.dynamic_rotate %66 by %c239_i32_61 dim 1 : vector<64x256xf32>, i32 -> vector<64x256xf32>
    %c17 = arith.constant 17 : index
    %c0_62 = arith.constant 0 : index
    %c0_63 = arith.constant 0 : index
    %106 = vector.load %arg5[%c17, %c0_62, %c0_63] : memref<18x64x256xf32, #tpu.memory_space<vmem>>, vector<1x64x256xf32>
    %107 = vector.shape_cast %106 : vector<1x64x256xf32> to vector<64x256xf32>
    %108 = arith.mulf %105, %107 : vector<64x256xf32>
    %109 = arith.addf %104, %108 : vector<64x256xf32>
    %c1_64 = arith.constant 1 : index
    %c0_65 = arith.constant 0 : index
    %c0_66 = arith.constant 0 : index
    %110 = vector.load %arg6[%c1_64, %c0_65, %c0_66] : memref<2x64x64xf32, #tpu.memory_space<vmem>>, vector<1x64x64xf32>
    %111 = vector.shape_cast %110 : vector<1x64x64xf32> to vector<64x64xf32>
    %c1_67 = arith.constant 1 : index
    %c0_68 = arith.constant 0 : index
    %c0_69 = arith.constant 0 : index
    %112 = vector.load %arg7[%c1_67, %c0_68, %c0_69] : memref<2x64x256xf32, #tpu.memory_space<vmem>>, vector<1x64x256xf32>
    %113 = vector.shape_cast %112 : vector<1x64x256xf32> to vector<64x256xf32>
    %cst_70 = arith.constant dense<0.000000e+00> : vector<64x256xf32>
    %114 = tpu.matmul %111, %109, %cst_70 {dimension_numbers = #tpu.dot_dimension_numbers<[1], [0], [0], [1], [0, 0, 1, 1], [], []>} : vector<64x64xf32>, vector<64x256xf32>, vector<64x256xf32> -> vector<64x256xf32>
    %115 = arith.addf %114, %113 : vector<64x256xf32>
    %116 = vector.extract_strided_slice %115 {offsets = [0, 0], sizes = [16, 256], strides = [1, 1]} : vector<64x256xf32> to vector<16x256xf32>
    %117 = vector.extract_strided_slice %115 {offsets = [16, 0], sizes = [16, 256], strides = [1, 1]} : vector<64x256xf32> to vector<16x256xf32>
    %118 = arith.addf %116, %117 : vector<16x256xf32>
    %119 = vector.extract_strided_slice %115 {offsets = [32, 0], sizes = [16, 256], strides = [1, 1]} : vector<64x256xf32> to vector<16x256xf32>
    %120 = vector.extract_strided_slice %115 {offsets = [48, 0], sizes = [16, 256], strides = [1, 1]} : vector<64x256xf32> to vector<16x256xf32>
    %121 = arith.addf %119, %120 : vector<16x256xf32>
    %cst_71 = arith.constant 0.000000e+00 : f32
    %122 = vector.broadcast %cst_71 : f32 to vector<16x256xf32>
    %123 = arith.maximumf %12, %122 : vector<16x256xf32>
    %c4_72 = arith.constant 4 : index
    %c0_73 = arith.constant 0 : index
    %c0_74 = arith.constant 0 : index
    %124 = vector.load %arg8[%c4_72, %c0_73, %c0_74] : memref<27x16x256xf32, #tpu.memory_space<vmem>>, vector<1x16x256xf32>
    %125 = vector.shape_cast %124 : vector<1x16x256xf32> to vector<16x256xf32>
    %126 = arith.mulf %123, %125 : vector<16x256xf32>
    %c17_i32_75 = arith.constant 17 : i32
    %127 = tpu.dynamic_rotate %123 by %c17_i32_75 dim 1 : vector<16x256xf32>, i32 -> vector<16x256xf32>
    %c0_76 = arith.constant 0 : index
    %c0_77 = arith.constant 0 : index
    %c0_78 = arith.constant 0 : index
    %128 = vector.load %arg8[%c0_76, %c0_77, %c0_78] : memref<27x16x256xf32, #tpu.memory_space<vmem>>, vector<1x16x256xf32>
    %129 = vector.shape_cast %128 : vector<1x16x256xf32> to vector<16x256xf32>
    %130 = arith.mulf %127, %129 : vector<16x256xf32>
    %131 = arith.addf %126, %130 : vector<16x256xf32>
    %c16_i32_79 = arith.constant 16 : i32
    %132 = tpu.dynamic_rotate %123 by %c16_i32_79 dim 1 : vector<16x256xf32>, i32 -> vector<16x256xf32>
    %c1_80 = arith.constant 1 : index
    %c0_81 = arith.constant 0 : index
    %c0_82 = arith.constant 0 : index
    %133 = vector.load %arg8[%c1_80, %c0_81, %c0_82] : memref<27x16x256xf32, #tpu.memory_space<vmem>>, vector<1x16x256xf32>
    %134 = vector.shape_cast %133 : vector<1x16x256xf32> to vector<16x256xf32>
    %135 = arith.mulf %132, %134 : vector<16x256xf32>
    %136 = arith.addf %131, %135 : vector<16x256xf32>
    %c15_i32_83 = arith.constant 15 : i32
    %137 = tpu.dynamic_rotate %123 by %c15_i32_83 dim 1 : vector<16x256xf32>, i32 -> vector<16x256xf32>
    %c2_84 = arith.constant 2 : index
    %c0_85 = arith.constant 0 : index
    %c0_86 = arith.constant 0 : index
    %138 = vector.load %arg8[%c2_84, %c0_85, %c0_86] : memref<27x16x256xf32, #tpu.memory_space<vmem>>, vector<1x16x256xf32>
    %139 = vector.shape_cast %138 : vector<1x16x256xf32> to vector<16x256xf32>
    %140 = arith.mulf %137, %139 : vector<16x256xf32>
    %141 = arith.addf %136, %140 : vector<16x256xf32>
    %c1_i32_87 = arith.constant 1 : i32
    %142 = tpu.dynamic_rotate %123 by %c1_i32_87 dim 1 : vector<16x256xf32>, i32 -> vector<16x256xf32>
    %c3_88 = arith.constant 3 : index
    %c0_89 = arith.constant 0 : index
    %c0_90 = arith.constant 0 : index
    %143 = vector.load %arg8[%c3_88, %c0_89, %c0_90] : memref<27x16x256xf32, #tpu.memory_space<vmem>>, vector<1x16x256xf32>
    %144 = vector.shape_cast %143 : vector<1x16x256xf32> to vector<16x256xf32>
    %145 = arith.mulf %142, %144 : vector<16x256xf32>
    %146 = arith.addf %141, %145 : vector<16x256xf32>
    %c255_i32_91 = arith.constant 255 : i32
    %147 = tpu.dynamic_rotate %123 by %c255_i32_91 dim 1 : vector<16x256xf32>, i32 -> vector<16x256xf32>
    %c5_92 = arith.constant 5 : index
    %c0_93 = arith.constant 0 : index
    %c0_94 = arith.constant 0 : index
    %148 = vector.load %arg8[%c5_92, %c0_93, %c0_94] : memref<27x16x256xf32, #tpu.memory_space<vmem>>, vector<1x16x256xf32>
    %149 = vector.shape_cast %148 : vector<1x16x256xf32> to vector<16x256xf32>
    %150 = arith.mulf %147, %149 : vector<16x256xf32>
    %151 = arith.addf %146, %150 : vector<16x256xf32>
    %c241_i32_95 = arith.constant 241 : i32
    %152 = tpu.dynamic_rotate %123 by %c241_i32_95 dim 1 : vector<16x256xf32>, i32 -> vector<16x256xf32>
    %c6_96 = arith.constant 6 : index
    %c0_97 = arith.constant 0 : index
    %c0_98 = arith.constant 0 : index
    %153 = vector.load %arg8[%c6_96, %c0_97, %c0_98] : memref<27x16x256xf32, #tpu.memory_space<vmem>>, vector<1x16x256xf32>
    %154 = vector.shape_cast %153 : vector<1x16x256xf32> to vector<16x256xf32>
    %155 = arith.mulf %152, %154 : vector<16x256xf32>
    %156 = arith.addf %151, %155 : vector<16x256xf32>
    %c240_i32_99 = arith.constant 240 : i32
    %157 = tpu.dynamic_rotate %123 by %c240_i32_99 dim 1 : vector<16x256xf32>, i32 -> vector<16x256xf32>
    %c7_100 = arith.constant 7 : index
    %c0_101 = arith.constant 0 : index
    %c0_102 = arith.constant 0 : index
    %158 = vector.load %arg8[%c7_100, %c0_101, %c0_102] : memref<27x16x256xf32, #tpu.memory_space<vmem>>, vector<1x16x256xf32>
    %159 = vector.shape_cast %158 : vector<1x16x256xf32> to vector<16x256xf32>
    %160 = arith.mulf %157, %159 : vector<16x256xf32>
    %161 = arith.addf %156, %160 : vector<16x256xf32>
    %c239_i32_103 = arith.constant 239 : i32
    %162 = tpu.dynamic_rotate %123 by %c239_i32_103 dim 1 : vector<16x256xf32>, i32 -> vector<16x256xf32>
    %c8_104 = arith.constant 8 : index
    %c0_105 = arith.constant 0 : index
    %c0_106 = arith.constant 0 : index
    %163 = vector.load %arg8[%c8_104, %c0_105, %c0_106] : memref<27x16x256xf32, #tpu.memory_space<vmem>>, vector<1x16x256xf32>
    %164 = vector.shape_cast %163 : vector<1x16x256xf32> to vector<16x256xf32>
    %165 = arith.mulf %162, %164 : vector<16x256xf32>
    %166 = arith.addf %161, %165 : vector<16x256xf32>
    %c0_107 = arith.constant 0 : index
    %c0_108 = arith.constant 0 : index
    %c0_109 = arith.constant 0 : index
    %167 = vector.load %arg9[%c0_107, %c0_108, %c0_109] : memref<3x16x16xf32, #tpu.memory_space<vmem>>, vector<1x16x16xf32>
    %168 = vector.shape_cast %167 : vector<1x16x16xf32> to vector<16x16xf32>
    %c0_110 = arith.constant 0 : index
    %c0_111 = arith.constant 0 : index
    %c0_112 = arith.constant 0 : index
    %169 = vector.load %arg10[%c0_110, %c0_111, %c0_112] : memref<3x16x256xf32, #tpu.memory_space<vmem>>, vector<1x16x256xf32>
    %170 = vector.shape_cast %169 : vector<1x16x256xf32> to vector<16x256xf32>
    %cst_113 = arith.constant dense<0.000000e+00> : vector<16x256xf32>
    %171 = tpu.matmul %168, %166, %cst_113 {dimension_numbers = #tpu.dot_dimension_numbers<[1], [0], [0], [1], [0, 0, 1, 1], [], []>} : vector<16x16xf32>, vector<16x256xf32>, vector<16x256xf32> -> vector<16x256xf32>
    %172 = arith.addf %171, %170 : vector<16x256xf32>
    %cst_114 = arith.constant 0.000000e+00 : f32
    %173 = vector.broadcast %cst_114 : f32 to vector<16x256xf32>
    %174 = arith.maximumf %172, %173 : vector<16x256xf32>
    %c13_115 = arith.constant 13 : index
    %c0_116 = arith.constant 0 : index
    %c0_117 = arith.constant 0 : index
    %175 = vector.load %arg8[%c13_115, %c0_116, %c0_117] : memref<27x16x256xf32, #tpu.memory_space<vmem>>, vector<1x16x256xf32>
    %176 = vector.shape_cast %175 : vector<1x16x256xf32> to vector<16x256xf32>
    %177 = arith.mulf %174, %176 : vector<16x256xf32>
    %c17_i32_118 = arith.constant 17 : i32
    %178 = tpu.dynamic_rotate %174 by %c17_i32_118 dim 1 : vector<16x256xf32>, i32 -> vector<16x256xf32>
    %c9_119 = arith.constant 9 : index
    %c0_120 = arith.constant 0 : index
    %c0_121 = arith.constant 0 : index
    %179 = vector.load %arg8[%c9_119, %c0_120, %c0_121] : memref<27x16x256xf32, #tpu.memory_space<vmem>>, vector<1x16x256xf32>
    %180 = vector.shape_cast %179 : vector<1x16x256xf32> to vector<16x256xf32>
    %181 = arith.mulf %178, %180 : vector<16x256xf32>
    %182 = arith.addf %177, %181 : vector<16x256xf32>
    %c16_i32_122 = arith.constant 16 : i32
    %183 = tpu.dynamic_rotate %174 by %c16_i32_122 dim 1 : vector<16x256xf32>, i32 -> vector<16x256xf32>
    %c10_123 = arith.constant 10 : index
    %c0_124 = arith.constant 0 : index
    %c0_125 = arith.constant 0 : index
    %184 = vector.load %arg8[%c10_123, %c0_124, %c0_125] : memref<27x16x256xf32, #tpu.memory_space<vmem>>, vector<1x16x256xf32>
    %185 = vector.shape_cast %184 : vector<1x16x256xf32> to vector<16x256xf32>
    %186 = arith.mulf %183, %185 : vector<16x256xf32>
    %187 = arith.addf %182, %186 : vector<16x256xf32>
    %c15_i32_126 = arith.constant 15 : i32
    %188 = tpu.dynamic_rotate %174 by %c15_i32_126 dim 1 : vector<16x256xf32>, i32 -> vector<16x256xf32>
    %c11_127 = arith.constant 11 : index
    %c0_128 = arith.constant 0 : index
    %c0_129 = arith.constant 0 : index
    %189 = vector.load %arg8[%c11_127, %c0_128, %c0_129] : memref<27x16x256xf32, #tpu.memory_space<vmem>>, vector<1x16x256xf32>
    %190 = vector.shape_cast %189 : vector<1x16x256xf32> to vector<16x256xf32>
    %191 = arith.mulf %188, %190 : vector<16x256xf32>
    %192 = arith.addf %187, %191 : vector<16x256xf32>
    %c1_i32_130 = arith.constant 1 : i32
    %193 = tpu.dynamic_rotate %174 by %c1_i32_130 dim 1 : vector<16x256xf32>, i32 -> vector<16x256xf32>
    %c12_131 = arith.constant 12 : index
    %c0_132 = arith.constant 0 : index
    %c0_133 = arith.constant 0 : index
    %194 = vector.load %arg8[%c12_131, %c0_132, %c0_133] : memref<27x16x256xf32, #tpu.memory_space<vmem>>, vector<1x16x256xf32>
    %195 = vector.shape_cast %194 : vector<1x16x256xf32> to vector<16x256xf32>
    %196 = arith.mulf %193, %195 : vector<16x256xf32>
    %197 = arith.addf %192, %196 : vector<16x256xf32>
    %c255_i32_134 = arith.constant 255 : i32
    %198 = tpu.dynamic_rotate %174 by %c255_i32_134 dim 1 : vector<16x256xf32>, i32 -> vector<16x256xf32>
    %c14_135 = arith.constant 14 : index
    %c0_136 = arith.constant 0 : index
    %c0_137 = arith.constant 0 : index
    %199 = vector.load %arg8[%c14_135, %c0_136, %c0_137] : memref<27x16x256xf32, #tpu.memory_space<vmem>>, vector<1x16x256xf32>
    %200 = vector.shape_cast %199 : vector<1x16x256xf32> to vector<16x256xf32>
    %201 = arith.mulf %198, %200 : vector<16x256xf32>
    %202 = arith.addf %197, %201 : vector<16x256xf32>
    %c241_i32_138 = arith.constant 241 : i32
    %203 = tpu.dynamic_rotate %174 by %c241_i32_138 dim 1 : vector<16x256xf32>, i32 -> vector<16x256xf32>
    %c15_139 = arith.constant 15 : index
    %c0_140 = arith.constant 0 : index
    %c0_141 = arith.constant 0 : index
    %204 = vector.load %arg8[%c15_139, %c0_140, %c0_141] : memref<27x16x256xf32, #tpu.memory_space<vmem>>, vector<1x16x256xf32>
    %205 = vector.shape_cast %204 : vector<1x16x256xf32> to vector<16x256xf32>
    %206 = arith.mulf %203, %205 : vector<16x256xf32>
    %207 = arith.addf %202, %206 : vector<16x256xf32>
    %c240_i32_142 = arith.constant 240 : i32
    %208 = tpu.dynamic_rotate %174 by %c240_i32_142 dim 1 : vector<16x256xf32>, i32 -> vector<16x256xf32>
    %c16_143 = arith.constant 16 : index
    %c0_144 = arith.constant 0 : index
    %c0_145 = arith.constant 0 : index
    %209 = vector.load %arg8[%c16_143, %c0_144, %c0_145] : memref<27x16x256xf32, #tpu.memory_space<vmem>>, vector<1x16x256xf32>
    %210 = vector.shape_cast %209 : vector<1x16x256xf32> to vector<16x256xf32>
    %211 = arith.mulf %208, %210 : vector<16x256xf32>
    %212 = arith.addf %207, %211 : vector<16x256xf32>
    %c239_i32_146 = arith.constant 239 : i32
    %213 = tpu.dynamic_rotate %174 by %c239_i32_146 dim 1 : vector<16x256xf32>, i32 -> vector<16x256xf32>
    %c17_147 = arith.constant 17 : index
    %c0_148 = arith.constant 0 : index
    %c0_149 = arith.constant 0 : index
    %214 = vector.load %arg8[%c17_147, %c0_148, %c0_149] : memref<27x16x256xf32, #tpu.memory_space<vmem>>, vector<1x16x256xf32>
    %215 = vector.shape_cast %214 : vector<1x16x256xf32> to vector<16x256xf32>
    %216 = arith.mulf %213, %215 : vector<16x256xf32>
    %217 = arith.addf %212, %216 : vector<16x256xf32>
    %c1_150 = arith.constant 1 : index
    %c0_151 = arith.constant 0 : index
    %c0_152 = arith.constant 0 : index
    %218 = vector.load %arg9[%c1_150, %c0_151, %c0_152] : memref<3x16x16xf32, #tpu.memory_space<vmem>>, vector<1x16x16xf32>
    %219 = vector.shape_cast %218 : vector<1x16x16xf32> to vector<16x16xf32>
    %c1_153 = arith.constant 1 : index
    %c0_154 = arith.constant 0 : index
    %c0_155 = arith.constant 0 : index
    %220 = vector.load %arg10[%c1_153, %c0_154, %c0_155] : memref<3x16x256xf32, #tpu.memory_space<vmem>>, vector<1x16x256xf32>
    %221 = vector.shape_cast %220 : vector<1x16x256xf32> to vector<16x256xf32>
    %cst_156 = arith.constant dense<0.000000e+00> : vector<16x256xf32>
    %222 = tpu.matmul %219, %217, %cst_156 {dimension_numbers = #tpu.dot_dimension_numbers<[1], [0], [0], [1], [0, 0, 1, 1], [], []>} : vector<16x16xf32>, vector<16x256xf32>, vector<16x256xf32> -> vector<16x256xf32>
    %223 = arith.addf %222, %221 : vector<16x256xf32>
    %224 = arith.addf %223, %11 : vector<16x256xf32>
    %cst_157 = arith.constant 0.000000e+00 : f32
    %225 = vector.broadcast %cst_157 : f32 to vector<16x256xf32>
    %226 = arith.maximumf %118, %225 : vector<16x256xf32>
    %c22 = arith.constant 22 : index
    %c0_158 = arith.constant 0 : index
    %c0_159 = arith.constant 0 : index
    %227 = vector.load %arg8[%c22, %c0_158, %c0_159] : memref<27x16x256xf32, #tpu.memory_space<vmem>>, vector<1x16x256xf32>
    %228 = vector.shape_cast %227 : vector<1x16x256xf32> to vector<16x256xf32>
    %229 = arith.mulf %226, %228 : vector<16x256xf32>
    %c34_i32 = arith.constant 34 : i32
    %230 = tpu.dynamic_rotate %226 by %c34_i32 dim 1 : vector<16x256xf32>, i32 -> vector<16x256xf32>
    %c18 = arith.constant 18 : index
    %c0_160 = arith.constant 0 : index
    %c0_161 = arith.constant 0 : index
    %231 = vector.load %arg8[%c18, %c0_160, %c0_161] : memref<27x16x256xf32, #tpu.memory_space<vmem>>, vector<1x16x256xf32>
    %232 = vector.shape_cast %231 : vector<1x16x256xf32> to vector<16x256xf32>
    %233 = arith.mulf %230, %232 : vector<16x256xf32>
    %234 = arith.addf %229, %233 : vector<16x256xf32>
    %c32_i32 = arith.constant 32 : i32
    %235 = tpu.dynamic_rotate %226 by %c32_i32 dim 1 : vector<16x256xf32>, i32 -> vector<16x256xf32>
    %c19 = arith.constant 19 : index
    %c0_162 = arith.constant 0 : index
    %c0_163 = arith.constant 0 : index
    %236 = vector.load %arg8[%c19, %c0_162, %c0_163] : memref<27x16x256xf32, #tpu.memory_space<vmem>>, vector<1x16x256xf32>
    %237 = vector.shape_cast %236 : vector<1x16x256xf32> to vector<16x256xf32>
    %238 = arith.mulf %235, %237 : vector<16x256xf32>
    %239 = arith.addf %234, %238 : vector<16x256xf32>
    %c30_i32 = arith.constant 30 : i32
    %240 = tpu.dynamic_rotate %226 by %c30_i32 dim 1 : vector<16x256xf32>, i32 -> vector<16x256xf32>
    %c20 = arith.constant 20 : index
    %c0_164 = arith.constant 0 : index
    %c0_165 = arith.constant 0 : index
    %241 = vector.load %arg8[%c20, %c0_164, %c0_165] : memref<27x16x256xf32, #tpu.memory_space<vmem>>, vector<1x16x256xf32>
    %242 = vector.shape_cast %241 : vector<1x16x256xf32> to vector<16x256xf32>
    %243 = arith.mulf %240, %242 : vector<16x256xf32>
    %244 = arith.addf %239, %243 : vector<16x256xf32>
    %c2_i32 = arith.constant 2 : i32
    %245 = tpu.dynamic_rotate %226 by %c2_i32 dim 1 : vector<16x256xf32>, i32 -> vector<16x256xf32>
    %c21 = arith.constant 21 : index
    %c0_166 = arith.constant 0 : index
    %c0_167 = arith.constant 0 : index
    %246 = vector.load %arg8[%c21, %c0_166, %c0_167] : memref<27x16x256xf32, #tpu.memory_space<vmem>>, vector<1x16x256xf32>
    %247 = vector.shape_cast %246 : vector<1x16x256xf32> to vector<16x256xf32>
    %248 = arith.mulf %245, %247 : vector<16x256xf32>
    %249 = arith.addf %244, %248 : vector<16x256xf32>
    %c254_i32 = arith.constant 254 : i32
    %250 = tpu.dynamic_rotate %226 by %c254_i32 dim 1 : vector<16x256xf32>, i32 -> vector<16x256xf32>
    %c23 = arith.constant 23 : index
    %c0_168 = arith.constant 0 : index
    %c0_169 = arith.constant 0 : index
    %251 = vector.load %arg8[%c23, %c0_168, %c0_169] : memref<27x16x256xf32, #tpu.memory_space<vmem>>, vector<1x16x256xf32>
    %252 = vector.shape_cast %251 : vector<1x16x256xf32> to vector<16x256xf32>
    %253 = arith.mulf %250, %252 : vector<16x256xf32>
    %254 = arith.addf %249, %253 : vector<16x256xf32>
    %c226_i32 = arith.constant 226 : i32
    %255 = tpu.dynamic_rotate %226 by %c226_i32 dim 1 : vector<16x256xf32>, i32 -> vector<16x256xf32>
    %c24 = arith.constant 24 : index
    %c0_170 = arith.constant 0 : index
    %c0_171 = arith.constant 0 : index
    %256 = vector.load %arg8[%c24, %c0_170, %c0_171] : memref<27x16x256xf32, #tpu.memory_space<vmem>>, vector<1x16x256xf32>
    %257 = vector.shape_cast %256 : vector<1x16x256xf32> to vector<16x256xf32>
    %258 = arith.mulf %255, %257 : vector<16x256xf32>
    %259 = arith.addf %254, %258 : vector<16x256xf32>
    %c224_i32 = arith.constant 224 : i32
    %260 = tpu.dynamic_rotate %226 by %c224_i32 dim 1 : vector<16x256xf32>, i32 -> vector<16x256xf32>
    %c25 = arith.constant 25 : index
    %c0_172 = arith.constant 0 : index
    %c0_173 = arith.constant 0 : index
    %261 = vector.load %arg8[%c25, %c0_172, %c0_173] : memref<27x16x256xf32, #tpu.memory_space<vmem>>, vector<1x16x256xf32>
    %262 = vector.shape_cast %261 : vector<1x16x256xf32> to vector<16x256xf32>
    %263 = arith.mulf %260, %262 : vector<16x256xf32>
    %264 = arith.addf %259, %263 : vector<16x256xf32>
    %c222_i32 = arith.constant 222 : i32
    %265 = tpu.dynamic_rotate %226 by %c222_i32 dim 1 : vector<16x256xf32>, i32 -> vector<16x256xf32>
    %c26 = arith.constant 26 : index
    %c0_174 = arith.constant 0 : index
    %c0_175 = arith.constant 0 : index
    %266 = vector.load %arg8[%c26, %c0_174, %c0_175] : memref<27x16x256xf32, #tpu.memory_space<vmem>>, vector<1x16x256xf32>
    %267 = vector.shape_cast %266 : vector<1x16x256xf32> to vector<16x256xf32>
    %268 = arith.mulf %265, %267 : vector<16x256xf32>
    %269 = arith.addf %264, %268 : vector<16x256xf32>
    %c2_176 = arith.constant 2 : index
    %c0_177 = arith.constant 0 : index
    %c0_178 = arith.constant 0 : index
    %270 = vector.load %arg9[%c2_176, %c0_177, %c0_178] : memref<3x16x16xf32, #tpu.memory_space<vmem>>, vector<1x16x16xf32>
    %271 = vector.shape_cast %270 : vector<1x16x16xf32> to vector<16x16xf32>
    %c2_179 = arith.constant 2 : index
    %c0_180 = arith.constant 0 : index
    %c0_181 = arith.constant 0 : index
    %272 = vector.load %arg10[%c2_179, %c0_180, %c0_181] : memref<3x16x256xf32, #tpu.memory_space<vmem>>, vector<1x16x256xf32>
    %273 = vector.shape_cast %272 : vector<1x16x256xf32> to vector<16x256xf32>
    %cst_182 = arith.constant dense<0.000000e+00> : vector<16x256xf32>
    %274 = tpu.matmul %271, %269, %cst_182 {dimension_numbers = #tpu.dot_dimension_numbers<[1], [0], [0], [1], [0, 0, 1, 1], [], []>} : vector<16x16xf32>, vector<16x256xf32>, vector<16x256xf32> -> vector<16x256xf32>
    %275 = arith.addf %274, %273 : vector<16x256xf32>
    %276 = arith.addf %11, %275 : vector<16x256xf32>
    %277 = tpu.concatenate %118, %121, %224, %276 in 0 : vector<16x256xf32>, vector<16x256xf32>, vector<16x256xf32>, vector<16x256xf32> -> vector<64x256xf32>
    %c0_183 = arith.constant 0 : index
    %c0_184 = arith.constant 0 : index
    %c0_185 = arith.constant 0 : index
    %278 = vector.load %arg11[%c0_183, %c0_184, %c0_185] : memref<1x64x256xf32, #tpu.memory_space<vmem>>, vector<1x64x256xf32>
    %279 = vector.shape_cast %278 : vector<1x64x256xf32> to vector<64x256xf32>
    %280 = vector.shape_cast %277 : vector<64x256xf32> to vector<1x64x256xf32>
    tpu.vector_store %arg11[%c0_183, %c0_184, %c0_185], %280 {strides = array<i32>} : memref<1x64x256xf32, #tpu.memory_space<vmem>>, vector<1x64x256xf32>,
    return
  }
  func.func @transform_0(%arg0: i32) -> (i32, i32, i32) {
    %c0_i32 = arith.constant 0 : i32
    %c0_i32_0 = arith.constant 0 : i32
    %c0_i32_1 = arith.constant 0 : i32
    return %arg0, %c0_i32, %c0_i32_0 : i32, i32, i32
  }
  func.func @transform_1(%arg0: i32) -> (i32, i32, i32) {
    %c0_i32 = arith.constant 0 : i32
    %c0_i32_0 = arith.constant 0 : i32
    %c0_i32_1 = arith.constant 0 : i32
    return %arg0, %c0_i32, %c0_i32_0 : i32, i32, i32
  }
  func.func @transform_2(%arg0: i32) -> (i32, i32) {
    %c0_i32 = arith.constant 0 : i32
    %c0_i32_0 = arith.constant 0 : i32
    %c0_i32_1 = arith.constant 0 : i32
    return %c0_i32, %c0_i32_0 : i32, i32
  }
  func.func @transform_3(%arg0: i32) -> (i32, i32) {
    %c0_i32 = arith.constant 0 : i32
    %c0_i32_0 = arith.constant 0 : i32
    %c0_i32_1 = arith.constant 0 : i32
    return %c0_i32, %c0_i32_0 : i32, i32
  }
  func.func @transform_4(%arg0: i32) -> (i32, i32, i32) {
    %c0_i32 = arith.constant 0 : i32
    %c0_i32_0 = arith.constant 0 : i32
    %c0_i32_1 = arith.constant 0 : i32
    %c0_i32_2 = arith.constant 0 : i32
    return %c0_i32, %c0_i32_0, %c0_i32_1 : i32, i32, i32
  }
  func.func @transform_5(%arg0: i32) -> (i32, i32, i32) {
    %c0_i32 = arith.constant 0 : i32
    %c0_i32_0 = arith.constant 0 : i32
    %c0_i32_1 = arith.constant 0 : i32
    %c0_i32_2 = arith.constant 0 : i32
    return %c0_i32, %c0_i32_0, %c0_i32_1 : i32, i32, i32
  }
  func.func @transform_6(%arg0: i32) -> (i32, i32, i32) {
    %c0_i32 = arith.constant 0 : i32
    %c0_i32_0 = arith.constant 0 : i32
    %c0_i32_1 = arith.constant 0 : i32
    %c0_i32_2 = arith.constant 0 : i32
    return %c0_i32, %c0_i32_0, %c0_i32_1 : i32, i32, i32
  }
  func.func @transform_7(%arg0: i32) -> (i32, i32, i32) {
    %c0_i32 = arith.constant 0 : i32
    %c0_i32_0 = arith.constant 0 : i32
    %c0_i32_1 = arith.constant 0 : i32
    %c0_i32_2 = arith.constant 0 : i32
    return %c0_i32, %c0_i32_0, %c0_i32_1 : i32, i32, i32
  }
  func.func @transform_8(%arg0: i32) -> (i32, i32, i32) {
    %c0_i32 = arith.constant 0 : i32
    %c0_i32_0 = arith.constant 0 : i32
    %c0_i32_1 = arith.constant 0 : i32
    %c0_i32_2 = arith.constant 0 : i32
    return %c0_i32, %c0_i32_0, %c0_i32_1 : i32, i32, i32
  }
  func.func @transform_9(%arg0: i32) -> (i32, i32, i32) {
    %c0_i32 = arith.constant 0 : i32
    %c0_i32_0 = arith.constant 0 : i32
    %c0_i32_1 = arith.constant 0 : i32
    %c0_i32_2 = arith.constant 0 : i32
    return %c0_i32, %c0_i32_0, %c0_i32_1 : i32, i32, i32
  }
  func.func @transform_10(%arg0: i32) -> (i32, i32, i32) {
    %c0_i32 = arith.constant 0 : i32
    %c0_i32_0 = arith.constant 0 : i32
    %c0_i32_1 = arith.constant 0 : i32
    return %arg0, %c0_i32, %c0_i32_0 : i32, i32, i32
  }
}

</mosaic_0001>

<bundles_post_ra>
// kernel: cell_forward_nchw.1
= control target key start
LH: loop header
LB: loop body
LE: loop exit
PB: predicated region body
PF: predicated region fallthrough
CT: control target
= control target key end

     0   :  { %s3608_s13 = smov 0   ;;  %s7147_s0 = inlined_call_operand.vmem [shape: f32[2,16,256], index: 0, kind: input, shape index: {}]   ;;  %s7148_s1 = inlined_call_operand.vmem [shape: f32[2,16,256], index: 1, kind: input, shape index: {}]   ;;  %s7149_s2 = inlined_call_operand.vmem [shape: f32[32,32], index: 2, kind: input, shape index: {}]   ;;  %s7150_s3 = inlined_call_operand.vmem [shape: f32[32,256], index: 3, kind: input, shape index: {}]   ;;  %s7151_s4 = inlined_call_operand.vmem [shape: f32[18,64,256], index: 4, kind: input, shape index: {}]   ;;  %s7152_s5 = inlined_call_operand.vmem [shape: f32[2,64,64], index: 5, kind: input, shape index: {}]   ;;  %s7153_s6 = inlined_call_operand.vmem [shape: f32[2,64,256], index: 6, kind: input, shape index: {}]   ;;  %s7154_s7 = inlined_call_operand.vmem [shape: f32[27,16,256], index: 7, kind: input, shape index: {}]   ;;  %s7155_s8 = inlined_call_operand.vmem [shape: f32[3,16,16], index: 8, kind: input, shape index: {}]   ;;  %s7156_s9 = inlined_call_operand.vmem [shape: f32[3,16,256], index: 9, kind: input, shape index: {}]   ;;  %s7157_s10 = inlined_call_operand.vmem [shape: f32[2,64,256], index: 10, kind: output, shape index: {}]  }
   0x1 LB: > { %s3025_s14 = sadd.s32 4294967295, %s3535_s13   ;;  %p3029_p0 = scmp.ge.s32.totalorder %s3535_s13, 1  ;;  %s3535_s13 = sphi %s3608_s13, %s20_s13  }
   0x2   : > { %p322_p1 = scmp.lt.s32.totalorder %s3535_s13, 3 }
   0x4   : > { %p323_p2 = pnand %p3029_p0, %p322_p1 }
   0x6   : > { %326 = sbr.rel (%p323_p2) target bundleno = 1543 (0x607), region = 60 }
   0xb   : > { %p365_p3 = scmp.lt.s32.totalorder %s3025_s14, 1  ;;  %v396_v16 = vld [vmem:[%s7149_s2] sm:$0xff]  ;;  %vm408_vm0 = vcmask 261120   ;;  %v397_v17 = vld [vmem:[%s7149_s2 + $0x8] sm:$0xff]  ;;  %v398_v18 = vld [vmem:[%s7149_s2 + $0x10] sm:$0xff]  ;;  %s3537_s16 = smov 17  }
   0xc   : > { %v399_v19 = vld [vmem:[%s7149_s2 + $0x18] sm:$0xff]  ;;  %v400_v20 = vld [vmem:[%s7150_s3] sm:$0xff]  ;;  %v401_v21 = vld [vmem:[%s7150_s3 + $0x8] sm:$0xff]  ;;  %s3538_s17 = smov 15   ;;  %s3540_s19 = smov 16   ;;  %vm1137_vm9 = vcmask 523264  }
   0xd   : > { %s7309_s14 = smov (!%p365_p3, %s3025_s14), 1  ;;  %s3541_s20 = smov 113   ;;  %v403_v28 = vld [vmem:[%s7150_s3 + $0x18] sm:$0xff]  ;;  %v402_v32 = vld [vmem:[%s7150_s3 + $0x10] sm:$0xff]  ;;  %v404_v36 = vld [vmem:[%s7150_s3 + $0x20] sm:$0xff]  ;;  %vm2327_vm10 = vcmask 130048  }
   0xe   : > { %s3502_s15 = sshll.u32 %s7309_s14, 5  ;;  %s7160_s23 = smov 112   ;;  %v405_v40 = vld [vmem:[%s7150_s3 + $0x28] sm:$0xff]  ;;  %v406_v47 = vld [vmem:[%s7150_s3 + $0x30] sm:$0xff]  ;;  %v407_v54 = vld [vmem:[%s7150_s3 + $0x38] sm:$0xff] }
   0xf   : > { %s374_s18 = scalar_lea.vmem %s7148_s1, %s3502_s15  ;;  %s369_s21 = scalar_lea.vmem %s7147_s0, %s3502_s15 }
  0x10   : > { %v386_v0 = vld [vmem:[%s374_s18 + $0x10] sm:$0xff]  ;;  %v387_v1 = vld [vmem:[%s374_s18 + $0x18] sm:$0xff]  ;;  %v384_v2 = vld [vmem:[%s374_s18] sm:$0xff]  ;;  %s3543_s24 = smov 127   ;;  %s7158_s27 = smov 111  }
  0x11   : > { %v394_v3 = vmax.f32 %v386_v0, 0.0  ;;  %v395_v4 = vmax.f32 %v387_v1, 0.0  ;;  %v392_v5 = vmax.f32 %v384_v2, 0.0  ;;  %v385_v6 = vld [vmem:[%s374_s18 + $0x8] sm:$0xff]  ;;  %v382_v7 = vld [vmem:[%s369_s21 + $0x10] sm:$0xff]  ;;  %v383_v8 = vld [vmem:[%s369_s21 + $0x18] sm:$0xff] }
  0x12   : > { %v393_v9 = vmax.f32 %v385_v6, 0.0  ;;  %v380_v10 = vld [vmem:[%s369_s21] sm:$0xff]  ;;  %v381_v11 = vld [vmem:[%s369_s21 + $0x8] sm:$0xff]  ;;  %v390_v12 = vmax.f32 %v382_v7, 0.0  ;;  %v391_v13 = vmax.f32 %v383_v8, 0.0  ;;  %s3539_s18 = smov 1  }
  0x13   : > { %433 = vmatpush.msra.mxu0 %v394_v3  ;;  %462 = vmatpush.msra.mxu1 %v395_v4  ;;  %v388_v14 = vmax.f32 %v380_v10, 0.0  ;;  %v389_v15 = vmax.f32 %v381_v11, 0.0  ;;  %s7254_s28 = smov 112   ;;  %s7256_s26 = smov 111  }
  0x14   : > { %s3504_s21 = sshll.u32 %s7309_s14, 7  ;;  %s3545_s12 = smov 34  }
  0x15   : > { %434 = vmatpush.msra.mxu0 %v392_v5  ;;  %463 = vmatpush.msra.mxu1 %v393_v9  ;;  %s3549_s15 = smov 98  }
  0x17   : > { %435 = vmatpush.msra.mxu0 %v390_v12  ;;  %464 = vmatpush.msra.mxu1 %v391_v13 }
  0x19   : > { %436 = vmatpush.msra.mxu0 %v388_v14  ;;  %465 = vmatpush.msra.mxu1 %v389_v15 }
  0x1a   : > { %3036 = vmatmul.msk.f32.vlgmr.msra.gmra.mxu0 %vm408_vm0, %v396_v16  ;;  %3040 = vmatmul.msk.f32.vlgmr.msra.gmra.mxu1 %vm408_vm0, %v396_v16 }
  0x22   : > { %3041 = vmatmul.msk.f32.gmra.mxu1 %vm408_vm0, %v397_v17  ;;  %3037 = vmatmul.msk.f32.gmra.mxu0 %vm408_vm0, %v397_v17 }
  0x2a   : > { %3038 = vmatmul.msk.f32.gmra.mxu0 %vm408_vm0, %v398_v18  ;;  %3042 = vmatmul.msk.f32.gmra.mxu1 %vm408_vm0, %v398_v18 }
  0x32   : > { %3039 = vmatmul.msk.f32.gmra.mxu0 %vm408_vm0, %v399_v19  ;;  %3043 = vmatmul.msk.f32.gmra.mxu1 %vm408_vm0, %v399_v19  ;;  %v536_v19 = vlaneseq }
  0x97   : > { %v438_v22 = vpop.f32.mrf.mxu0  ;;  %v467_v23 = vpop.f32.mrf.mxu1 }
  0x98   : > { %v3643_v24 = vadd.f32 %v438_v22, %v400_v20  ;;  %v3645_v25 = vadd.f32 %v467_v23, %v401_v21  ;;  %v3881_v21 = vand.u32 127, %v536_v19 }
  0x9a   : > { %7200 = vst [vmem:[#allocation2_spill] sm:$0xff] %v3643_v24  ;;  %v3648_v26 = vmax.f32 %v3643_v24, 0.0  ;;  %v3651_v27 = vmax.f32 %v3645_v25, 0.0  ;;  %vm538_vm1 = vcmp.lt.s32.totalorder %v3881_v21, 17  ;;  %vm611_vm2 = vcmp.lt.s32.totalorder %v3881_v21, 16 }
  0x9b   : > { %7201 = vst [vmem:[#allocation3_spill] sm:$0xff] %v3645_v25  ;;  %v556_v25 = vld [vmem:[%s7151_s4 + $0x48] sm:$0xff]  ;;  %vm685_vm3 = vcmp.lt.s32.totalorder %v3881_v21, 15  ;;  %vm907_vm4 = vcmp.lt.s32.totalorder %v3881_v21, 113  ;;  %vm759_vm5 = vcmp.lt.s32.totalorder %v3881_v21, 1  ;;  %vm981_vm6 = vcmp.lt.s32.totalorder %v3881_v21, 112 }
  0x9c   : > { %528 = vrot.lane.b32.xlu2 %v3651_v27, %s3537_s16  ;;  %669 = vrot.lane.b32.xlu1 %v3648_v26, %s3538_s17  ;;  %vm833_vm7 = vcmp.lt.s32.totalorder %v3881_v21, 127  ;;  %vm1055_vm8 = vcmp.lt.s32.totalorder %v3881_v21, 111  ;;  %vm2678_vm11 = vcmp.lt.s32.totalorder %v3881_v21, 34  ;;  %vm2704_vm12 = vcmp.lt.s32.totalorder %v3881_v21, 32 }
  0x9d   : > { %520 = vrot.lane.b32.xlu0 %v3648_v26, %s3537_s16  ;;  %vm2730_vm13 = vcmp.lt.s32.totalorder %v3881_v21, 30  ;;  %vm2756_vm14 = vcmp.lt.s32.totalorder %v3881_v21, 2  ;;  %vm2782_vm15 = vcmp.lt.s32.totalorder %v3881_v21, 126  ;;  %vm2834_vm0 = vcmp.lt.s32.totalorder %v3881_v21, 96 }
  0x9f   : > { %v470_v29 = vpop.f32.mrf.mxu1  ;;  %v441_v33 = vpop.f32.mrf.mxu0 }
  0xa0   : > { %v3678_v30 = vadd.f32 %v470_v29, %v403_v28  ;;  %v3692_v34 = vadd.f32 %v441_v33, %v402_v32  ;;  %v3044_v28 = vld [vmem:[%s7151_s4 + $0x200] sm:$0xff]  ;;  %v3045_v29 = vld [vmem:[%s7151_s4 + $0x208] sm:$0xff] }
  0xa1   : > { %v3053_v32 = vld [vmem:[%s7151_s4 + $0x248] sm:$0xff]  ;;  %v3052_v33 = vld [vmem:[%s7151_s4 + $0x240] sm:$0xff] }
  0xa2   : > { %7202 = vst [vmem:[#allocation4_spill] sm:$0xff] %v3678_v30  ;;  %v3683_v31 = vmax.f32 %v3678_v30, 0.0  ;;  %v3697_v35 = vmax.f32 %v3692_v34, 0.0 }
  0xa3   : > { %7203 = vst [vmem:[#allocation5_spill] sm:$0xff] %v3692_v34  ;;  %v3050_v34 = vld [vmem:[%s7151_s4 + $0x230] sm:$0xff] }
  0xa4   : > { %751 = vrot.lane.b32.xlu1 %v3651_v27, %s3539_s18  ;;  %595 = vrot.lane.b32.xlu2 %v3648_v26, %s3540_s19 }
  0xa5   : > { %603 = vrot.lane.b32.xlu0 %v3651_v27, %s3540_s19 }
  0xa7   : > { %v444_v37 = vpop.f32.mrf.mxu0  ;;  %v473_v41 = vpop.f32.mrf.mxu1 }
  0xa8   : > { %v445_v38 = vadd.f32 %v444_v37, %v404_v36  ;;  %v474_v42 = vadd.f32 %v473_v41, %v405_v40  ;;  %v3047_v36 = vld [vmem:[%s7151_s4 + $0x218] sm:$0xff]  ;;  %v3054_v40 = vld [vmem:[%s7151_s4 + $0x250] sm:$0xff]  ;;  %v3048_v41 = vld [vmem:[%s7151_s4 + $0x220] sm:$0xff] }
  0xa9   : > { %v3055_v37 = vld [vmem:[%s7151_s4 + $0x258] sm:$0xff] }
  0xaa   : > { %v3726_v39 = vmax.f32 %v445_v38, 0.0  ;;  %v3743_v43 = vmax.f32 %v474_v42, 0.0  ;;  %v3046_v38 = vld [vmem:[%s7151_s4 + $0x210] sm:$0xff]  ;;  %v505_v42 = vmul.f32 %v3045_v29, %v3651_v27  ;;  %v3937_v19 = vmul.f32 %v3055_v37, %v3683_v31  ;;  %v3373_v29 = vld [vmem:[%s7154_s7 + $0x88] sm:$0xff] }
  0xab   : > { %v3962_v37 = vmul.f32 %v3054_v40, %v3697_v35 }
  0xac   : > { %891 = vrot.lane.b32.xlu1 %v3648_v26, %s3541_s20  ;;  %677 = vrot.lane.b32.xlu2 %v3651_v27, %s3538_s17  ;;  %v3965_v30 = vmul.f32 %v3048_v41, %v3726_v39 }
  0xad   : > { %743 = vrot.lane.b32.xlu0 %v3648_v26, %s3539_s18 }
  0xae   : > { %7207 = vst [vmem:[#allocation9_spill] sm:$0xff] %v3965_v30  ;;  %v3051_v30 = vld [vmem:[%s7151_s4 + $0x238] sm:$0xff] }
  0xaf   : > { %v447_v48 = vpop.f32.mrf.mxu0  ;;  %v476_v55 = vpop.f32.mrf.mxu1 }
  0xb0   : > { %v448_v49 = vadd.f32 %v447_v48, %v406_v47  ;;  %v477_v56 = vadd.f32 %v476_v55, %v407_v54  ;;  %v3917_v47 = vmul.f32 %v3053_v32, %v3651_v27  ;;  %v3920_v48 = vmul.f32 %v3044_v28, %v3648_v26  ;;  %v3056_v54 = vld [vmem:[%s7151_s4 + $0x260] sm:$0xff]  ;;  %v3057_v28 = vld [vmem:[%s7151_s4 + $0x268] sm:$0xff] }
  0xb1   : > { %v3372_v55 = vld [vmem:[%s7154_s7 + $0x80] sm:$0xff]  ;;  %v548_v32 = vld [vmem:[%s7151_s4 + $0x8] sm:$0xff]  ;;  %v3983_v40 = vmul.f32 %v3056_v54, %v3726_v39  ;;  %v4008_v54 = vmul.f32 %v3057_v28, %v3743_v43 }
  0xb2   : > { %v3784_v53 = vmax.f32 %v448_v49, 0.0  ;;  %v3801_v60 = vmax.f32 %v477_v56, 0.0  ;;  %v3049_v49 = vld [vmem:[%s7151_s4 + $0x228] sm:$0xff]  ;;  %v512_v56 = vmul.f32 %v3052_v33, %v3648_v26  ;;  %v3986_v41 = vmul.f32 %v3372_v55, %v3726_v39 }
  0xb3   : > { %7210 = vst [vmem:[#allocation12_spill] sm:$0xff] %v3983_v40  ;;  %v4011_v55 = vmul.f32 %v3373_v29, %v3743_v43  ;;  %v3374_v29 = vld [vmem:[%s7154_s7 + $0x90] sm:$0xff] }
  0xb4   : > { %965 = vrot.lane.b32.xlu1 %v3648_v26, %s7160_s23  ;;  %817 = vrot.lane.b32.xlu2 %v3648_v26, %s3543_s24  ;;  %7211 = vst [vmem:[#allocation13_spill] sm:$0xff] %v3986_v41 }
  0xb5   : > { %825 = vrot.lane.b32.xlu0 %v3651_v27, %s3543_s24  ;;  %7212 = vst [vmem:[#allocation14_spill] sm:$0xff] %v4008_v54 }
  0xb6   : > { %7213 = vst [vmem:[#allocation15_spill] sm:$0xff] %v4011_v55 }
  0xbc   : > { %605 = vrot.lane.b32.xlu1 %v3683_v31, %s3540_s19  ;;  %899 = vrot.lane.b32.xlu2 %v3651_v27, %s3541_s20 }
  0xbd   : > { %1047 = vrot.lane.b32.xlu0 %v3651_v27, %s7158_s27 }
  0xc4   : > { %745 = vrot.lane.b32.xlu1 %v3697_v35, %s3539_s18  ;;  %973 = vrot.lane.b32.xlu2 %v3651_v27, %s7160_s23  ;;  %v3934_v27 = vmul.f32 %v3047_v36, %v3683_v31  ;;  %v3959_v36 = vmul.f32 %v3046_v38, %v3697_v35 }
  0xc5   : > { %522 = vrot.lane.b32.xlu0 %v3697_v35, %s3537_s16 }
  0xcc   : > { %893 = vrot.lane.b32.xlu1 %v3697_v35, %s3541_s20  ;;  %1039 = vrot.lane.b32.xlu2 %v3648_v26, %s7158_s27  ;;  %v547_v26 = vld [vmem:[%s7151_s4] sm:$0xff] }
  0xcd   : > { %597 = vrot.lane.b32.xlu0 %v3697_v35, %s3540_s19 }
  0xd4   : > { %975 = vrot.lane.b32.xlu1 %v3683_v31, %s7160_s23  ;;  %530 = vrot.lane.b32.xlu2 %v3683_v31, %s3537_s16 }
  0xd5   : > { %679 = vrot.lane.b32.xlu0 %v3683_v31, %s3538_s17 }
  0xdc   : > { %1049 = vrot.lane.b32.xlu1 %v3683_v31, %s7158_s27  ;;  %671 = vrot.lane.b32.xlu2 %v3697_v35, %s3538_s17 }
  0xdd   : > { %827 = vrot.lane.b32.xlu0 %v3683_v31, %s3543_s24 }
  0xe4   : > { %524 = vrot.lane.b32.xlu1 %v3726_v39, %s3537_s16  ;;  %753 = vrot.lane.b32.xlu2 %v3683_v31, %s3539_s18 }
  0xe5   : > { %967 = vrot.lane.b32.xlu0 %v3697_v35, %s7160_s23 }
  0xec   : > { %599 = vrot.lane.b32.xlu1 %v3726_v39, %s3540_s19  ;;  %819 = vrot.lane.b32.xlu2 %v3697_v35, %s3543_s24 }
  0xed   : > { %1041 = vrot.lane.b32.xlu0 %v3697_v35, %s7158_s27  ;;  %v3980_v35 = vmul.f32 %v3049_v49, %v3743_v43 }
  0xef   : > { %7209 = vst [vmem:[#allocation11_spill] sm:$0xff] %v3980_v35  ;;  %v3059_v35 = vld [vmem:[%s7151_s4 + $0x278] sm:$0xff] }
  0xf4   : > { %681 = vrot.lane.b32.xlu1 %v3743_v43, %s3538_s17  ;;  %901 = vrot.lane.b32.xlu2 %v3683_v31, %s3541_s20  ;;  %v555_v31 = vld [vmem:[%s7151_s4 + $0x40] sm:$0xff] }
  0xf5   : > { %532 = vrot.lane.b32.xlu0 %v3743_v43, %s3537_s16 }
  0xf6   : > { %v3751_v44 = vpop.permute.xlu2 %528 }
  0xfc   : > { %829 = vrot.lane.b32.xlu1 %v3743_v43, %s3543_s24  ;;  %607 = vrot.lane.b32.xlu2 %v3743_v43, %s3540_s19 }
  0xfd   : > { %673 = vrot.lane.b32.xlu0 %v3726_v39, %s3538_s17 }
  0xfe   : > { %v3759_v45 = vpop.permute.xlu2 %595 }
 0x104   : > { %895 = vrot.lane.b32.xlu1 %v3726_v39, %s3541_s20  ;;  %747 = vrot.lane.b32.xlu2 %v3726_v39, %s3539_s18 }
 0x105   : > { %821 = vrot.lane.b32.xlu0 %v3726_v39, %s3543_s24 }
 0x106   : > { %v3767_v46 = vpop.permute.xlu2 %677 }
 0x10c   : > { %977 = vrot.lane.b32.xlu1 %v3743_v43, %s7160_s23  ;;  %755 = vrot.lane.b32.xlu2 %v3743_v43, %s3539_s18 }
 0x10d   : > { %969 = vrot.lane.b32.xlu0 %v3726_v39, %s7160_s23 }
 0x10e   : > { %v3778_v50 = vpop.permute.xlu1 %669  ;;  %v3780_v51 = vpop.permute.xlu2 %817 }
 0x10f   : > { %v3782_v52 = vpop.permute.xlu0 %520 }
 0x110   : > { %v539_v33 = vsel %vm538_vm1, %v3782_v52, %v3751_v44  ;;  %v543_v38 = vsel %vm538_vm1, %v3751_v44, %v3782_v52  ;;  %v3061_v44 = vld [vmem:[%s7151_s4 + $0x88] sm:$0xff]  ;;  %v3068_v52 = vld [vmem:[%s7151_s4 + $0xc0] sm:$0xff] }
 0x111   : > { %v564_v40 = vmul.f32 %v548_v32, %v539_v33  ;;  %v3375_v32 = vld [vmem:[%s7154_s7 + $0x98] sm:$0xff]  ;;  %v571_v55 = vmul.f32 %v555_v31, %v543_v38  ;;  %v572_v54 = vmul.f32 %v556_v25, %v539_v33  ;;  %v4049_v25 = vmul.f32 %v3374_v29, %v3784_v53 }
 0x112   : > { %v4052_v33 = vmul.f32 %v3375_v32, %v3801_v60 }
 0x113   : > { %7219 = vst [vmem:[#allocation21_spill] sm:$0xff] %v4049_v25 }
 0x114   : > { %526 = vrot.lane.b32.xlu1 %v3784_v53, %s3537_s16  ;;  %903 = vrot.lane.b32.xlu2 %v3743_v43, %s3541_s20  ;;  %7220 = vst [vmem:[#allocation22_spill] sm:$0xff] %v4052_v33 }
 0x115   : > { %1051 = vrot.lane.b32.xlu0 %v3743_v43, %s7158_s27  ;;  %v4027_v43 = vmul.f32 %v3050_v34, %v3784_v53 }
 0x116   : > { %v3795_v57 = vpop.permute.xlu1 %751  ;;  %v3797_v58 = vpop.permute.xlu2 %899 }
 0x117   : > { %v3799_v59 = vpop.permute.xlu0 %603  ;;  %7215 = vst [vmem:[#allocation17_spill] sm:$0xff] %v4027_v43 }
 0x118   : > { %v616_v28 = vsel %vm611_vm2, %v3799_v59, %v3759_v45 }
 0x11c   : > { %534 = vrot.lane.b32.xlu1 %v3801_v60, %s3537_s16  ;;  %1043 = vrot.lane.b32.xlu2 %v3726_v39, %s7158_s27  ;;  %v612_v39 = vsel %vm611_vm2, %v3759_v45, %v3799_v59  ;;  %v4039_v45 = vmul.f32 %v3051_v30, %v3801_v60  ;;  %v563_v59 = vmul.f32 %v547_v26, %v543_v38  ;;  %v3076_v30 = vld [vmem:[%s7151_s4 + $0x100] sm:$0xff] }
 0x11d   : > { %609 = vrot.lane.b32.xlu0 %v3801_v60, %s3540_s19  ;;  %v638_v43 = vmul.f32 %v3061_v44, %v612_v39  ;;  %v686_v26 = vsel %vm685_vm3, %v3778_v50, %v3767_v46  ;;  %v3084_v38 = vld [vmem:[%s7151_s4 + $0x140] sm:$0xff]  ;;  %v588_v44 = vadd.f32 %v572_v54, %v3917_v47 }
 0x11e   : > { %v3809_v61 = vpop.permute.xlu1 %891  ;;  %v3813_v63 = vpop.permute.xlu2 %973  ;;  %7216 = vst [vmem:[#allocation18_spill] sm:$0xff] %v4039_v45 }
 0x11f   : > { %v3811_v62 = vpop.permute.xlu0 %743 }
 0x120   : > { %v760_v47 = vsel %vm759_vm5, %v3811_v62, %v3795_v57 }
 0x124   : > { %675 = vrot.lane.b32.xlu1 %v3784_v53, %s3538_s17  ;;  %601 = vrot.lane.b32.xlu2 %v3784_v53, %s3540_s19 }
 0x125   : > { %749 = vrot.lane.b32.xlu0 %v3784_v53, %s3539_s18 }
 0x126   : > { %v3821_v0 = vpop.permute.xlu1 %965  ;;  %v3825_v2 = vpop.permute.xlu2 %1039 }
 0x127   : > { %v3823_v1 = vpop.permute.xlu0 %825 }
 0x12c   : > { %757 = vrot.lane.b32.xlu1 %v3801_v60, %s3539_s18  ;;  %683 = vrot.lane.b32.xlu2 %v3801_v60, %s3538_s17 }
 0x12d   : > { %823 = vrot.lane.b32.xlu0 %v3784_v53, %s3543_s24 }
 0x12e   : > { %v3833_v3 = vpop.permute.xlu1 %605  ;;  %v3839_v5 = vpop.permute.xlu2 %530 }
 0x12f   : > { %v3835_v4 = vpop.permute.xlu0 %1047 }
 0x134   : > { %831 = vrot.lane.b32.xlu1 %v3801_v60, %s3543_s24  ;;  %897 = vrot.lane.b32.xlu2 %v3784_v53, %s3541_s20 }
 0x135   : > { %905 = vrot.lane.b32.xlu0 %v3801_v60, %s3541_s20 }
 0x136   : > { %v3845_v6 = vpop.permute.xlu1 %745  ;;  %v3857_v9 = vpop.permute.xlu2 %671 }
 0x137   : > { %v3847_v7 = vpop.permute.xlu0 %522 }
 0x13c   : > { %979 = vrot.lane.b32.xlu1 %v3801_v60, %s7160_s23  ;;  %1045 = vrot.lane.b32.xlu2 %v3784_v53, %s7158_s27 }
 0x13d   : > { %971 = vrot.lane.b32.xlu0 %v3784_v53, %s7160_s23 }
 0x13e   : > { %v3855_v8 = vpop.permute.xlu1 %893  ;;  %v3867_v13 = vpop.permute.xlu2 %753 }
 0x13f   : > { %v3859_v10 = vpop.permute.xlu0 %597 }
 0x145   : > { %1053 = vrot.lane.b32.xlu0 %v3801_v60, %s7158_s27 }
 0x146   : > { %v3863_v11 = vpop.permute.xlu1 %975  ;;  %v3873_v16 = vpop.permute.xlu2 %819 }
 0x147   : > { %v3865_v12 = vpop.permute.xlu0 %679 }
 0x14e   : > { %v3869_v14 = vpop.permute.xlu1 %1049  ;;  %v3879_v20 = vpop.permute.xlu2 %901 }
 0x14f   : > { %7204 = vst [vmem:[#allocation6_spill] sm:$0xff] %v3869_v14  ;;  %v3871_v15 = vpop.permute.xlu0 %827  ;;  %v645_v14 = vmul.f32 %v3068_v52, %v616_v28  ;;  %v3085_v52 = vld [vmem:[%s7151_s4 + $0x148] sm:$0xff] }
 0x156   : > { %v3875_v17 = vpop.permute.xlu1 %524  ;;  %v4005_v49 = vpop.permute.xlu2 %607 }
 0x157   : > { %7205 = vst [vmem:[#allocation7_spill] sm:$0xff] %v3875_v17  ;;  %v3877_v18 = vpop.permute.xlu0 %967  ;;  %v3058_v17 = vld [vmem:[%s7151_s4 + $0x270] sm:$0xff] }
 0x158   : > { %v4042_v34 = vmul.f32 %v3058_v17, %v3784_v53  ;;  %v3077_v17 = vld [vmem:[%s7151_s4 + $0x108] sm:$0xff]  ;;  %v580_v53 = vadd.f32 %v564_v40, %v505_v42 }
 0x159   : > { %v3101_v42 = vld [vmem:[%s7151_s4 + $0x1c8] sm:$0xff] }
 0x15a   : > { %7217 = vst [vmem:[#allocation19_spill] sm:$0xff] %v4042_v34 }
 0x15e   : > { %v3883_v22 = vpop.permute.xlu1 %599 }
 0x15f   : > { %v3885_v23 = vpop.permute.xlu0 %1041 }
 0x160   : > { %7206 = vst [vmem:[#allocation8_spill] sm:$0xff] %v3885_v23  ;;  %v4046_v23 = vmul.f32 %v3059_v35, %v3801_v60  ;;  %v587_v35 = vadd.f32 %v571_v55, %v512_v56  ;;  %v764_v56 = vsel %vm759_vm5, %v3795_v57, %v3811_v62  ;;  %v3116_v57 = vld [vmem:[%s7151_s4 + $0x2c0] sm:$0xff]  ;;  %v3117_v62 = vld [vmem:[%s7151_s4 + $0x2c8] sm:$0xff] }
 0x162   : > { %7218 = vst [vmem:[#allocation20_spill] sm:$0xff] %v4046_v23  ;;  %v661_v54 = vadd.f32 %v645_v14, %v587_v35  ;;  %v834_v14 = vsel %vm833_vm7, %v3780_v51, %v3823_v1  ;;  %v912_v35 = vsel %vm907_vm4, %v3797_v58, %v3809_v61 }
 0x163   : > { %v867_v25 = vmul.f32 %v3116_v57, %v834_v14 }
 0x166   : > { %v3977_v24 = vpop.permute.xlu1 %681 }
 0x167   : > { %7208 = vst [vmem:[#allocation10_spill] sm:$0xff] %v3977_v24  ;;  %v4013_v41 = vpop.permute.xlu0 %532  ;;  %v3069_v24 = vld [vmem:[%s7151_s4 + $0xc8] sm:$0xff] }
 0x168   : > { %7214 = vst [vmem:[#allocation16_spill] sm:$0xff] %v4013_v41  ;;  %v3060_v41 = vld [vmem:[%s7151_s4 + $0x80] sm:$0xff]  ;;  %v646_v31 = vmul.f32 %v3069_v24, %v612_v39  ;;  %v690_v24 = vsel %vm685_vm3, %v3767_v46, %v3778_v50  ;;  %v579_v39 = vadd.f32 %v563_v59, %v3920_v48  ;;  %v654_v46 = vadd.f32 %v638_v43, %v580_v53  ;;  %v3093_v43 = vld [vmem:[%s7151_s4 + $0x188] sm:$0xff] }
 0x169   : > { %v637_v60 = vmul.f32 %v3060_v41, %v616_v28  ;;  %v3100_v50 = vld [vmem:[%s7151_s4 + $0x1c0] sm:$0xff]  ;;  %v711_v40 = vmul.f32 %v3076_v30, %v690_v24  ;;  %v712_v41 = vmul.f32 %v3077_v17, %v686_v26  ;;  %v719_v32 = vmul.f32 %v3084_v38, %v690_v24 }
 0x16a   : > { %v662_v55 = vadd.f32 %v646_v31, %v588_v44  ;;  %v3092_v28 = vld [vmem:[%s7151_s4 + $0x180] sm:$0xff]  ;;  %v838_v31 = vsel %vm833_vm7, %v3823_v1, %v3780_v51  ;;  %v720_v30 = vmul.f32 %v3085_v52, %v686_v26  ;;  %v908_v24 = vsel %vm907_vm4, %v3809_v61, %v3797_v58  ;;  %v3109_v51 = vld [vmem:[%s7151_s4 + $0x288] sm:$0xff]  ;;  %v4129_v1 = vpop.permute.xlu2 %747 }
 0x16b   : > { %v653_v59 = vadd.f32 %v637_v60, %v579_v39  ;;  %v3124_v17 = vld [vmem:[%s7151_s4 + $0x300] sm:$0xff]  ;;  %v793_v53 = vmul.f32 %v3100_v50, %v764_v56  ;;  %v794_v60 = vmul.f32 %v3101_v42, %v760_v47  ;;  %7222 = vst [vmem:[#allocation24_spill] sm:$0xff] %v4129_v1  ;;  %v3125_v26 = vld [vmem:[%s7151_s4 + $0x308] sm:$0xff]  ;;  %v728_v44 = vadd.f32 %v712_v41, %v654_v46 }
 0x16c   : > { %v3108_v38 = vld [vmem:[%s7151_s4 + $0x280] sm:$0xff]  ;;  %v785_v52 = vmul.f32 %v3092_v28, %v764_v56  ;;  %v786_v39 = vmul.f32 %v3093_v43, %v760_v47  ;;  %v736_v42 = vadd.f32 %v720_v30, %v662_v55  ;;  %v735_v33 = vadd.f32 %v719_v32, %v661_v54  ;;  %v3133_v58 = vld [vmem:[%s7151_s4 + $0x348] sm:$0xff] }
 0x16d   : > { %v3132_v50 = vld [vmem:[%s7151_s4 + $0x340] sm:$0xff]  ;;  %v868_v45 = vmul.f32 %v3117_v62, %v838_v31  ;;  %v933_v23 = vmul.f32 %v3124_v17, %v908_v24  ;;  %v727_v34 = vadd.f32 %v711_v40, %v653_v59  ;;  %v860_v1 = vmul.f32 %v3109_v51, %v838_v31  ;;  %v3141_v28 = vld [vmem:[%s7151_s4 + $0x388] sm:$0xff]  ;;  %v549_v62 = vld [vmem:[%s7151_s4 + $0x10] sm:$0xff] }
 0x16e   : > { %v4092_v48 = vpop.permute.xlu1 %829  ;;  %v934_v61 = vmul.f32 %v3125_v26, %v912_v35  ;;  %v809_v46 = vadd.f32 %v793_v53, %v735_v33  ;;  %v810_v47 = vadd.f32 %v794_v60, %v736_v42  ;;  %v3140_v56 = vld [vmem:[%s7151_s4 + $0x380] sm:$0xff]  ;;  %v982_v41 = vsel %vm981_vm6, %v3821_v0, %v3813_v63  ;;  %v3149_v43 = vld [vmem:[%s7151_s4 + $0x3c8] sm:$0xff]  ;;  %v557_v31 = vld [vmem:[%s7151_s4 + $0x50] sm:$0xff] }
 0x16f   : > { %7221 = vst [vmem:[#allocation23_spill] sm:$0xff] %v4092_v48  ;;  %v4100_v29 = vpop.permute.xlu0 %673  ;;  %v859_v48 = vmul.f32 %v3108_v38, %v834_v14  ;;  %v941_v54 = vmul.f32 %v3132_v50, %v908_v24  ;;  %v801_v40 = vadd.f32 %v785_v52, %v727_v34  ;;  %v802_v55 = vadd.f32 %v786_v39, %v728_v44  ;;  %v3148_v33 = vld [vmem:[%s7151_s4 + $0x3c0] sm:$0xff]  ;;  %v550_v14 = vld [vmem:[%s7151_s4 + $0x18] sm:$0xff]  ;;  %v3070_v26 = vld [vmem:[%s7151_s4 + $0xd0] sm:$0xff] }
 0x170   : > { %v986_v32 = vsel %vm981_vm6, %v3813_v63, %v3821_v0  ;;  %v883_v34 = vadd.f32 %v867_v25, %v809_v46  ;;  %v884_v57 = vadd.f32 %v868_v45, %v810_v47  ;;  %v540_v63 = vsel %vm538_vm1, %v3847_v7, %v3839_v5  ;;  %v558_v53 = vld [vmem:[%s7151_s4 + $0x58] sm:$0xff]  ;;  %v3086_v42 = vld [vmem:[%s7151_s4 + $0x150] sm:$0xff] }
 0x171   : > { %v544_v0 = vsel %vm538_vm1, %v3839_v5, %v3847_v7  ;;  %v942_v25 = vmul.f32 %v3133_v58, %v912_v35  ;;  %v4186_v30 = vmul.f32 %v3140_v56, %v982_v41  ;;  %v875_v17 = vadd.f32 %v859_v48, %v801_v40  ;;  %v3062_v35 = vld [vmem:[%s7151_s4 + $0x90] sm:$0xff]  ;;  %v3063_v44 = vld [vmem:[%s7151_s4 + $0x98] sm:$0xff] }
 0x172   : > { %v876_v24 = vadd.f32 %v860_v1, %v802_v55  ;;  %v4191_v60 = vmul.f32 %v3141_v28, %v986_v32  ;;  %v1015_v38 = vmul.f32 %v3148_v33, %v982_v41  ;;  %v1016_v51 = vmul.f32 %v3149_v43, %v986_v32  ;;  %v3071_v52 = vld [vmem:[%s7151_s4 + $0xd8] sm:$0xff]  ;;  %v4220_v46 = vpop.permute.xlu2 %755  ;;  %v3078_v40 = vld [vmem:[%s7151_s4 + $0x110] sm:$0xff] }
 0x173   : > { %v617_v5 = vsel %vm611_vm2, %v3833_v3, %v3859_v10  ;;  %v565_v7 = vmul.f32 %v549_v62, %v544_v0  ;;  %v566_v48 = vmul.f32 %v550_v14, %v540_v63  ;;  %v573_v1 = vmul.f32 %v557_v31, %v544_v0 }
 0x174   : > { %v613_v39 = vsel %vm611_vm2, %v3859_v10, %v3833_v3  ;;  %v574_v50 = vmul.f32 %v558_v53, %v540_v63  ;;  %v691_v58 = vsel %vm685_vm3, %v3865_v12, %v3857_v9  ;;  %v957_v47 = vadd.f32 %v941_v54, %v883_v34  ;;  %v3079_v3 = vld [vmem:[%s7151_s4 + $0x118] sm:$0xff] }
 0x175   : > { %v958_v56 = vadd.f32 %v942_v25, %v884_v57  ;;  %v647_v41 = vmul.f32 %v3070_v26, %v617_v5  ;;  %v3087_v10 = vld [vmem:[%s7151_s4 + $0x158] sm:$0xff]  ;;  %v687_v55 = vsel %vm685_vm3, %v3857_v9, %v3865_v12  ;;  %v949_v54 = vadd.f32 %v933_v23, %v875_v17  ;;  %v3164_v17 = vld [vmem:[%s7151_s4 + $0x440] sm:$0xff] }
 0x176   : > { %v4165_v59 = vpop.permute.xlu1 %895  ;;  %v4235_v28 = vadd.f32 %v934_v61, %v876_v24  ;;  %v1056_v33 = vsel %vm1055_vm8, %v3825_v2, %v3835_v4  ;;  %v639_v43 = vmul.f32 %v3062_v35, %v617_v5  ;;  %v640_v32 = vmul.f32 %v3063_v44, %v613_v39  ;;  %v3165_v24 = vld [vmem:[%s7151_s4 + $0x448] sm:$0xff]  ;;  %v3110_v44 = vld [vmem:[%s7151_s4 + $0x290] sm:$0xff] }
 0x177   : > { %v4184_v45 = vpop.permute.xlu0 %821  ;;  %v648_v34 = vmul.f32 %v3071_v52, %v613_v39  ;;  %v581_v57 = vadd.f32 %v565_v7, %v3959_v36  ;;  %v582_v62 = vadd.f32 %v566_v48, %v3934_v27  ;;  %v589_v14 = vadd.f32 %v573_v1, %v3962_v37  ;;  %v3094_v27 = vld [vmem:[%s7151_s4 + $0x190] sm:$0xff]  ;;  %v3103_v48 = vld [vmem:[%s7151_s4 + $0x1d8] sm:$0xff] }
 0x178   : > { %v721_v31 = vmul.f32 %v3086_v42, %v691_v58  ;;  %v590_v9 = vadd.f32 %v574_v50, %v3937_v19  ;;  %v713_v12 = vmul.f32 %v3078_v40, %v691_v58  ;;  %v714_v23 = vmul.f32 %v3079_v3, %v687_v55  ;;  %v3119_v52 = vld [vmem:[%s7151_s4 + $0x2d8] sm:$0xff] }
 0x179   : > { %v722_v61 = vmul.f32 %v3087_v10, %v687_v55  ;;  %v1060_v25 = vsel %vm1055_vm8, %v3835_v4, %v3825_v2  ;;  %v765_v36 = vsel %vm759_vm5, %v3867_v13, %v3845_v6  ;;  %v663_v19 = vadd.f32 %v647_v41, %v589_v14  ;;  %v3095_v2 = vld [vmem:[%s7151_s4 + $0x198] sm:$0xff]  ;;  %v3102_v4 = vld [vmem:[%s7151_s4 + $0x1d0] sm:$0xff]  ;;  %v3156_v41 = vld [vmem:[%s7151_s4 + $0x400] sm:$0xff] }
 0x17a   : > { %v1031_v37 = vadd.f32 %v1015_v38, %v957_v47  ;;  %v655_v53 = vadd.f32 %v639_v43, %v581_v57  ;;  %v656_v26 = vadd.f32 %v640_v32, %v582_v62  ;;  %v664_v5 = vadd.f32 %v648_v34, %v590_v9  ;;  %v3118_v38 = vld [vmem:[%s7151_s4 + $0x2d0] sm:$0xff] }
 0x17b   : > { %v835_v7 = vsel %vm833_vm7, %v3873_v16, %v3871_v15  ;;  %v761_v1 = vsel %vm759_vm5, %v3845_v6, %v3867_v13  ;;  %v737_v35 = vadd.f32 %v721_v31, %v663_v19  ;;  %v839_v39 = vsel %vm833_vm7, %v3871_v15, %v3873_v16  ;;  %v3111_v6 = vld [vmem:[%s7151_s4 + $0x298] sm:$0xff]  ;;  %v3157_v31 = vld [vmem:[%s7151_s4 + $0x408] sm:$0xff]  ;;  %v3126_v9 = vld [vmem:[%s7151_s4 + $0x310] sm:$0xff] }
 0x17c   : > { %v1032_v50 = vadd.f32 %v1016_v51, %v958_v56  ;;  %v729_v42 = vadd.f32 %v713_v12, %v655_v53  ;;  %v730_v58 = vadd.f32 %v714_v23, %v656_v26  ;;  %v738_v47 = vadd.f32 %v722_v61, %v664_v5  ;;  %v4302_v51 = vpop.permute.xlu2 %903  ;;  %v3134_v12 = vld [vmem:[%s7151_s4 + $0x350] sm:$0xff]  ;;  %v3143_v5 = vld [vmem:[%s7151_s4 + $0x398] sm:$0xff] }
 0x17d   : > { %v1089_v13 = vmul.f32 %v3164_v17, %v1056_v33  ;;  %v787_v40 = vmul.f32 %v3094_v27, %v765_v36  ;;  %v795_v3 = vmul.f32 %v3102_v4, %v765_v36  ;;  %v869_v10 = vmul.f32 %v3118_v38, %v835_v7  ;;  %v3135_v27 = vld [vmem:[%s7151_s4 + $0x358] sm:$0xff]  ;;  %v3150_v17 = vld [vmem:[%s7151_s4 + $0x3d0] sm:$0xff] }
 0x17e   : > { %v4244_v63 = vpop.permute.xlu1 %977  ;;  %v1090_v55 = vmul.f32 %v3165_v24, %v1060_v25  ;;  %v788_v43 = vmul.f32 %v3095_v2, %v761_v1  ;;  %v796_v32 = vmul.f32 %v3103_v48, %v761_v1  ;;  %v861_v15 = vmul.f32 %v3110_v44, %v835_v7  ;;  %v3151_v24 = vld [vmem:[%s7151_s4 + $0x3d8] sm:$0xff]  ;;  %v3142_v26 = vld [vmem:[%s7151_s4 + $0x390] sm:$0xff] }
 0x17f   : > { %v4247_v0 = vpop.permute.xlu0 %969  ;;  %v870_v16 = vmul.f32 %v3119_v52, %v839_v39  ;;  %v811_v56 = vadd.f32 %v795_v3, %v737_v35  ;;  %v862_v34 = vmul.f32 %v3111_v6, %v839_v39  ;;  %v1023_v62 = vadd.f32 %v4186_v30, %v949_v54  ;;  %v7226_v6 = vld [vmem:[#allocation8_spill] sm:$0xff]  ;;  %v3167_v3 = vld [vmem:[%s7151_s4 + $0x458] sm:$0xff] }
 0x180   : > { %v1081_v14 = vmul.f32 %v3156_v41, %v1056_v33  ;;  %v909_v23 = vsel %vm907_vm4, %v3855_v8, %v3879_v20  ;;  %v803_v61 = vadd.f32 %v787_v40, %v729_v42  ;;  %v804_v30 = vadd.f32 %v788_v43, %v730_v58  ;;  %v3166_v41 = vld [vmem:[%s7151_s4 + $0x450] sm:$0xff] }
 0x181   : > { %v812_v54 = vadd.f32 %v796_v32, %v738_v47  ;;  %v913_v36 = vsel %vm907_vm4, %v3879_v20, %v3855_v8  ;;  %v885_v19 = vadd.f32 %v869_v10, %v811_v56  ;;  %v983_v2 = vsel %vm981_vm6, %v3877_v18, %v3863_v11  ;;  %v3127_v8 = vld [vmem:[%s7151_s4 + $0x318] sm:$0xff]  ;;  %v551_v32 = vld [vmem:[%s7151_s4 + $0x20] sm:$0xff]  ;;  %v7227_v56 = vld [vmem:[#allocation16_spill] sm:$0xff] }
 0x182   : > { %v987_v4 = vsel %vm981_vm6, %v3863_v11, %v3877_v18  ;;  %v877_v20 = vadd.f32 %v861_v15, %v803_v61  ;;  %v4354_v38 = vadd.f32 %v4191_v60, %v4235_v28  ;;  %v4356_v7 = vmul.f32 %v3157_v31, %v1060_v25  ;;  %v3064_v60 = vld [vmem:[%s7151_s4 + $0xa0] sm:$0xff]  ;;  %v3065_v25 = vld [vmem:[%s7151_s4 + $0xa8] sm:$0xff] }
 0x183   : > { %v886_v53 = vadd.f32 %v870_v16, %v812_v54  ;;  %v943_v11 = vmul.f32 %v3134_v12, %v909_v23  ;;  %v878_v18 = vadd.f32 %v862_v34, %v804_v30  ;;  %v4358_v48 = vadd.f32 %v1089_v13, %v1031_v37  ;;  %v559_v15 = vld [vmem:[%s7151_s4 + $0x60] sm:$0xff]  ;;  %v560_v16 = vld [vmem:[%s7151_s4 + $0x68] sm:$0xff] }
 0x184   : > { %7223 = vst [vmem:[#allocation25_spill] sm:$0xff] %v4354_v38  ;;  %v4360_v1 = vadd.f32 %v1090_v55, %v1032_v50  ;;  %v935_v35 = vmul.f32 %v3126_v9, %v909_v23  ;;  %v944_v44 = vmul.f32 %v3135_v27, %v913_v36  ;;  %v1017_v52 = vmul.f32 %v3150_v17, %v983_v2  ;;  %v7225_v50 = vld [vmem:[#allocation6_spill] sm:$0xff]  ;;  %v7228_v34 = vld [vmem:[#allocation7_spill] sm:$0xff]  ;;  %v4418_v30 = vpop.permute.xlu2 %1043 }
 0x185   : > { %7224 = vst [vmem:[#allocation26_spill] sm:$0xff] %v4356_v7  ;;  %v1018_v39 = vmul.f32 %v3151_v24, %v987_v4  ;;  %v936_v42 = vmul.f32 %v3127_v8, %v913_v36  ;;  %v1009_v58 = vmul.f32 %v3142_v26, %v983_v2  ;;  %v1010_v47 = vmul.f32 %v3143_v5, %v987_v4  ;;  %v3072_v55 = vld [vmem:[%s7151_s4 + $0xe0] sm:$0xff]  ;;  %v552_v23 = vld [vmem:[%s7151_s4 + $0x28] sm:$0xff]  ;;  %v3159_v26 = vld [vmem:[%s7151_s4 + $0x418] sm:$0xff] }
 0x186   : > { %v4304_v57 = vpop.permute.xlu1 %526  ;;  %v959_v28 = vadd.f32 %v943_v11, %v885_v19  ;;  %v618_v37 = vsel %vm611_vm2, %v4005_v49, %v3883_v22  ;;  %v1057_v13 = vsel %vm1055_vm8, %v7226_v6, %v7225_v50  ;;  %v960_v40 = vadd.f32 %v944_v44, %v886_v53  ;;  %v2218_v61 = vld [vmem:[%s7154_s7] sm:$0xff]  ;;  %v3158_v19 = vld [vmem:[%s7151_s4 + $0x410] sm:$0xff]  ;;  %v3073_v24 = vld [vmem:[%s7151_s4 + $0xe8] sm:$0xff] }
 0x187   : > { %v4320_v33 = vpop.permute.xlu0 %1051  ;;  %v951_v10 = vadd.f32 %v935_v35, %v877_v20  ;;  %v614_v43 = vsel %vm611_vm2, %v3883_v22, %v4005_v49  ;;  %v541_v31 = vsel %vm538_vm1, %v7228_v34, %v7227_v56  ;;  %v545_v22 = vsel %vm538_vm1, %v7227_v56, %v7228_v34  ;;  %v3376_v2 = vld [vmem:[%s7154_s7 + $0x20] sm:$0xff]  ;;  %v2219_v35 = vld [vmem:[%s7154_s7 + $0x8] sm:$0xff]  ;;  %v3382_v7 = vld [vmem:[%s7154_s7 + $0x50] sm:$0xff] }
 0x188   : > { %v952_v9 = vadd.f32 %v936_v42, %v878_v18  ;;  %v1061_v12 = vsel %vm1055_vm8, %v7225_v50, %v7226_v6  ;;  %v1033_v27 = vadd.f32 %v1017_v52, %v959_v28  ;;  %v1034_v36 = vadd.f32 %v1018_v39, %v960_v40  ;;  %v3088_v6 = vld [vmem:[%s7151_s4 + $0x160] sm:$0xff]  ;;  %v3081_v34 = vld [vmem:[%s7151_s4 + $0x128] sm:$0xff] }
 0x189   : > { %v4425_v17 = vadd.f32 %v1081_v14, %v1023_v62  ;;  %v641_v4 = vmul.f32 %v3064_v60, %v618_v37  ;;  %v1091_v8 = vmul.f32 %v3166_v41, %v1057_v13  ;;  %v1025_v20 = vadd.f32 %v1009_v58, %v951_v10  ;;  %v3377_v62 = vld [vmem:[%s7154_s7 + $0x28] sm:$0xff]  ;;  %v7230_v40 = vld [vmem:[#allocation10_spill] sm:$0xff]  ;;  %v7231_v10 = vld [vmem:[#allocation9_spill] sm:$0xff] }
 0x18a   : > { %v1026_v53 = vadd.f32 %v1010_v47, %v952_v9  ;;  %v642_v14 = vmul.f32 %v3065_v25, %v614_v43  ;;  %v567_v5 = vmul.f32 %v551_v32, %v545_v22  ;;  %v575_v11 = vmul.f32 %v559_v15, %v545_v22  ;;  %v3080_v25 = vld [vmem:[%s7151_s4 + $0x120] sm:$0xff]  ;;  %v3089_v41 = vld [vmem:[%s7151_s4 + $0x168] sm:$0xff] }
 0x18b   : > { %7229 = vst [vmem:[#allocation6_spill] sm:$0xff] %v4425_v17  ;;  %v576_v18 = vmul.f32 %v560_v16, %v541_v31  ;;  %v568_v44 = vmul.f32 %v552_v23, %v541_v31  ;;  %v2222_v52 = vmul.f32 %v2218_v61, %v545_v22  ;;  %v1092_v39 = vmul.f32 %v3167_v3, %v1061_v12  ;;  %v7233_v15 = vld [vmem:[#allocation14_spill] sm:$0xff]  ;;  %v7234_v9 = vld [vmem:[#allocation11_spill] sm:$0xff]  ;;  %v3083_v17 = vld [vmem:[%s7151_s4 + $0x138] sm:$0xff] }
 0x18c   : > { %v1083_v42 = vmul.f32 %v3158_v19, %v1057_v13  ;;  %v649_v58 = vmul.f32 %v3072_v55, %v618_v37  ;;  %v650_v47 = vmul.f32 %v3073_v24, %v614_v43  ;;  %v2235_v60 = vmul.f32 %v3376_v2, %v618_v37  ;;  %v3380_v22 = vld [vmem:[%s7154_s7 + $0x40] sm:$0xff] }
 0x18d   : > { %v1084_v28 = vmul.f32 %v3159_v26, %v1061_v12  ;;  %v2236_v50 = vmul.f32 %v3377_v62, %v614_v43  ;;  %v688_v13 = vsel %vm685_vm3, %v4100_v29, %v7230_v40  ;;  %v692_v37 = vsel %vm685_vm3, %v7230_v40, %v4100_v29  ;;  %v7232_v43 = vld [vmem:[#allocation12_spill] sm:$0xff]  ;;  %v7235_v29 = vld [vmem:[#allocation13_spill] sm:$0xff] }
 0x18e   : > { %v4406_v49 = vpop.permute.xlu1 %534  ;;  %v4459_v3 = vadd.f32 %v1091_v8, %v1033_v27  ;;  %v583_v55 = vadd.f32 %v567_v5, %v7231_v10  ;;  %v591_v32 = vadd.f32 %v575_v11, %v7232_v43  ;;  %v592_v16 = vadd.f32 %v576_v18, %v7233_v15  ;;  %v7238_v62 = vld [vmem:[#allocation24_spill] sm:$0xff]  ;;  %v3121_v10 = vld [vmem:[%s7151_s4 + $0x2e8] sm:$0xff] }
 0x18f   : > { %v4420_v54 = vpop.permute.xlu0 %609  ;;  %v2223_v56 = vmul.f32 %v2219_v35, %v541_v31  ;;  %v584_v12 = vadd.f32 %v568_v44, %v7234_v9  ;;  %v2226_v23 = vadd.f32 %v2222_v52, %v7235_v29  ;;  %v4474_v27 = vadd.f32 %v1092_v39, %v1034_v36  ;;  %v3097_v35 = vld [vmem:[%s7151_s4 + $0x1a8] sm:$0xff]  ;;  %v3104_v44 = vld [vmem:[%s7151_s4 + $0x1e0] sm:$0xff] }
 0x190   : > { %v4476_v19 = vadd.f32 %v1083_v42, %v1025_v20  ;;  %v715_v24 = vmul.f32 %v3080_v25, %v692_v37  ;;  %v723_v31 = vmul.f32 %v3088_v6, %v692_v37  ;;  %v724_v2 = vmul.f32 %v3089_v41, %v688_v13  ;;  %v3381_v20 = vld [vmem:[%s7154_s7 + $0x48] sm:$0xff]  ;;  %v4503_v25 = vpop.permute.xlu2 %601 }
 0x191   : > { %v4480_v26 = vadd.f32 %v1084_v28, %v1026_v53  ;;  %v762_v5 = vsel %vm759_vm5, %v7238_v62, %v4220_v46  ;;  %v766_v36 = vsel %vm759_vm5, %v4220_v46, %v7238_v62  ;;  %v716_v11 = vmul.f32 %v3081_v34, %v688_v13  ;;  %v3096_v53 = vld [vmem:[%s7151_s4 + $0x1a0] sm:$0xff]  ;;  %v7239_v52 = vld [vmem:[#allocation15_spill] sm:$0xff] }
 0x192   : > { %7236 = vst [vmem:[#allocation8_spill] sm:$0xff] %v4476_v19  ;;  %v2248_v18 = vmul.f32 %v3380_v22, %v692_v37  ;;  %v2227_v46 = vadd.f32 %v2223_v56, %v7239_v52  ;;  %v657_v39 = vadd.f32 %v641_v4, %v583_v55  ;;  %v665_v42 = vadd.f32 %v649_v58, %v591_v32  ;;  %v3105_v6 = vld [vmem:[%s7151_s4 + $0x1e8] sm:$0xff]  ;;  %v3120_v37 = vld [vmem:[%s7151_s4 + $0x2e0] sm:$0xff] }
 0x193   : > { %7237 = vst [vmem:[#allocation16_spill] sm:$0xff] %v4480_v26  ;;  %v666_v28 = vadd.f32 %v650_v47, %v592_v16  ;;  %v658_v41 = vadd.f32 %v642_v14, %v584_v12  ;;  %v2239_v40 = vadd.f32 %v2235_v60, %v2226_v23  ;;  %v7240_v43 = vld [vmem:[#allocation23_spill] sm:$0xff]  ;;  %v3384_v14 = vld [vmem:[%s7154_s7 + $0x60] sm:$0xff]  ;;  %v2249_v15 = vmul.f32 %v3381_v20, %v688_v13 }
 0x194   : > { %v836_v4 = vsel %vm833_vm7, %v4184_v45, %v7240_v43  ;;  %v4522_v58 = vsel %vm833_vm7, %v7240_v43, %v4184_v45  ;;  %v3385_v47 = vld [vmem:[%s7154_s7 + $0x68] sm:$0xff]  ;;  %v731_v60 = vadd.f32 %v715_v24, %v657_v39  ;;  %v739_v55 = vadd.f32 %v723_v31, %v665_v42  ;;  %v3112_v16 = vld [vmem:[%s7151_s4 + $0x2a0] sm:$0xff] }
 0x195   : > { %v740_v32 = vadd.f32 %v724_v2, %v666_v28  ;;  %v789_v56 = vmul.f32 %v3096_v53, %v766_v36  ;;  %v797_v34 = vmul.f32 %v3104_v44, %v766_v36  ;;  %v732_v45 = vadd.f32 %v716_v11, %v658_v41  ;;  %v3113_v13 = vld [vmem:[%s7151_s4 + $0x2a8] sm:$0xff]  ;;  %v3128_v20 = vld [vmem:[%s7151_s4 + $0x320] sm:$0xff] }
 0x196   : > { %v4472_v61 = vpop.permute.xlu1 %675  ;;  %v2252_v22 = vadd.f32 %v2248_v18, %v2239_v40  ;;  %v798_v9 = vmul.f32 %v3105_v6, %v762_v5  ;;  %v2240_v12 = vadd.f32 %v2236_v50, %v2227_v46  ;;  %v871_v29 = vmul.f32 %v3120_v37, %v836_v4  ;;  %v3152_v46 = vld [vmem:[%s7151_s4 + $0x3e0] sm:$0xff]  ;;  %v3137_v28 = vld [vmem:[%s7151_s4 + $0x368] sm:$0xff] }
 0x197   : > { %v4478_v8 = vpop.permute.xlu0 %749  ;;  %v872_v23 = vmul.f32 %v3121_v10, %v4522_v58  ;;  %v790_v62 = vmul.f32 %v3097_v35, %v762_v5  ;;  %v2261_v52 = vmul.f32 %v3384_v14, %v766_v36  ;;  %v2262_v43 = vmul.f32 %v3385_v47, %v762_v5  ;;  %v3129_v5 = vld [vmem:[%s7151_s4 + $0x328] sm:$0xff]  ;;  %v3136_v36 = vld [vmem:[%s7151_s4 + $0x360] sm:$0xff] }
 0x198   : > { %v863_v24 = vmul.f32 %v3112_v16, %v836_v4  ;;  %v2253_v2 = vadd.f32 %v2249_v15, %v2240_v12  ;;  %v813_v50 = vadd.f32 %v797_v34, %v739_v55  ;;  %v814_v18 = vadd.f32 %v798_v9, %v740_v32  ;;  %v3392_v6 = vld [vmem:[%s7154_s7 + $0xc0] sm:$0xff]  ;;  %v3389_v16 = vld [vmem:[%s7154_s7 + $0xa8] sm:$0xff] }
 0x199   : > { %v805_v53 = vadd.f32 %v789_v56, %v731_v60  ;;  %v910_v35 = vsel %vm907_vm4, %v4165_v59, %v4302_v51  ;;  %v4558_v44 = vsel %vm981_vm6, %v4247_v0, %v4244_v63  ;;  %v806_v39 = vadd.f32 %v790_v62, %v732_v45  ;;  %v3388_v40 = vld [vmem:[%s7154_s7 + $0xa0] sm:$0xff]  ;;  %v561_v60 = vld [vmem:[%s7151_s4 + $0x70] sm:$0xff]  ;;  %v684_v56 = vpop.permute.xlu2 %683 }
 0x19a   : > { %v4563_v42 = vadd.f32 %v2261_v52, %v2252_v22  ;;  %v4575_v41 = vsel %vm907_vm4, %v4302_v51, %v4165_v59  ;;  %v864_v37 = vmul.f32 %v3113_v13, %v4522_v58  ;;  %v887_v10 = vadd.f32 %v871_v29, %v813_v50  ;;  %v562_v59 = vld [vmem:[%s7151_s4 + $0x78] sm:$0xff]  ;;  %v3144_v12 = vld [vmem:[%s7151_s4 + $0x3a0] sm:$0xff]  ;;  %v3145_v29 = vld [vmem:[%s7151_s4 + $0x3a8] sm:$0xff] }
 0x19b   : > { %v888_v14 = vadd.f32 %v872_v23, %v814_v18  ;;  %v4585_v47 = vsel %vm981_vm6, %v4244_v63, %v4247_v0  ;;  %v4597_v51 = vsel %vm538_vm1, %v4304_v57, %v4406_v49  ;;  %v546_v63 = vsel %vm538_vm1, %v4406_v49, %v4304_v57  ;;  %v3153_v0 = vld [vmem:[%s7151_s4 + $0x3e8] sm:$0xff]  ;;  %v553_v18 = vld [vmem:[%s7151_s4 + $0x30] sm:$0xff] }
 0x19c   : > { %v879_v55 = vadd.f32 %v863_v24, %v805_v53  ;;  %v937_v32 = vmul.f32 %v3128_v20, %v910_v35  ;;  %v945_v15 = vmul.f32 %v3136_v36, %v910_v35  ;;  %v1019_v34 = vmul.f32 %v3152_v46, %v4558_v44  ;;  %v3168_v36 = vld [vmem:[%s7151_s4 + $0x460] sm:$0xff] }
 0x19d   : > { %v4610_v45 = vadd.f32 %v2262_v43, %v2253_v2  ;;  %v4613_v22 = vmul.f32 %v3129_v5, %v4575_v41  ;;  %v946_v57 = vmul.f32 %v3137_v28, %v4575_v41  ;;  %v4616_v49 = vmul.f32 %v3392_v6, %v910_v35 }
 0x19e   : > { %v4537_v31 = vpop.permute.xlu1 %757  ;;  %v4618_v9 = vmul.f32 %v3388_v40, %v836_v4  ;;  %v577_v23 = vmul.f32 %v561_v60, %v546_v63  ;;  %v578_v62 = vmul.f32 %v562_v59, %v4597_v51  ;;  %v961_v52 = vadd.f32 %v945_v15, %v887_v10  ;;  %v3090_v40 = vld [vmem:[%s7151_s4 + $0x170] sm:$0xff]  ;;  %v7242_v59 = vld [vmem:[#allocation19_spill] sm:$0xff] }
 0x19f   : > { %v4542_v11 = vpop.permute.xlu0 %823  ;;  %7241 = vst [vmem:[#allocation7_spill] sm:$0xff] %v4616_v49  ;;  %v1020_v43 = vmul.f32 %v3153_v0, %v4585_v47  ;;  %v4629_v13 = vmul.f32 %v3389_v16, %v4522_v58  ;;  %v962_v4 = vadd.f32 %v946_v57, %v888_v14  ;;  %v4631_v2 = vadd.f32 %v937_v32, %v879_v55  ;;  %v3074_v58 = vld [vmem:[%s7151_s4 + $0xf0] sm:$0xff]  ;;  %v2221_v57 = vld [vmem:[%s7154_s7 + $0x18] sm:$0xff] }
 0x1a0   : > { %v4633_v20 = vadd.f32 %v864_v37, %v806_v39  ;;  %v4639_v50 = vsel %vm1055_vm8, %v4418_v30, %v4320_v33  ;;  %v1035_v5 = vadd.f32 %v1019_v34, %v961_v52  ;;  %v4653_v35 = vmul.f32 %v3144_v12, %v4558_v44  ;;  %v3075_v39 = vld [vmem:[%s7151_s4 + $0xf8] sm:$0xff]  ;;  %v2220_v60 = vld [vmem:[%s7154_s7 + $0x10] sm:$0xff]  ;;  %v3169_v52 = vld [vmem:[%s7151_s4 + $0x468] sm:$0xff] }
 0x1a1   : > { %v4656_v46 = vmul.f32 %v3145_v29, %v4585_v47  ;;  %v4665_v28 = vsel %vm611_vm2, %v4503_v25, %v4420_v54  ;;  %v4671_v6 = vsel %vm611_vm2, %v4420_v54, %v4503_v25  ;;  %v3091_v37 = vld [vmem:[%s7151_s4 + $0x178] sm:$0xff]  ;;  %v4682_v10 = vsel %vm685_vm3, %v4472_v61, %v684_v56  ;;  %v7243_v55 = vld [vmem:[#allocation20_spill] sm:$0xff] }
 0x1a2   : > { %v4687_v14 = vsel %vm685_vm3, %v684_v56, %v4472_v61  ;;  %v4693_v54 = vsel %vm1055_vm8, %v4320_v33, %v4418_v30  ;;  %v554_v25 = vld [vmem:[%s7151_s4 + $0x38] sm:$0xff]  ;;  %v593_v0 = vadd.f32 %v577_v23, %v7242_v59  ;;  %v594_v32 = vadd.f32 %v578_v62, %v7243_v55  ;;  %v3106_v33 = vld [vmem:[%s7151_s4 + $0x1f0] sm:$0xff] }
 0x1a3   : > { %v4703_v61 = vadd.f32 %v1020_v43, %v962_v4  ;;  %v569_v15 = vmul.f32 %v553_v18, %v546_v63  ;;  %v3107_v30 = vld [vmem:[%s7151_s4 + $0x1f8] sm:$0xff]  ;;  %v4715_v16 = vsel %vm759_vm5, %v4478_v8, %v4537_v31  ;;  %v4721_v56 = vsel %vm759_vm5, %v4537_v31, %v4478_v8  ;;  %v3122_v43 = vld [vmem:[%s7151_s4 + $0x2f0] sm:$0xff] }
 0x1a4   : > { %v1093_v34 = vmul.f32 %v3168_v36, %v4639_v50  ;;  %v651_v12 = vmul.f32 %v3074_v58, %v4671_v6  ;;  %v652_v29 = vmul.f32 %v3075_v39, %v4665_v28  ;;  %v725_v23 = vmul.f32 %v3090_v40, %v4687_v14  ;;  %v3123_v4 = vld [vmem:[%s7151_s4 + $0x2f8] sm:$0xff]  ;;  %v898_v36 = vpop.permute.xlu2 %897 }
 0x1a5   : > { %v726_v62 = vmul.f32 %v3091_v37, %v4682_v10  ;;  %v570_v8 = vmul.f32 %v554_v25, %v4597_v51  ;;  %v2224_v31 = vmul.f32 %v2220_v60, %v546_v63  ;;  %v3066_v63 = vld [vmem:[%s7151_s4 + $0xb0] sm:$0xff]  ;;  %v3067_v39 = vld [vmem:[%s7151_s4 + $0xb8] sm:$0xff]  ;;  %v799_v25 = vmul.f32 %v3106_v33, %v4721_v56 }
 0x1a6   : > { %v832_v24 = vpop.permute.xlu1 %831  ;;  %v667_v40 = vadd.f32 %v651_v12, %v593_v0  ;;  %v668_v37 = vadd.f32 %v652_v29, %v594_v32  ;;  %v800_v60 = vmul.f32 %v3107_v30, %v4715_v16  ;;  %v7244_v59 = vld [vmem:[#allocation17_spill] sm:$0xff]  ;;  %v4767_v26 = vadd.f32 %v1093_v34, %v1035_v5  ;;  %v7245_v12 = vld [vmem:[#allocation18_spill] sm:$0xff]  ;;  %v3378_v5 = vld [vmem:[%s7154_s7 + $0x30] sm:$0xff] }
 0x1a7   : > { %v4647_v53 = vpop.permute.xlu0 %905  ;;  %v4744_v18 = vsel %vm833_vm7, %v4542_v11, %v832_v24  ;;  %v4749_v58 = vsel %vm833_vm7, %v832_v24, %v4542_v11  ;;  %v585_v55 = vadd.f32 %v569_v15, %v7244_v59  ;;  %v2225_v11 = vmul.f32 %v2221_v57, %v4597_v51  ;;  %v3082_v24 = vld [vmem:[%s7151_s4 + $0x130] sm:$0xff]  ;;  %v7246_v59 = vld [vmem:[#allocation21_spill] sm:$0xff] }
 0x1a8   : > { %v4770_v0 = vmul.f32 %v3169_v52, %v4693_v54  ;;  %v741_v32 = vadd.f32 %v725_v23, %v667_v40  ;;  %v742_v33 = vadd.f32 %v726_v62, %v668_v37  ;;  %v873_v30 = vmul.f32 %v3122_v43, %v4744_v18  ;;  %v3098_v43 = vld [vmem:[%s7151_s4 + $0x1b0] sm:$0xff] }
 0x1a9   : > { %v874_v15 = vmul.f32 %v3123_v4, %v4749_v58  ;;  %v586_v29 = vadd.f32 %v570_v8, %v7245_v12  ;;  %v2228_v19 = vadd.f32 %v2224_v31, %v7246_v59  ;;  %v643_v34 = vmul.f32 %v3066_v63, %v4671_v6  ;;  %v3099_v8 = vld [vmem:[%s7151_s4 + $0x1b8] sm:$0xff]  ;;  %v3138_v63 = vld [vmem:[%s7151_s4 + $0x370] sm:$0xff] }
 0x1aa   : > { %v644_v52 = vmul.f32 %v3067_v39, %v4665_v28  ;;  %v717_v23 = vmul.f32 %v3082_v24, %v4687_v14  ;;  %v718_v62 = vmul.f32 %v3083_v17, %v4682_v10  ;;  %v815_v31 = vadd.f32 %v799_v25, %v741_v32  ;;  %v3139_v39 = vld [vmem:[%s7151_s4 + $0x378] sm:$0xff]  ;;  %v7247_v32 = vld [vmem:[#allocation22_spill] sm:$0xff] }
 0x1ab   : > { %v816_v4 = vadd.f32 %v800_v60, %v742_v33  ;;  %v4798_v17 = vsel %vm907_vm4, %v898_v36, %v4647_v53  ;;  %v4803_v40 = vsel %vm907_vm4, %v4647_v53, %v898_v36  ;;  %v3154_v60 = vld [vmem:[%s7151_s4 + $0x3f0] sm:$0xff]  ;;  %v3155_v24 = vld [vmem:[%s7151_s4 + $0x3f8] sm:$0xff]  ;;  %v2229_v33 = vadd.f32 %v2225_v11, %v7247_v32 }
 0x1ac   : > { %v3379_v53 = vld [vmem:[%s7154_s7 + $0x38] sm:$0xff]  ;;  %v2237_v36 = vmul.f32 %v3378_v5, %v4671_v6  ;;  %v659_v59 = vadd.f32 %v643_v34, %v585_v55  ;;  %v660_v49 = vadd.f32 %v644_v52, %v586_v29  ;;  %v791_v11 = vmul.f32 %v3098_v43, %v4721_v56  ;;  %v3170_v43 = vld [vmem:[%s7151_s4 + $0x470] sm:$0xff] }
 0x1ad   : > { %v890_v12 = vadd.f32 %v874_v15, %v816_v4  ;;  %v792_v32 = vmul.f32 %v3099_v8, %v4715_v16  ;;  %v3115_v6 = vld [vmem:[%s7151_s4 + $0x2b8] sm:$0xff]  ;;  %v947_v5 = vmul.f32 %v3138_v63, %v4798_v17  ;;  %v948_v38 = vmul.f32 %v3139_v39, %v4803_v40  ;;  %v1046_v63 = vpop.permute.xlu2 %1045 }
 0x1ae   : > { %v980_v51 = vpop.permute.xlu1 %979  ;;  %v2238_v15 = vmul.f32 %v3379_v53, %v4665_v28  ;;  %v733_v29 = vadd.f32 %v717_v23, %v659_v59  ;;  %v734_v34 = vadd.f32 %v718_v62, %v660_v49  ;;  %v3171_v8 = vld [vmem:[%s7151_s4 + $0x478] sm:$0xff]  ;;  %v2250_v4 = vmul.f32 %v3382_v7, %v4687_v14  ;;  %v3386_v7 = vld [vmem:[%s7154_s7 + $0x70] sm:$0xff] }
 0x1af   : > { %v972_v57 = vpop.permute.xlu0 %971  ;;  %v866_v28 = vmul.f32 %v3115_v6, %v4749_v58  ;;  %v964_v62 = vadd.f32 %v948_v38, %v890_v12  ;;  %v3387_v14 = vld [vmem:[%s7154_s7 + $0x78] sm:$0xff]  ;;  %v3130_v38 = vld [vmem:[%s7151_s4 + $0x330] sm:$0xff] }
 0x1b0   : > { %v4807_v37 = vsel %vm981_vm6, %v972_v57, %v980_v51  ;;  %v4811_v25 = vsel %vm981_vm6, %v980_v51, %v972_v57  ;;  %v3114_v51 = vld [vmem:[%s7151_s4 + $0x2b0] sm:$0xff]  ;;  %v889_v57 = vadd.f32 %v873_v30, %v815_v31  ;;  %v3383_v31 = vld [vmem:[%s7154_s7 + $0x58] sm:$0xff]  ;;  %v807_v39 = vadd.f32 %v791_v11, %v733_v29 }
 0x1b1   : > { %v1021_v30 = vmul.f32 %v3154_v60, %v4807_v37  ;;  %v1022_v55 = vmul.f32 %v3155_v24, %v4811_v25  ;;  %v865_v52 = vmul.f32 %v3114_v51, %v4744_v18  ;;  %v808_v60 = vadd.f32 %v792_v32, %v734_v34  ;;  %v3131_v6 = vld [vmem:[%s7151_s4 + $0x338] sm:$0xff] }
 0x1b2   : > { %v963_v23 = vadd.f32 %v947_v5, %v889_v57  ;;  %v2241_v11 = vadd.f32 %v2237_v36, %v2228_v19  ;;  %v2251_v32 = vmul.f32 %v3383_v31, %v4682_v10  ;;  %v1110_v5 = vadd.f32 %v4770_v0, %v4703_v61  ;;  %v3390_v19 = vld [vmem:[%s7154_s7 + $0xb0] sm:$0xff]  ;;  %v3391_v10 = vld [vmem:[%s7154_s7 + $0xb8] sm:$0xff] }
 0x1b3   : > { %v1038_v12 = vadd.f32 %v1022_v55, %v964_v62  ;;  %v881_v29 = vadd.f32 %v865_v52, %v807_v39  ;;  %v3147_v55 = vld [vmem:[%s7151_s4 + $0x3b8] sm:$0xff]  ;;  %v2242_v34 = vadd.f32 %v2238_v15, %v2229_v33  ;;  %v882_v0 = vadd.f32 %v866_v28, %v808_v60  ;;  %v3162_v33 = vld [vmem:[%s7151_s4 + $0x430] sm:$0xff]  ;;  %v3161_v28 = vld [vmem:[%s7151_s4 + $0x428] sm:$0xff] }
 0x1b4   : > { %v1037_v51 = vadd.f32 %v1021_v30, %v963_v23  ;;  %v3146_v30 = vld [vmem:[%s7151_s4 + $0x3b0] sm:$0xff]  ;;  %v2254_v52 = vadd.f32 %v2250_v4, %v2241_v11  ;;  %v939_v31 = vmul.f32 %v3130_v38, %v4798_v17  ;;  %v3163_v15 = vld [vmem:[%s7151_s4 + $0x438] sm:$0xff]  ;;  %v2276_v23 = vmul.f32 %v3390_v19, %v4744_v18 }
 0x1b5   : > { %v1013_v4 = vmul.f32 %v3146_v30, %v4807_v37  ;;  %v2277_v62 = vmul.f32 %v3391_v10, %v4749_v58  ;;  %v3394_v58 = vld [vmem:[%s7154_s7 + $0xd0] sm:$0xff]  ;;  %v3395_v11 = vld [vmem:[%s7154_s7 + $0xd8] sm:$0xff]  ;;  %v3397_v30 = vld [vmem:[%s7154_s7 + $0xe8] sm:$0xff] }
 0x1b6   : > { %v955_v39 = vadd.f32 %v939_v31, %v881_v29  ;;  %v3396_v29 = vld [vmem:[%s7154_s7 + $0xe0] sm:$0xff]  ;;  %v2290_v19 = vmul.f32 %v3395_v11, %v4803_v40  ;;  %v1118_v11 = vld [vmem:[%s7152_s5 + $0x28] sm:$0xff] }
 0x1b7   : > { %v1054_v49 = vpop.permute.xlu0 %1053 }
 0x1b8   : > { %v4854_v24 = vsel %vm1055_vm8, %v1046_v63, %v1054_v49  ;;  %v4858_v53 = vsel %vm1055_vm8, %v1054_v49, %v1046_v63  ;;  %v940_v63 = vmul.f32 %v3131_v6, %v4803_v40  ;;  %v2255_v49 = vadd.f32 %v2251_v32, %v2242_v34  ;;  %v3398_v6 = vld [vmem:[%s7154_s7 + $0xf0] sm:$0xff] }
 0x1b9   : > { %v1095_v57 = vmul.f32 %v3170_v43, %v4854_v24  ;;  %v1096_v59 = vmul.f32 %v3171_v8, %v4858_v53  ;;  %v2263_v43 = vmul.f32 %v3386_v7, %v4721_v56  ;;  %v2264_v8 = vmul.f32 %v3387_v14, %v4715_v16  ;;  %v3160_v16 = vld [vmem:[%s7151_s4 + $0x420] sm:$0xff] }
 0x1ba   : > { %v1014_v56 = vmul.f32 %v3147_v55, %v4811_v25  ;;  %v1087_v60 = vmul.f32 %v3162_v33, %v4854_v24  ;;  %v956_v7 = vadd.f32 %v940_v63, %v882_v0  ;;  %v1088_v14 = vmul.f32 %v3163_v15, %v4858_v53  ;;  %v7252_v63 = vld [vmem:[#allocation16_spill] sm:$0xff] }
 0x1bb   : > { %v1111_v36 = vadd.f32 %v1095_v57, %v1037_v51  ;;  %v1112_v61 = vadd.f32 %v1096_v59, %v1038_v12  ;;  %v2267_v38 = vadd.f32 %v2263_v43, %v2254_v52  ;;  %v1085_v51 = vmul.f32 %v3160_v16, %v4639_v50 }
 0x1bc   : > { %v954_v57 = vadd.f32 %v4613_v22, %v4633_v20  ;;  %v1086_v12 = vmul.f32 %v3161_v28, %v4693_v54  ;;  %v2268_v18 = vadd.f32 %v2264_v8, %v2255_v49  ;;  %v1030_v59 = vadd.f32 %v1014_v56, %v956_v7  ;;  %v7249_v8 = vld [vmem:[#allocation26_spill] sm:$0xff]  ;;  %v1116_v7 = vld [vmem:[%s7152_s5 + $0x18] sm:$0xff] }
 0x1bd   : > { %1170 = vmatpush.msra.mxu2 %v1111_v36  ;;  %1211 = vmatpush.msra.mxu3 %v1112_v61  ;;  %v1027_v22 = vadd.f32 %v4653_v35, %v4631_v2  ;;  %v2280_v32 = vadd.f32 %v2276_v23, %v2267_v38  ;;  %v2279_v34 = vadd.f32 %v4629_v13, %v4610_v45  ;;  %v3400_v36 = vld [vmem:[%s7154_s7 + $0x100] sm:$0xff]  ;;  %v3401_v45 = vld [vmem:[%s7154_s7 + $0x108] sm:$0xff] }
 0x1be   : > { %v1028_v20 = vadd.f32 %v4656_v46, %v954_v57  ;;  %v1104_v35 = vadd.f32 %v1088_v14, %v1030_v59  ;;  %v2281_v46 = vadd.f32 %v2277_v62, %v2268_v18  ;;  %v2302_v10 = vmul.f32 %v3398_v6, %v4807_v37  ;;  %v7253_v28 = vld [vmem:[#allocation6_spill] sm:$0xff] }
 0x1bf   : > { %1171 = vmatpush.msra.mxu2 %v4767_v26  ;;  %1212 = vmatpush.msra.mxu3 %v1110_v5  ;;  %v1029_v26 = vadd.f32 %v1013_v4, %v955_v39  ;;  %v3393_v5 = vld [vmem:[%s7154_s7 + $0xc8] sm:$0xff]  ;;  %v2300_v52 = vmul.f32 %v3396_v29, %v4558_v44  ;;  %v2301_v43 = vmul.f32 %v3397_v30, %v4585_v47  ;;  %v7251_v47 = vld [vmem:[#allocation8_spill] sm:$0xff]  ;;  %v1113_v4 = vld [vmem:[%s7152_s5] sm:$0xff] }
 0x1c0   : > { %v1102_v55 = vadd.f32 %v1086_v12, %v1028_v20  ;;  %v2288_v61 = vmul.f32 %v3393_v5, %v4575_v41  ;;  %v2294_v40 = vadd.f32 %v2290_v19, %v2281_v46  ;;  %v7250_v41 = vld [vmem:[#allocation7_spill] sm:$0xff]  ;;  %v2313_v44 = vmul.f32 %v3400_v36, %v4639_v50  ;;  %v1117_v14 = vld [vmem:[%s7152_s5 + $0x20] sm:$0xff]  ;;  %v1127_v19 = vld [vmem:[%s7153_s6 + $0x30] sm:$0xff] }
 0x1c1   : > { %1172 = vmatpush.msra.mxu2 %v4459_v3  ;;  %1213 = vmatpush.msra.mxu3 %v4474_v27  ;;  %v3399_v3 = vld [vmem:[%s7154_s7 + $0xf8] sm:$0xff]  ;;  %v2278_v27 = vadd.f32 %v4618_v9, %v4563_v42  ;;  %v1103_v2 = vadd.f32 %v1087_v60, %v1029_v26  ;;  %v2289_v42 = vmul.f32 %v3394_v58, %v4798_v17  ;;  %v1115_v60 = vld [vmem:[%s7152_s5 + $0x10] sm:$0xff]  ;;  %v1121_v38 = vld [vmem:[%s7153_s6] sm:$0xff] }
 0x1c2   : > { %v1101_v9 = vadd.f32 %v1085_v51, %v1027_v22  ;;  %v2303_v17 = vmul.f32 %v3399_v3, %v4811_v25  ;;  %v7248_v25 = vld [vmem:[#allocation25_spill] sm:$0xff]  ;;  %v2292_v15 = vadd.f32 %v2288_v61, %v2279_v34  ;;  %v1122_v51 = vld [vmem:[%s7153_s6 + $0x8] sm:$0xff]  ;;  %v1123_v22 = vld [vmem:[%s7153_s6 + $0x10] sm:$0xff] }
 0x1c3   : > { %1173 = vmatpush.msra.mxu2 %v4358_v48  ;;  %1214 = vmatpush.msra.mxu3 %v4360_v1  ;;  %v3402_v48 = vld [vmem:[%s7154_s7 + $0x110] sm:$0xff]  ;;  %v3403_v1 = vld [vmem:[%s7154_s7 + $0x118] sm:$0xff]  ;;  %v2293_v0 = vadd.f32 %v2289_v42, %v2280_v32  ;;  %v1098_v31 = vadd.f32 %v7249_v8, %v7248_v25  ;;  %v2291_v33 = vadd.f32 %v7250_v41, %v2278_v27  ;;  %v1125_v46 = vld [vmem:[%s7153_s6 + $0x20] sm:$0xff] }
 0x1c4   : > { %v2315_v13 = vmul.f32 %v3402_v48, %v4854_v24  ;;  %v2316_v37 = vmul.f32 %v3403_v1, %v4858_v53  ;;  %v2307_v56 = vadd.f32 %v2303_v17, %v2294_v40  ;;  %v2314_v53 = vmul.f32 %v3401_v45, %v4693_v54  ;;  %v1114_v54 = vld [vmem:[%s7152_s5 + $0x8] sm:$0xff]  ;;  %v1124_v3 = vld [vmem:[%s7153_s6 + $0x18] sm:$0xff] }
 0x1c5   : > { %1174 = vmatpush.msra.mxu2 %v1103_v2  ;;  %1215 = vmatpush.msra.mxu3 %v1104_v35  ;;  %v2306_v24 = vadd.f32 %v2302_v10, %v2293_v0  ;;  %v2304_v16 = vadd.f32 %v2300_v52, %v2291_v33  ;;  %v2305_v23 = vadd.f32 %v2301_v43, %v2292_v15  ;;  %v1119_v35 = vld [vmem:[%s7152_s5 + $0x30] sm:$0xff]  ;;  %v1126_v30 = vld [vmem:[%s7153_s6 + $0x28] sm:$0xff]  ;;  %v1128_v17 = vld [vmem:[%s7153_s6 + $0x38] sm:$0xff] }
 0x1c6   : > { %v2320_v50 = vadd.f32 %v2316_v37, %v2307_v56  ;;  %v1120_v61 = vld [vmem:[%s7152_s5 + $0x38] sm:$0xff] }
 0x1c7   : > { %1175 = vmatpush.msra.mxu2 %v1101_v9  ;;  %1216 = vmatpush.msra.mxu3 %v1102_v55  ;;  %v2319_v49 = vadd.f32 %v2315_v13, %v2306_v24  ;;  %v2317_v62 = vadd.f32 %v2313_v44, %v2304_v16  ;;  %v2318_v39 = vadd.f32 %v2314_v53, %v2305_v23  ;;  %v1129_v44 = vld [vmem:[%s7153_s6 + $0x40] sm:$0xff]  ;;  %v1130_v53 = vld [vmem:[%s7153_s6 + $0x48] sm:$0xff] }
 0x1c9   : > { %1176 = vmatpush.msra.mxu2 %v7251_v47  ;;  %1217 = vmatpush.msra.mxu3 %v7252_v63 }
 0x1cb   : > { %1177 = vmatpush.msra.mxu2 %v7253_v28  ;;  %1218 = vmatpush.msra.mxu3 %v1098_v31 }
 0x1cc   : > { %3172 = vmatmul.msk.f32.vlgmr.msra.gmra.mxu2 %vm1137_vm9, %v1113_v4  ;;  %3180 = vmatmul.msk.f32.vlgmr.msra.gmra.mxu3 %vm1137_vm9, %v1113_v4 }
 0x1cd   : > { %2348 = vmatpush.msrb.mxu2 %v2319_v49  ;;  %2371 = vmatpush.msrb.mxu3 %v2320_v50 }
 0x1cf   : > { %2349 = vmatpush.msrb.mxu2 %v2317_v62  ;;  %2372 = vmatpush.msrb.mxu3 %v2318_v39 }
 0x1d4   : > { %3173 = vmatmul.msk.f32.gmra.mxu2 %vm1137_vm9, %v1114_v54  ;;  %3181 = vmatmul.msk.f32.gmra.mxu3 %vm1137_vm9, %v1114_v54 }
 0x1dc   : > { %3174 = vmatmul.msk.f32.gmra.mxu2 %vm1137_vm9, %v1115_v60  ;;  %3182 = vmatmul.msk.f32.gmra.mxu3 %vm1137_vm9, %v1115_v60 }
 0x1e4   : > { %3175 = vmatmul.msk.f32.gmra.mxu2 %vm1137_vm9, %v1116_v7  ;;  %3183 = vmatmul.msk.f32.gmra.mxu3 %vm1137_vm9, %v1116_v7 }
 0x1ec   : > { %3176 = vmatmul.msk.f32.gmra.mxu2 %vm1137_vm9, %v1117_v14  ;;  %3184 = vmatmul.msk.f32.gmra.mxu3 %vm1137_vm9, %v1117_v14 }
 0x1f4   : > { %3177 = vmatmul.msk.f32.gmra.mxu2 %vm1137_vm9, %v1118_v11  ;;  %3185 = vmatmul.msk.f32.gmra.mxu3 %vm1137_vm9, %v1118_v11 }
 0x1fc   : > { %3186 = vmatmul.msk.f32.gmra.mxu3 %vm1137_vm9, %v1119_v35  ;;  %3178 = vmatmul.msk.f32.gmra.mxu2 %vm1137_vm9, %v1119_v35 }
 0x204   : > { %3179 = vmatmul.msk.f32.gmra.mxu2 %vm1137_vm9, %v1120_v61  ;;  %3187 = vmatmul.msk.f32.gmra.mxu3 %vm1137_vm9, %v1120_v61 }
 0x24f   : > { %v1179_v57 = vpop.f32.mrf.mxu2  ;;  %v1220_v12 = vpop.f32.mrf.mxu3 }
 0x250   : > { %v1180_v18 = vadd.f32 %v1179_v57, %v1121_v38  ;;  %v1221_v58 = vadd.f32 %v1220_v12, %v1122_v51 }
 0x252   : > { %v5008_v26 = vmax.f32 %v1180_v18, 0.0  ;;  %v5010_v59 = vmax.f32 %v1221_v58, 0.0  ;;  %v2321_v18 = vld [vmem:[%s7155_s8] sm:$0xff] }
 0x253   : > { %3406 = vmatmul.msk.f32.vlgmr.msrb.gmra.mxu3 %vm2327_vm10, %v2321_v18  ;;  %3404 = vmatmul.msk.f32.vlgmr.msrb.gmra.mxu2 %vm2327_vm10, %v2321_v18 }
 0x254   : > { %1309 = vrot.lane.b32.xlu0 %v5010_v59, %s3537_s16  ;;  %1390 = vrot.lane.b32.xlu2 %v5008_v26, %s3540_s19 }
 0x255   : > { %1293 = vrot.lane.b32.xlu1 %v5008_v26, %s3537_s16 }
 0x257   : > { %v1182_v20 = vpop.f32.mrf.mxu2  ;;  %v1223_v27 = vpop.f32.mrf.mxu3 }
 0x258   : > { %v1183_v32 = vadd.f32 %v1182_v20, %v1123_v22  ;;  %v1224_v5 = vadd.f32 %v1223_v27, %v1124_v3  ;;  %v1131_v20 = vld [vmem:[%s7153_s6 + $0x50] sm:$0xff]  ;;  %v2322_v3 = vld [vmem:[%s7155_s8 + $0x8] sm:$0xff] }
 0x25a   : > { %v5038_v6 = vmax.f32 %v1183_v32, 0.0  ;;  %v5049_v2 = vmax.f32 %v1224_v5, 0.0 }
 0x25b   : > { %3407 = vmatmul.msk.f32.gmra.mxu3 %vm2327_vm10, %v2322_v3  ;;  %3405 = vmatmul.msk.f32.gmra.mxu2 %vm2327_vm10, %v2322_v3 }
 0x25c   : > { %1487 = vrot.lane.b32.xlu0 %v5008_v26, %s3538_s17  ;;  %1503 = vrot.lane.b32.xlu2 %v5010_v59, %s3538_s17 }
 0x25d   : > { %1406 = vrot.lane.b32.xlu1 %v5010_v59, %s3540_s19 }
 0x25f   : > { %v1185_v29 = vpop.f32.mrf.mxu2  ;;  %v1226_v42 = vpop.f32.mrf.mxu3 }
 0x260   : > { %v1186_v9 = vadd.f32 %v1185_v29, %v1125_v46  ;;  %v1227_v55 = vadd.f32 %v1226_v42, %v1126_v30  ;;  %v1132_v30 = vld [vmem:[%s7153_s6 + $0x58] sm:$0xff] }
 0x262   : > { %v5086_v48 = vmax.f32 %v1186_v9, 0.0  ;;  %v5088_v1 = vmax.f32 %v1227_v55, 0.0 }
 0x264   : > { %1778 = vrot.lane.b32.xlu0 %v5008_v26, %s3541_s20  ;;  %1697 = vrot.lane.b32.xlu2 %v5010_v59, %s3543_s24 }
 0x265   : > { %1584 = vrot.lane.b32.xlu1 %v5008_v26, %s3539_s18 }
 0x267   : > { %v1188_v10 = vpop.f32.mrf.mxu2  ;;  %v1229_v36 = vpop.f32.mrf.mxu3 }
 0x268   : > { %v1189_v0 = vadd.f32 %v1188_v10, %v1127_v19  ;;  %v1230_v52 = vadd.f32 %v1229_v36, %v1128_v17 }
 0x26a   : > { %v5135_v45 = vmax.f32 %v1189_v0, 0.0  ;;  %v5137_v13 = vmax.f32 %v1230_v52, 0.0 }
 0x26c   : > { %1392 = vrot.lane.b32.xlu0 %v5038_v6, %s3540_s19  ;;  %1295 = vrot.lane.b32.xlu2 %v5038_v6, %s3537_s16 }
 0x26d   : > { %1600 = vrot.lane.b32.xlu1 %v5010_v59, %s3539_s18 }
 0x26f   : > { %v1191_v15 = vpop.f32.mrf.mxu2  ;;  %v1232_v16 = vpop.f32.mrf.mxu3 }
 0x270   : > { %v1192_v47 = vadd.f32 %v1191_v15, %v1129_v44  ;;  %v1233_v28 = vadd.f32 %v1232_v16, %v1130_v53 }
 0x272   : > { %v5186_v56 = vmax.f32 %v1192_v47, 0.0  ;;  %v5203_v62 = vmax.f32 %v1233_v28, 0.0  ;;  %v1134_v28 = vld [vmem:[%s7153_s6 + $0x68] sm:$0xff] }
 0x274   : > { %1505 = vrot.lane.b32.xlu0 %v5049_v2, %s3538_s17  ;;  %1408 = vrot.lane.b32.xlu2 %v5049_v2, %s3540_s19 }
 0x275   : > { %1681 = vrot.lane.b32.xlu1 %v5008_v26, %s3543_s24 }
 0x277   : > { %v1194_v32 = vpop.f32.mrf.mxu2  ;;  %v1235_v42 = vpop.f32.mrf.mxu3 }
 0x278   : > { %v1195_v27 = vadd.f32 %v1194_v32, %v1131_v20  ;;  %v1236_v9 = vadd.f32 %v1235_v42, %v1132_v30  ;;  %v1133_v42 = vld [vmem:[%s7153_s6 + $0x60] sm:$0xff] }
 0x27a   : > { %v5278_v29 = vmax.f32 %v1195_v27, 0.0  ;;  %v5295_v17 = vmax.f32 %v1236_v9, 0.0 }
 0x27c   : > { %1699 = vrot.lane.b32.xlu0 %v5049_v2, %s3543_s24  ;;  %1586 = vrot.lane.b32.xlu2 %v5038_v6, %s3539_s18 }
 0x27d   : > { %1794 = vrot.lane.b32.xlu1 %v5010_v59, %s3541_s20 }
 0x27f   : > { %v1238_v18 = vpop.f32.mrf.mxu3  ;;  %v1197_v9 = vpop.f32.mrf.mxu2 }
 0x280   : > { %v1239_v20 = vadd.f32 %v1238_v18, %v1134_v28  ;;  %v1198_v28 = vadd.f32 %v1197_v9, %v1133_v42 }
 0x282   : > { %v5342_v30 = vmax.f32 %v1239_v20, 0.0 }
 0x284   : > { %1780 = vrot.lane.b32.xlu0 %v5038_v6, %s3541_s20  ;;  %1683 = vrot.lane.b32.xlu2 %v5038_v6, %s3543_s24 }
 0x285   : > { %1311 = vrot.lane.b32.xlu1 %v5049_v2, %s3537_s16 }
 0x28c   : > { %1893 = vrot.lane.b32.xlu0 %v5049_v2, %s7254_s28  ;;  %1877 = vrot.lane.b32.xlu2 %v5038_v6, %s7254_s28 }
 0x28d   : > { %1489 = vrot.lane.b32.xlu1 %v5038_v6, %s3538_s17 }
 0x294   : > { %1297 = vrot.lane.b32.xlu0 %v5086_v48, %s3537_s16  ;;  %1313 = vrot.lane.b32.xlu2 %v5088_v1, %s3537_s16 }
 0x295   : > { %1602 = vrot.lane.b32.xlu1 %v5049_v2, %s3539_s18 }
 0x29c   : > { %1410 = vrot.lane.b32.xlu0 %v5088_v1, %s3540_s19  ;;  %1491 = vrot.lane.b32.xlu2 %v5086_v48, %s3538_s17 }
 0x29d   : > { %1796 = vrot.lane.b32.xlu1 %v5049_v2, %s3541_s20 }
 0x2a4   : > { %1588 = vrot.lane.b32.xlu0 %v5086_v48, %s3539_s18  ;;  %1685 = vrot.lane.b32.xlu2 %v5086_v48, %s3543_s24 }
 0x2a5   : > { %1394 = vrot.lane.b32.xlu1 %v5086_v48, %s3540_s19 }
 0x2ac   : > { %1701 = vrot.lane.b32.xlu0 %v5088_v1, %s3543_s24  ;;  %1798 = vrot.lane.b32.xlu2 %v5088_v1, %s3541_s20 }
 0x2ad   : > { %1507 = vrot.lane.b32.xlu1 %v5088_v1, %s3538_s17 }
 0x2ae   : > { %v5114_v34 = vpop.permute.xlu2 %1390 }
 0x2b4   : > { %1895 = vrot.lane.b32.xlu0 %v5088_v1, %s7254_s28  ;;  %1879 = vrot.lane.b32.xlu2 %v5086_v48, %s7254_s28 }
 0x2b5   : > { %1604 = vrot.lane.b32.xlu1 %v5088_v1, %s3539_s18 }
 0x2b6   : > { %v5132_v43 = vpop.permute.xlu2 %1503 }
 0x2bc   : > { %1315 = vrot.lane.b32.xlu0 %v5137_v13, %s3537_s16  ;;  %1396 = vrot.lane.b32.xlu2 %v5135_v45, %s3540_s19 }
 0x2bd   : > { %1782 = vrot.lane.b32.xlu1 %v5086_v48, %s3541_s20 }
 0x2be   : > { %v5145_v40 = vpop.permute.xlu2 %1697 }
 0x2c4   : > { %1493 = vrot.lane.b32.xlu0 %v5135_v45, %s3538_s17  ;;  %1509 = vrot.lane.b32.xlu2 %v5137_v13, %s3538_s17 }
 0x2c5   : > { %1299 = vrot.lane.b32.xlu1 %v5135_v45, %s3537_s16 }
 0x2c6   : > { %v5153_v37 = vpop.permute.xlu0 %1309  ;;  %v5155_v25 = vpop.permute.xlu2 %1295 }
 0x2c7   : > { %v5157_v8 = vpop.permute.xlu1 %1293 }
 0x2cc   : > { %1703 = vrot.lane.b32.xlu0 %v5137_v13, %s3543_s24  ;;  %1687 = vrot.lane.b32.xlu2 %v5135_v45, %s3543_s24 }
 0x2cd   : > { %1412 = vrot.lane.b32.xlu1 %v5137_v13, %s3540_s19 }
 0x2ce   : > { %v5165_v31 = vpop.permute.xlu0 %1487  ;;  %v5167_v41 = vpop.permute.xlu2 %1408 }
 0x2cf   : > { %v5169_v33 = vpop.permute.xlu1 %1406 }
 0x2d4   : > { %1881 = vrot.lane.b32.xlu0 %v5135_v45, %s7254_s28  ;;  %1800 = vrot.lane.b32.xlu2 %v5137_v13, %s3541_s20 }
 0x2d5   : > { %1590 = vrot.lane.b32.xlu1 %v5135_v45, %s3539_s18 }
 0x2d6   : > { %v5180_v63 = vpop.permute.xlu0 %1778  ;;  %v5182_v4 = vpop.permute.xlu2 %1586 }
 0x2d7   : > { %7255 = vst [vmem:[#allocation10_spill] sm:$0xff] %v5180_v63  ;;  %v5184_v24 = vpop.permute.xlu1 %1584 }
 0x2dc   : > { %1398 = vrot.lane.b32.xlu0 %v5186_v56, %s3540_s19  ;;  %1994 = vrot.lane.b32.xlu2 %v5137_v13, %s7256_s26 }
 0x2dd   : > { %1606 = vrot.lane.b32.xlu1 %v5137_v13, %s3539_s18 }
 0x2de   : > { %v5197_v49 = vpop.permute.xlu0 %1392  ;;  %v5199_v50 = vpop.permute.xlu2 %1683 }
 0x2df   : > { %7257 = vst [vmem:[#allocation9_spill] sm:$0xff] %v5199_v50  ;;  %v5201_v23 = vpop.permute.xlu1 %1600 }
 0x2e4   : > { %1511 = vrot.lane.b32.xlu0 %v5203_v62, %s3538_s17  ;;  %1301 = vrot.lane.b32.xlu2 %v5186_v56, %s3537_s16 }
 0x2e5   : > { %1784 = vrot.lane.b32.xlu1 %v5135_v45, %s3541_s20 }
 0x2e6   : > { %v5211_v39 = vpop.permute.xlu0 %1505  ;;  %v5213_v54 = vpop.permute.xlu2 %1877 }
 0x2e7   : > { %7258 = vst [vmem:[#allocation12_spill] sm:$0xff] %v5213_v54  ;;  %v5215_v60 = vpop.permute.xlu1 %1681 }
 0x2ec   : > { %1608 = vrot.lane.b32.xlu0 %v5203_v62, %s3539_s18  ;;  %1414 = vrot.lane.b32.xlu2 %v5203_v62, %s3540_s19 }
 0x2ed   : > { %1897 = vrot.lane.b32.xlu1 %v5137_v13, %s7254_s28 }
 0x2ee   : > { %v5223_v7 = vpop.permute.xlu0 %1699  ;;  %v5225_v14 = vpop.permute.xlu2 %1313 }
 0x2ef   : > { %7259 = vst [vmem:[#allocation14_spill] sm:$0xff] %v5223_v7  ;;  %v5227_v38 = vpop.permute.xlu1 %1794  ;;  %v3242_v7 = vld [vmem:[%s7151_s4 + $0x5b0] sm:$0xff] }
 0x2f0   : > { %7260 = vst [vmem:[#allocation11_spill] sm:$0xff] %v5225_v14 }
 0x2f1   : > { %7261 = vst [vmem:[#allocation13_spill] sm:$0xff] %v5227_v38  ;;  %v5355_v38 = vmax.f32 %v1198_v28, 0.0 }
 0x2f4   : > { %1705 = vrot.lane.b32.xlu0 %v5203_v62, %s3543_s24  ;;  %1592 = vrot.lane.b32.xlu2 %v5186_v56, %s3539_s18 }
 0x2f5   : > { %1978 = vrot.lane.b32.xlu1 %v5135_v45, %s7256_s26 }
 0x2f6   : > { %v5235_v51 = vpop.permute.xlu0 %1780  ;;  %v5237_v57 = vpop.permute.xlu2 %1491 }
 0x2f7   : > { %7262 = vst [vmem:[#allocation24_spill] sm:$0xff] %v5235_v51  ;;  %v5239_v12 = vpop.permute.xlu1 %1311 }
 0x2f8   : > { %7263 = vst [vmem:[#allocation15_spill] sm:$0xff] %v5237_v57 }
 0x2fc   : > { %1883 = vrot.lane.b32.xlu0 %v5186_v56, %s7254_s28  ;;  %1689 = vrot.lane.b32.xlu2 %v5186_v56, %s3543_s24 }
 0x2fd   : > { %1317 = vrot.lane.b32.xlu1 %v5203_v62, %s3537_s16 }
 0x2fe   : > { %v5251_v58 = vpop.permute.xlu0 %1893  ;;  %v5253_v11 = vpop.permute.xlu2 %1685 }
 0x2ff   : > { %7264 = vst [vmem:[#allocation23_spill] sm:$0xff] %v5251_v58  ;;  %v5256_v22 = vpop.permute.xlu1 %1489 }
 0x300   : > { %7265 = vst [vmem:[#allocation19_spill] sm:$0xff] %v5253_v11 }
 0x304   : > { %1996 = vrot.lane.b32.xlu0 %v5203_v62, %s7256_s26  ;;  %1802 = vrot.lane.b32.xlu2 %v5203_v62, %s3541_s20 }
 0x305   : > { %1495 = vrot.lane.b32.xlu1 %v5186_v56, %s3538_s17 }
 0x306   : > { %v5271_v5 = vpop.permute.xlu0 %1297  ;;  %v5273_v35 = vpop.permute.xlu2 %1798 }
 0x307   : > { %7266 = vst [vmem:[#allocation20_spill] sm:$0xff] %v5271_v5  ;;  %v5276_v46 = vpop.permute.xlu1 %1602 }
 0x308   : > { %7267 = vst [vmem:[#allocation17_spill] sm:$0xff] %v5273_v35 }
 0x30c   : > { %1303 = vrot.lane.b32.xlu0 %v5278_v29, %s3537_s16  ;;  %1980 = vrot.lane.b32.xlu2 %v5186_v56, %s7256_s26 }
 0x30d   : > { %1786 = vrot.lane.b32.xlu1 %v5186_v56, %s3541_s20 }
 0x30e   : > { %v5289_v55 = vpop.permute.xlu0 %1410  ;;  %v5291_v19 = vpop.permute.xlu2 %1879 }
 0x30f   : > { %7268 = vst [vmem:[#allocation18_spill] sm:$0xff] %v5289_v55  ;;  %v5293_v10 = vpop.permute.xlu1 %1796 }
 0x310   : > { %7269 = vst [vmem:[#allocation21_spill] sm:$0xff] %v5291_v19  ;;  %v3210_v19 = vld [vmem:[%s7151_s4 + $0x4b0] sm:$0xff] }
 0x311   : > { %7270 = vst [vmem:[#allocation22_spill] sm:$0xff] %v5293_v10 }
 0x314   : > { %1416 = vrot.lane.b32.xlu0 %v5295_v17, %s3540_s19  ;;  %1319 = vrot.lane.b32.xlu2 %v5295_v17, %s3537_s16 }
 0x315   : > { %1899 = vrot.lane.b32.xlu1 %v5203_v62, %s7254_s28 }
 0x316   : > { %v5303_v36 = vpop.permute.xlu0 %1588  ;;  %v1397_v61 = vpop.permute.xlu2 %1396 }
 0x317   : > { %7271 = vst [vmem:[#allocation25_spill] sm:$0xff] %v5303_v36  ;;  %v5305_v0 = vpop.permute.xlu1 %1394 }
 0x318   : > { %7272 = vst [vmem:[#allocation26_spill] sm:$0xff] %v5305_v0 }
 0x31c   : > { %1610 = vrot.lane.b32.xlu0 %v5295_v17, %s3539_s18  ;;  %1497 = vrot.lane.b32.xlu2 %v5278_v29, %s3538_s17 }
 0x31d   : > { %1400 = vrot.lane.b32.xlu1 %v5278_v29, %s3540_s19 }
 0x31e   : > { %v5313_v52 = vpop.permute.xlu0 %1701  ;;  %v5315_v44 = vpop.permute.xlu2 %1509 }
 0x31f   : > { %7273 = vst [vmem:[#allocation7_spill] sm:$0xff] %v5313_v52  ;;  %v5317_v15 = vpop.permute.xlu1 %1507 }
 0x320   : > { %7274 = vst [vmem:[#allocation8_spill] sm:$0xff] %v5317_v15 }
 0x324   : > { %1885 = vrot.lane.b32.xlu0 %v5278_v29, %s7254_s28  ;;  %1594 = vrot.lane.b32.xlu2 %v5278_v29, %s3539_s18 }
 0x325   : > { %1513 = vrot.lane.b32.xlu1 %v5295_v17, %s3538_s17 }
 0x326   : > { %v5325_v47 = vpop.permute.xlu0 %1895  ;;  %v1688_v53 = vpop.permute.xlu2 %1687 }
 0x327   : > { %7275 = vst [vmem:[#allocation16_spill] sm:$0xff] %v5325_v47  ;;  %v5327_v16 = vpop.permute.xlu1 %1604  ;;  %v3211_v47 = vld [vmem:[%s7151_s4 + $0x4b8] sm:$0xff] }
 0x328   : > { %7276 = vst [vmem:[#allocation6_spill] sm:$0xff] %v5327_v16 }
 0x32c   : > { %1998 = vrot.lane.b32.xlu0 %v5295_v17, %s7256_s26  ;;  %1707 = vrot.lane.b32.xlu2 %v5295_v17, %s3543_s24 }
 0x32d   : > { %1691 = vrot.lane.b32.xlu1 %v5278_v29, %s3543_s24 }
 0x32e   : > { %v1316_v32 = vpop.permute.xlu0 %1315  ;;  %v5338_v3 = vpop.permute.xlu2 %1800 }
 0x32f   : > { %v5340_v27 = vpop.permute.xlu1 %1782 }
 0x330   : > { %7277 = vst [vmem:[#allocation27_spill] sm:$0xff] %v5340_v27 }
 0x334   : > { %1321 = vrot.lane.b32.xlu0 %v5342_v30, %s3537_s16  ;;  %1804 = vrot.lane.b32.xlu2 %v5295_v17, %s3541_s20 }
 0x335   : > { %1788 = vrot.lane.b32.xlu1 %v5278_v29, %s3541_s20 }
 0x336   : > { %v1494_v18 = vpop.permute.xlu0 %1493  ;;  %v5353_v63 = vpop.permute.xlu2 %1994 }
 0x337   : > { %v1300_v20 = vpop.permute.xlu1 %1299 }
 0x338   : > { %v1328_v27 = vsel %vm538_vm1, %v1300_v20, %v1316_v32  ;;  %v1336_v35 = vsel %vm538_vm1, %v1316_v32, %v1300_v20  ;;  %v3226_v32 = vld [vmem:[%s7151_s4 + $0x530] sm:$0xff]  ;;  %v3227_v20 = vld [vmem:[%s7151_s4 + $0x538] sm:$0xff] }
 0x339   : > { %v1364_v51 = vmul.f32 %v3210_v19, %v1336_v35  ;;  %v1365_v10 = vmul.f32 %v3211_v47, %v1328_v27  ;;  %v1522_v35 = vsel %vm685_vm3, %v1494_v18, %v5315_v44 }
 0x33c   : > { %1499 = vrot.lane.b32.xlu0 %v5355_v38, %s3538_s17  ;;  %1982 = vrot.lane.b32.xlu2 %v5278_v29, %s7256_s26 }
 0x33d   : > { %1901 = vrot.lane.b32.xlu1 %v5295_v17, %s7254_s28 }
 0x33e   : > { %v1704_v54 = vpop.permute.xlu0 %1703  ;;  %v5363_v42 = vpop.permute.xlu2 %1301 }
 0x33f   : > { %v1716_v9 = vsel %vm833_vm7, %v1688_v53, %v1704_v54  ;;  %v1724_v58 = vsel %vm833_vm7, %v1704_v54, %v1688_v53  ;;  %v1413_v28 = vpop.permute.xlu1 %1412  ;;  %v3195_v54 = vld [vmem:[%s7151_s4 + $0x6b8] sm:$0xff]  ;;  %v3194_v53 = vld [vmem:[%s7151_s4 + $0x6b0] sm:$0xff] }
 0x340   : > { %v1425_v11 = vsel %vm611_vm2, %v1397_v61, %v1413_v28  ;;  %v1433_v52 = vsel %vm611_vm2, %v1413_v28, %v1397_v61  ;;  %v1283_v15 = vmul.f32 %v3194_v53, %v5135_v45  ;;  %v1284_v0 = vmul.f32 %v3195_v54, %v5137_v13  ;;  %v3243_v61 = vld [vmem:[%s7151_s4 + $0x5b8] sm:$0xff]  ;;  %v1135_v54 = vld [vmem:[%s7153_s6 + $0x70] sm:$0xff]  ;;  %v1200_v53 = vpop.f32.mrf.mxu2 }
 0x341   : > { %v1461_v55 = vmul.f32 %v3226_v32, %v1433_v52  ;;  %v1462_v5 = vmul.f32 %v3227_v20, %v1425_v11  ;;  %v1530_v45 = vsel %vm685_vm3, %v5315_v44, %v1494_v18  ;;  %v1559_v44 = vmul.f32 %v3243_v61, %v1522_v35 }
 0x342   : > { %v1380_v14 = vadd.f32 %v1364_v51, %v1283_v15  ;;  %v1381_v50 = vadd.f32 %v1365_v10, %v1284_v0  ;;  %v3258_v10 = vld [vmem:[%s7151_s4 + $0x630] sm:$0xff]  ;;  %v3259_v0 = vld [vmem:[%s7151_s4 + $0x638] sm:$0xff]  ;;  %v1558_v52 = vmul.f32 %v3242_v7, %v1530_v45 }
 0x344   : > { %1790 = vrot.lane.b32.xlu0 %v5355_v38, %s3541_s20  ;;  %1402 = vrot.lane.b32.xlu2 %v5355_v38, %s3540_s19  ;;  %v1477_v13 = vadd.f32 %v1461_v55, %v1380_v14  ;;  %v1478_v51 = vadd.f32 %v1462_v5, %v1381_v50  ;;  %v3274_v5 = vld [vmem:[%s7151_s4 + $0x730] sm:$0xff]  ;;  %v3275_v55 = vld [vmem:[%s7151_s4 + $0x738] sm:$0xff] }
 0x345   : > { %1305 = vrot.lane.b32.xlu1 %v5355_v38, %s3537_s16  ;;  %v1752_v32 = vmul.f32 %v3274_v5, %v1716_v9  ;;  %v1753_v20 = vmul.f32 %v3275_v55, %v1724_v58  ;;  %v3290_v58 = vld [vmem:[%s7151_s4 + $0x7b0] sm:$0xff]  ;;  %v3291_v9 = vld [vmem:[%s7151_s4 + $0x7b8] sm:$0xff] }
 0x346   : > { %v5401_v36 = vpop.permute.xlu0 %1881  ;;  %v1415_v16 = vpop.permute.xlu2 %1414  ;;  %v1574_v27 = vadd.f32 %v1558_v52, %v1477_v13  ;;  %v1575_v18 = vadd.f32 %v1559_v44, %v1478_v51  ;;  %v1136_v55 = vld [vmem:[%s7153_s6 + $0x78] sm:$0xff] }
 0x347   : > { %v1591_v57 = vpop.permute.xlu1 %1590 }
 0x34c   : > { %1887 = vrot.lane.b32.xlu0 %v5355_v38, %s7254_s28  ;;  %1515 = vrot.lane.b32.xlu2 %v5342_v30, %s3538_s17 }
 0x34d   : > { %1418 = vrot.lane.b32.xlu1 %v5342_v30, %s3540_s19 }
 0x34e   : > { %v1399_v11 = vpop.permute.xlu0 %1398  ;;  %v1593_v19 = vpop.permute.xlu2 %1592 }
 0x34f   : > { %v5431_v15 = vsel %vm611_vm2, %v1399_v11, %v1415_v16  ;;  %v5435_v50 = vsel %vm611_vm2, %v1415_v16, %v1399_v11  ;;  %v1607_v14 = vpop.permute.xlu1 %1606 }
 0x350   : > { %v1619_v7 = vsel %vm759_vm5, %v1591_v57, %v1607_v14  ;;  %v1627_v47 = vsel %vm759_vm5, %v1607_v14, %v1591_v57  ;;  %v1201_v57 = vadd.f32 %v1200_v53, %v1135_v54  ;;  %v3307_v54 = vld [vmem:[%s7151_s4 + $0x838] sm:$0xff] }
 0x351   : > { %v1655_v28 = vmul.f32 %v3258_v10, %v1627_v47  ;;  %v1656_v16 = vmul.f32 %v3259_v0, %v1619_v7  ;;  %v1241_v7 = vpop.f32.mrf.mxu3 }
 0x352   : > { %v5470_v44 = vmax.f32 %v1201_v57, 0.0 }
 0x353   : > { %v1671_v61 = vadd.f32 %v1655_v28, %v1574_v27  ;;  %v1672_v35 = vadd.f32 %v1656_v16, %v1575_v18  ;;  %v1242_v18 = vadd.f32 %v1241_v7, %v1136_v55  ;;  %v3306_v16 = vld [vmem:[%s7151_s4 + $0x830] sm:$0xff] }
 0x354   : > { %2000 = vrot.lane.b32.xlu0 %v5342_v30, %s7256_s26  ;;  %1612 = vrot.lane.b32.xlu2 %v5342_v30, %s3539_s18 }
 0x355   : > { %1596 = vrot.lane.b32.xlu1 %v5355_v38, %s3539_s18  ;;  %v1768_v45 = vadd.f32 %v1752_v32, %v1671_v61  ;;  %v1769_v13 = vadd.f32 %v1753_v20, %v1672_v35  ;;  %v5503_v57 = vmax.f32 %v1242_v18, 0.0 }
 0x356   : > { %v5456_v51 = vpop.permute.xlu0 %1511  ;;  %v1690_v11 = vpop.permute.xlu2 %1689 }
 0x357   : > { %v1785_v10 = vpop.permute.xlu1 %1784 }
 0x358   : > { %v1813_v0 = vsel %vm907_vm4, %v1785_v10, %v5338_v3  ;;  %v1821_v52 = vsel %vm907_vm4, %v5338_v3, %v1785_v10 }
 0x359   : > { %v1849_v14 = vmul.f32 %v3290_v58, %v1813_v0  ;;  %v1850_v5 = vmul.f32 %v3291_v9, %v1821_v52  ;;  %v3323_v0 = vld [vmem:[%s7151_s4 + $0x8b8] sm:$0xff] }
 0x35b   : > { %v1865_v47 = vadd.f32 %v1849_v14, %v1768_v45  ;;  %v1866_v27 = vadd.f32 %v1850_v5, %v1769_v13 }
 0x35c   : > { %1404 = vrot.lane.b32.xlu0 %v5470_v44, %s3540_s19  ;;  %1709 = vrot.lane.b32.xlu2 %v5342_v30, %s3543_s24 }
 0x35d   : > { %1693 = vrot.lane.b32.xlu1 %v5355_v38, %s3543_s24 }
 0x35e   : > { %v1609_v3 = vpop.permute.xlu0 %1608  ;;  %v5481_v28 = vpop.permute.xlu2 %1802 }
 0x35f   : > { %v5491_v53 = vsel %vm759_vm5, %v1593_v19, %v1609_v3  ;;  %v5495_v32 = vsel %vm759_vm5, %v1609_v3, %v1593_v19  ;;  %v1898_v20 = vpop.permute.xlu1 %1897 }
 0x360   : > { %v1910_v61 = vsel %vm981_vm6, %v5401_v36, %v1898_v20  ;;  %v1918_v35 = vsel %vm981_vm6, %v1898_v20, %v5401_v36  ;;  %v3322_v36 = vld [vmem:[%s7151_s4 + $0x8b0] sm:$0xff]  ;;  %v3212_v20 = vld [vmem:[%s7151_s4 + $0x4c0] sm:$0xff] }
 0x361   : > { %v1946_v45 = vmul.f32 %v3306_v16, %v1910_v61  ;;  %v1947_v13 = vmul.f32 %v3307_v54, %v1918_v35  ;;  %v3197_v54 = vld [vmem:[%s7151_s4 + $0x6c8] sm:$0xff] }
 0x362   : > { %v3213_v61 = vld [vmem:[%s7151_s4 + $0x4c8] sm:$0xff] }
 0x363   : > { %v1962_v58 = vadd.f32 %v1946_v45, %v1865_v47  ;;  %v1963_v9 = vadd.f32 %v1947_v13, %v1866_v27  ;;  %v3228_v45 = vld [vmem:[%s7151_s4 + $0x540] sm:$0xff]  ;;  %v3229_v13 = vld [vmem:[%s7151_s4 + $0x548] sm:$0xff] }
 0x364   : > { %1517 = vrot.lane.b32.xlu0 %v5503_v57, %s3538_s17  ;;  %1984 = vrot.lane.b32.xlu2 %v5355_v38, %s7256_s26 }
 0x365   : > { %1806 = vrot.lane.b32.xlu1 %v5342_v30, %s3541_s20 }
 0x366   : > { %v1706_v19 = vpop.permute.xlu0 %1705  ;;  %v1981_v10 = vpop.permute.xlu2 %1980 }
 0x367   : > { %v1717_v52 = vsel %vm833_vm7, %v1690_v11, %v1706_v19  ;;  %v1725_v14 = vsel %vm833_vm7, %v1706_v19, %v1690_v11  ;;  %v1979_v5 = vpop.permute.xlu1 %1978  ;;  %v3196_v11 = vld [vmem:[%s7151_s4 + $0x6c0] sm:$0xff] }
 0x368   : > { %v2007_v55 = vsel %vm1055_vm8, %v1979_v5, %v5353_v63  ;;  %v2015_v7 = vsel %vm1055_vm8, %v5353_v63, %v1979_v5  ;;  %v1285_v19 = vmul.f32 %v3196_v11, %v5186_v56 }
 0x369   : > { %v2043_v47 = vmul.f32 %v3322_v36, %v2007_v55  ;;  %v2044_v27 = vmul.f32 %v3323_v0, %v2015_v7  ;;  %v1286_v36 = vmul.f32 %v3197_v54, %v5203_v62  ;;  %v1463_v55 = vmul.f32 %v3228_v45, %v5435_v50  ;;  %v3245_v50 = vld [vmem:[%s7151_s4 + $0x5c8] sm:$0xff] }
 0x36a   : > { %v1464_v7 = vmul.f32 %v3229_v13, %v5431_v15  ;;  %v3244_v15 = vld [vmem:[%s7151_s4 + $0x5c0] sm:$0xff]  ;;  %v3261_v45 = vld [vmem:[%s7151_s4 + $0x648] sm:$0xff] }
 0x36b   : > { %v5527_v18 = vadd.f32 %v2043_v47, %v1962_v58  ;;  %v5529_v3 = vadd.f32 %v2044_v27, %v1963_v9 }
 0x36c   : > { %1614 = vrot.lane.b32.xlu0 %v5503_v57, %s3539_s18  ;;  %1307 = vrot.lane.b32.xlu2 %v5470_v44, %s3537_s16 }
 0x36d   : > { %1903 = vrot.lane.b32.xlu1 %v5342_v30, %s7254_s28 }
 0x36e   : > { %v5540_v63 = vpop.permute.xlu0 %1883  ;;  %v1320_v16 = vpop.permute.xlu2 %1319 }
 0x36f   : > { %v1318_v35 = vpop.permute.xlu1 %1317 }
 0x370   : > { %v1329_v58 = vsel %vm538_vm1, %v5363_v42, %v1318_v35  ;;  %v1337_v9 = vsel %vm538_vm1, %v1318_v35, %v5363_v42  ;;  %v3260_v35 = vld [vmem:[%s7151_s4 + $0x640] sm:$0xff] }
 0x371   : > { %v1366_v0 = vmul.f32 %v3212_v20, %v1337_v9  ;;  %v1367_v5 = vmul.f32 %v3213_v61, %v1329_v58 }
 0x373   : > { %v1382_v47 = vadd.f32 %v1366_v0, %v1285_v19  ;;  %v1383_v27 = vadd.f32 %v1367_v5, %v1286_v36  ;;  %v3277_v36 = vld [vmem:[%s7151_s4 + $0x748] sm:$0xff]  ;;  %v1657_v0 = vmul.f32 %v3260_v35, %v5495_v32  ;;  %v1658_v5 = vmul.f32 %v3261_v45, %v5491_v53  ;;  %v3199_v32 = vld [vmem:[%s7151_s4 + $0x6d8] sm:$0xff] }
 0x374   : > { %1695 = vrot.lane.b32.xlu0 %v5470_v44, %s3543_s24  ;;  %1420 = vrot.lane.b32.xlu2 %v5503_v57, %s3540_s19  ;;  %v3215_v53 = vld [vmem:[%s7151_s4 + $0x4d8] sm:$0xff] }
 0x375   : > { %1323 = vrot.lane.b32.xlu1 %v5503_v57, %s3537_s16  ;;  %v1479_v56 = vadd.f32 %v1463_v55, %v1382_v47  ;;  %v1480_v42 = vadd.f32 %v1464_v7, %v1383_v27  ;;  %v1755_v47 = vmul.f32 %v3277_v36, %v1725_v14  ;;  %v3293_v14 = vld [vmem:[%s7151_s4 + $0x7c8] sm:$0xff] }
 0x376   : > { %v1997_v62 = vpop.permute.xlu0 %1996  ;;  %v5573_v11 = vpop.permute.xlu2 %1497 }
 0x377   : > { %v2008_v54 = vsel %vm1055_vm8, %v1981_v10, %v1997_v62  ;;  %v2016_v20 = vsel %vm1055_vm8, %v1997_v62, %v1981_v10  ;;  %v1496_v61 = vpop.permute.xlu1 %1495  ;;  %v3276_v10 = vld [vmem:[%s7151_s4 + $0x740] sm:$0xff] }
 0x378   : > { %v1523_v13 = vsel %vm685_vm3, %v1496_v61, %v5456_v51  ;;  %v1531_v58 = vsel %vm685_vm3, %v5456_v51, %v1496_v61  ;;  %v1754_v51 = vmul.f32 %v3276_v10, %v1717_v52  ;;  %v3292_v52 = vld [vmem:[%s7151_s4 + $0x7c0] sm:$0xff] }
 0x379   : > { %v1560_v9 = vmul.f32 %v3244_v15, %v1531_v58  ;;  %v1561_v19 = vmul.f32 %v3245_v50, %v1523_v13  ;;  %v1288_v13 = vmul.f32 %v3199_v32, %v5295_v17 }
 0x37b   : > { %v1576_v55 = vadd.f32 %v1560_v9, %v1479_v56  ;;  %v1577_v7 = vadd.f32 %v1561_v19, %v1480_v42 }
 0x37c   : > { %1792 = vrot.lane.b32.xlu0 %v5470_v44, %s3541_s20  ;;  %1598 = vrot.lane.b32.xlu2 %v5470_v44, %s3539_s18 }
 0x37d   : > { %v1673_v27 = vadd.f32 %v1657_v0, %v1576_v55  ;;  %v1674_v62 = vadd.f32 %v1658_v5, %v1577_v7  ;;  %1501 = vrot.lane.b32.xlu1 %v5470_v44, %s3538_s17  ;;  %v3309_v7 = vld [vmem:[%s7151_s4 + $0x848] sm:$0xff] }
 0x37e   : > { %v1304_v56 = vpop.permute.xlu0 %1303  ;;  %v1595_v42 = vpop.permute.xlu2 %1594 }
 0x37f   : > { %v1330_v15 = vsel %vm538_vm1, %v1304_v56, %v1320_v16  ;;  %v1338_v50 = vsel %vm538_vm1, %v1320_v16, %v1304_v56  ;;  %v1770_v61 = vadd.f32 %v1754_v51, %v1673_v27  ;;  %v1771_v35 = vadd.f32 %v1755_v47, %v1674_v62  ;;  %v1787_v45 = vpop.permute.xlu1 %1786  ;;  %v3324_v47 = vld [vmem:[%s7151_s4 + $0x8c0] sm:$0xff]  ;;  %v3325_v27 = vld [vmem:[%s7151_s4 + $0x8c8] sm:$0xff] }
 0x380   : > { %v1369_v58 = vmul.f32 %v3215_v53, %v1330_v15  ;;  %v1814_v9 = vsel %vm907_vm4, %v1787_v45, %v5481_v28  ;;  %v1822_v19 = vsel %vm907_vm4, %v5481_v28, %v1787_v45  ;;  %v3308_v28 = vld [vmem:[%s7151_s4 + $0x840] sm:$0xff]  ;;  %v2046_v15 = vmul.f32 %v3325_v27, %v2016_v20  ;;  %v3198_v45 = vld [vmem:[%s7151_s4 + $0x6d0] sm:$0xff] }
 0x381   : > { %v1851_v10 = vmul.f32 %v3292_v52, %v1814_v9  ;;  %v1852_v36 = vmul.f32 %v3293_v14, %v1822_v19  ;;  %v3214_v52 = vld [vmem:[%s7151_s4 + $0x4d0] sm:$0xff]  ;;  %v2045_v14 = vmul.f32 %v3324_v47, %v2008_v54  ;;  %v3231_v19 = vld [vmem:[%s7151_s4 + $0x558] sm:$0xff] }
 0x382   : > { %v1385_v0 = vadd.f32 %v1369_v58, %v1288_v13  ;;  %v3230_v9 = vld [vmem:[%s7151_s4 + $0x550] sm:$0xff] }
 0x383   : > { %v1867_v5 = vadd.f32 %v1851_v10, %v1770_v61  ;;  %v1868_v55 = vadd.f32 %v1852_v36, %v1771_v35 }
 0x384   : > { %1905 = vrot.lane.b32.xlu0 %v5503_v57, %s7254_s28  ;;  %1992 = vrot.lane.b32.xlu2 %v5088_v1, %s7256_s26 }
 0x385   : > { %1711 = vrot.lane.b32.xlu1 %v5503_v57, %s3543_s24 }
 0x386   : > { %v1417_v17 = vpop.permute.xlu0 %1416  ;;  %v5640_v16 = vpop.permute.xlu2 %1707 }
 0x387   : > { %v1900_v51 = vpop.permute.xlu1 %1899 }
 0x388   : > { %v1911_v62 = vsel %vm981_vm6, %v5540_v63, %v1900_v51  ;;  %v1919_v32 = vsel %vm981_vm6, %v1900_v51, %v5540_v63  ;;  %v1368_v63 = vmul.f32 %v3214_v52, %v1338_v50  ;;  %v1287_v50 = vmul.f32 %v3198_v45, %v5278_v29  ;;  %v3263_v52 = vld [vmem:[%s7151_s4 + $0x658] sm:$0xff] }
 0x389   : > { %v1948_v53 = vmul.f32 %v3308_v28, %v1911_v62  ;;  %v1949_v56 = vmul.f32 %v3309_v7, %v1919_v32 }
 0x38a   : > { %v1384_v7 = vadd.f32 %v1368_v63, %v1287_v50  ;;  %v2324_v63 = vld [vmem:[%s7156_s9 + $0x8] sm:$0xff] }
 0x38b   : > { %v1964_v61 = vadd.f32 %v1948_v53, %v1867_v5  ;;  %v1965_v35 = vadd.f32 %v1949_v56, %v1868_v55  ;;  %v2351_v53 = vpop.f32.mrf.mxu2  ;;  %v3262_v56 = vld [vmem:[%s7151_s4 + $0x650] sm:$0xff] }
 0x38c   : > { %2002 = vrot.lane.b32.xlu0 %v5503_v57, %s7256_s26  ;;  %1889 = vrot.lane.b32.xlu2 %v5470_v44, %s7254_s28 }
 0x38d   : > { %1808 = vrot.lane.b32.xlu1 %v5503_v57, %s3541_s20  ;;  %v5672_v13 = vadd.f32 %v2045_v14, %v1964_v61  ;;  %v5674_v54 = vadd.f32 %v2046_v15, %v1965_v35  ;;  %v2374_v61 = vpop.f32.mrf.mxu3 }
 0x38e   : > { %v1611_v20 = vpop.permute.xlu0 %1610  ;;  %v5676_v58 = vpop.permute.xlu2 %1804 }
 0x38f   : > { %v1621_v10 = vsel %vm759_vm5, %v1595_v42, %v1611_v20  ;;  %v1629_v36 = vsel %vm759_vm5, %v1611_v20, %v1595_v42  ;;  %v1401_v5 = vpop.permute.xlu1 %1400 }
 0x390   : > { %v1427_v55 = vsel %vm611_vm2, %v1401_v5, %v1417_v17  ;;  %v1435_v28 = vsel %vm611_vm2, %v1417_v17, %v1401_v5  ;;  %v3246_v17 = vld [vmem:[%s7151_s4 + $0x5d0] sm:$0xff]  ;;  %v1659_v20 = vmul.f32 %v3262_v56, %v1629_v36  ;;  %v2375_v5 = vadd.f32 %v2374_v61, %v2324_v63  ;;  %v3279_v36 = vld [vmem:[%s7151_s4 + $0x758] sm:$0xff] }
 0x391   : > { %v1465_v51 = vmul.f32 %v3230_v9, %v1435_v28  ;;  %v1466_v47 = vmul.f32 %v3231_v19, %v1427_v55  ;;  %v1660_v9 = vmul.f32 %v3263_v52, %v1621_v10  ;;  %v3278_v10 = vld [vmem:[%s7151_s4 + $0x750] sm:$0xff] }
 0x392   : > { %v2325_v52 = vld [vmem:[%s7156_s9 + $0x10] sm:$0xff] }
 0x393   : > { %v1481_v27 = vadd.f32 %v1465_v51, %v1384_v7  ;;  %v1482_v62 = vadd.f32 %v1466_v47, %v1385_v0  ;;  %v3247_v0 = vld [vmem:[%s7151_s4 + $0x5d8] sm:$0xff] }
 0x394   : > { %1875 = vrot.lane.b32.xlu0 %v5008_v26, %s7254_s28  ;;  %1986 = vrot.lane.b32.xlu2 %v5470_v44, %s7256_s26 }
 0x395   : > { %1976 = vrot.lane.b32.xlu1 %v5086_v48, %s7256_s26 }
 0x396   : > { %v5699_v29 = vpop.permute.xlu0 %1885  ;;  %v1983_v42 = vpop.permute.xlu2 %1982 }
 0x397   : > { %v1514_v32 = vpop.permute.xlu1 %1513 }
 0x398   : > { %v1524_v14 = vsel %vm685_vm3, %v5573_v11, %v1514_v32  ;;  %v1532_v15 = vsel %vm685_vm3, %v1514_v32, %v5573_v11 }
 0x399   : > { %v1562_v35 = vmul.f32 %v3246_v17, %v1532_v15  ;;  %v1563_v45 = vmul.f32 %v3247_v0, %v1524_v14  ;;  %v5746_v0 = vmax.f32 %v2375_v5, 0.0  ;;  %v2354_v14 = vpop.f32.mrf.mxu2  ;;  %v2377_v15 = vpop.f32.mrf.mxu3 }
 0x39b   : > { %v1578_v19 = vadd.f32 %v1562_v35, %v1481_v27  ;;  %v1579_v50 = vadd.f32 %v1563_v45, %v1482_v62  ;;  %v2355_v45 = vadd.f32 %v2354_v14, %v2325_v52  ;;  %v3311_v52 = vld [vmem:[%s7151_s4 + $0x858] sm:$0xff] }
 0x39c   : > { %1990 = vrot.lane.b32.xlu0 %v5049_v2, %s7256_s26  ;;  %1974 = vrot.lane.b32.xlu2 %v5038_v6, %s7256_s26 }
 0x39d   : > { %1891 = vrot.lane.b32.xlu1 %v5010_v59, %s7254_s28  ;;  %v1675_v11 = vadd.f32 %v1659_v20, %v1578_v19  ;;  %v1676_v55 = vadd.f32 %v1660_v9, %v1579_v50  ;;  %v3294_v19 = vld [vmem:[%s7151_s4 + $0x7d0] sm:$0xff]  ;;  %v3295_v50 = vld [vmem:[%s7151_s4 + $0x7d8] sm:$0xff] }
 0x39e   : > { %v1999_v28 = vpop.permute.xlu0 %1998  ;;  %v5728_v7 = vpop.permute.xlu2 %1402 }
 0x39f   : > { %v2009_v51 = vsel %vm1055_vm8, %v1983_v42, %v1999_v28  ;;  %v2017_v47 = vsel %vm1055_vm8, %v1999_v28, %v1983_v42  ;;  %v1692_v27 = vpop.permute.xlu1 %1691  ;;  %v2326_v42 = vld [vmem:[%s7156_s9 + $0x18] sm:$0xff] }
 0x3a0   : > { %v1718_v62 = vsel %vm833_vm7, %v1692_v27, %v5640_v16  ;;  %v1726_v17 = vsel %vm833_vm7, %v5640_v16, %v1692_v27  ;;  %v2323_v16 = vld [vmem:[%s7156_s9] sm:$0xff]  ;;  %v2378_v63 = vadd.f32 %v2377_v15, %v2326_v42 }
 0x3a1   : > { %v1756_v32 = vmul.f32 %v3278_v10, %v1718_v62  ;;  %v1757_v56 = vmul.f32 %v3279_v36, %v1726_v17  ;;  %v2352_v20 = vadd.f32 %v2351_v53, %v2323_v16  ;;  %v5775_v53 = vmax.f32 %v2355_v45, 0.0 }
 0x3a2   : > { %v5777_v27 = vmax.f32 %v2378_v63, 0.0 }
 0x3a3   : > { %v1772_v61 = vadd.f32 %v1756_v32, %v1675_v11  ;;  %v1773_v35 = vadd.f32 %v1757_v56, %v1676_v55  ;;  %7278 = vst [vmem:[#allocation28_spill] sm:$0xff] %v5775_v53  ;;  %v5779_v62 = vmax.f32 %v2352_v20, 0.0  ;;  %v3310_v56 = vld [vmem:[%s7151_s4 + $0x850] sm:$0xff] }
 0x3a4   : > { %1988 = vrot.lane.b32.xlu2 %v5010_v59, %s7256_s26  ;;  %2397 = vrot.lane.b32.xlu0 %v5746_v0, %s3537_s16 }
 0x3a5   : > { %1972 = vrot.lane.b32.xlu1 %v5008_v26, %s7256_s26 }
 0x3a6   : > { %v1322_v9 = vpop.permute.xlu0 %1321  ;;  %v1516_v5 = vpop.permute.xlu2 %1515 }
 0x3a7   : > { %v1789_v11 = vpop.permute.xlu1 %1788 }
 0x3a8   : > { %v1815_v55 = vsel %vm907_vm4, %v1789_v11, %v5676_v58  ;;  %v1823_v28 = vsel %vm907_vm4, %v5676_v58, %v1789_v11 }
 0x3a9   : > { %v1853_v10 = vmul.f32 %v3294_v19, %v1815_v55  ;;  %v1854_v36 = vmul.f32 %v3295_v50, %v1823_v28 }
 0x3ab   : > { %v1869_v17 = vadd.f32 %v1853_v10, %v1772_v61  ;;  %v1870_v32 = vadd.f32 %v1854_v36, %v1773_v35  ;;  %v3326_v61 = vld [vmem:[%s7151_s4 + $0x8d0] sm:$0xff]  ;;  %v3327_v35 = vld [vmem:[%s7151_s4 + $0x8d8] sm:$0xff] }
 0x3ac   : > { %2395 = vrot.lane.b32.xlu0 %v5775_v53, %s3537_s16  ;;  %2393 = vrot.lane.b32.xlu2 %v5779_v62, %s3537_s16  ;;  %v2047_v50 = vmul.f32 %v3326_v61, %v2009_v51  ;;  %v3200_v51 = vld [vmem:[%s7151_s4 + $0x6e0] sm:$0xff] }
 0x3ad   : > { %2399 = vrot.lane.b32.xlu1 %v5777_v27, %s3537_s16  ;;  %s6762_s16 = scalar_lea.vmem %s7157_s10, %s3504_s21  ;;  %s3552_s21 = smov 94  }
 0x3ae   : > { %v1500_v58 = vpop.permute.xlu0 %1499  ;;  %v1613_v63 = vpop.permute.xlu2 %1612 }
 0x3af   : > { %v1525_v14 = vsel %vm685_vm3, %v1500_v58, %v1516_v5  ;;  %v1533_v42 = vsel %vm685_vm3, %v1516_v5, %v1500_v58  ;;  %v1902_v15 = vpop.permute.xlu1 %1901  ;;  %v2048_v5 = vmul.f32 %v3327_v35, %v2017_v47  ;;  %v3216_v47 = vld [vmem:[%s7151_s4 + $0x4e0] sm:$0xff]  ;;  %v1289_v58 = vmul.f32 %v3200_v51, %v5355_v38  ;;  %v3201_v35 = vld [vmem:[%s7151_s4 + $0x6e8] sm:$0xff] }
 0x3b0   : > { %v1912_v16 = vsel %vm981_vm6, %v5699_v29, %v1902_v15  ;;  %v1920_v45 = vsel %vm981_vm6, %v1902_v15, %v5699_v29 }
 0x3b1   : > { %v1950_v20 = vmul.f32 %v3310_v56, %v1912_v16  ;;  %v1951_v19 = vmul.f32 %v3311_v52, %v1920_v45  ;;  %v3217_v52 = vld [vmem:[%s7151_s4 + $0x4e8] sm:$0xff]  ;;  %v3232_v16 = vld [vmem:[%s7151_s4 + $0x560] sm:$0xff] }
 0x3b2   : > { %v3233_v45 = vld [vmem:[%s7151_s4 + $0x568] sm:$0xff] }
 0x3b3   : > { %v1966_v11 = vadd.f32 %v1950_v20, %v1869_v17  ;;  %v1967_v55 = vadd.f32 %v1951_v19, %v1870_v32  ;;  %v1290_v20 = vmul.f32 %v3201_v35, %v5342_v30 }
 0x3b4   : > { %2418 = vrot.lane.b32.xlu0 %v5779_v62, %s3540_s19  ;;  %2424 = vrot.lane.b32.xlu2 %v5777_v27, %s3540_s19 }
 0x3b5   : > { %2420 = vrot.lane.b32.xlu1 %v5775_v53, %s3540_s19  ;;  %v5815_v28 = vadd.f32 %v2047_v50, %v1966_v11  ;;  %v5817_v10 = vadd.f32 %v2048_v5, %v1967_v55  ;;  %v3248_v50 = vld [vmem:[%s7151_s4 + $0x5e0] sm:$0xff]  ;;  %v3249_v5 = vld [vmem:[%s7151_s4 + $0x5e8] sm:$0xff] }
 0x3b6   : > { %v5819_v29 = vpop.permute.xlu0 %1790  ;;  %v1710_v15 = vpop.permute.xlu2 %1709 }
 0x3b7   : > { %v1306_v36 = vpop.permute.xlu1 %1305 }
 0x3b8   : > { %v1331_v17 = vsel %vm538_vm1, %v1306_v36, %v1322_v9  ;;  %v1339_v32 = vsel %vm538_vm1, %v1322_v9, %v1306_v36  ;;  %v1564_v36 = vmul.f32 %v3248_v50, %v1533_v42  ;;  %v3280_v50 = vld [vmem:[%s7151_s4 + $0x760] sm:$0xff] }
 0x3b9   : > { %v1370_v56 = vmul.f32 %v3216_v47, %v1339_v32  ;;  %v1371_v9 = vmul.f32 %v3217_v52, %v1331_v17  ;;  %v1565_v17 = vmul.f32 %v3249_v5, %v1525_v14  ;;  %v3281_v5 = vld [vmem:[%s7151_s4 + $0x768] sm:$0xff] }
 0x3bb   : > { %v1386_v61 = vadd.f32 %v1370_v56, %v1289_v58  ;;  %v1387_v51 = vadd.f32 %v1371_v9, %v1290_v20 }
 0x3bc   : > { %2449 = vrot.lane.b32.xlu0 %v5777_v27, %s3538_s17  ;;  %2445 = vrot.lane.b32.xlu2 %v5775_v53, %s3538_s17 }
 0x3bd   : > { %2422 = vrot.lane.b32.xlu1 %v5746_v0, %s3540_s19  ;;  %s3548_s19 = smov 2  }
 0x3be   : > { %v5844_v38 = vpop.permute.xlu0 %1887  ;;  %v5869_v56 = vpop.permute.xlu2 %1984 }
 0x3bf   : > { %v1419_v19 = vpop.permute.xlu1 %1418 }
 0x3c0   : > { %v1428_v11 = vsel %vm611_vm2, %v5728_v7, %v1419_v19  ;;  %v1436_v55 = vsel %vm611_vm2, %v1419_v19, %v5728_v7 }
 0x3c1   : > { %v1467_v47 = vmul.f32 %v3232_v16, %v1436_v55  ;;  %v1468_v30 = vmul.f32 %v3233_v45, %v1428_v11  ;;  %v3264_v16 = vld [vmem:[%s7151_s4 + $0x660] sm:$0xff]  ;;  %v3265_v45 = vld [vmem:[%s7151_s4 + $0x668] sm:$0xff] }
 0x3c3   : > { %v1483_v32 = vadd.f32 %v1467_v47, %v1386_v61  ;;  %v1484_v58 = vadd.f32 %v1468_v30, %v1387_v51 }
 0x3c4   : > { %2470 = vrot.lane.b32.xlu0 %v5775_v53, %s3539_s18  ;;  %2447 = vrot.lane.b32.xlu2 %v5746_v0, %s3538_s17 }
 0x3c5   : > { %2443 = vrot.lane.b32.xlu1 %v5779_v62, %s3538_s17  ;;  %v1580_v52 = vadd.f32 %v1564_v36, %v1483_v32  ;;  %v1581_v7 = vadd.f32 %v1565_v17, %v1484_v58  ;;  %v3296_v17 = vld [vmem:[%s7151_s4 + $0x7e0] sm:$0xff]  ;;  %s3546_s17 = smov 32  }
 0x3c6   : > { %v5873_v35 = vpop.permute.xlu0 %2000  ;;  %v5883_v42 = vpop.permute.xlu2 %1307 }
 0x3c7   : > { %v1597_v9 = vpop.permute.xlu1 %1596 }
 0x3c8   : > { %v1622_v20 = vsel %vm759_vm5, %v1597_v9, %v1613_v63  ;;  %v1630_v19 = vsel %vm759_vm5, %v1613_v63, %v1597_v9 }
 0x3c9   : > { %v1661_v51 = vmul.f32 %v3264_v16, %v1630_v19  ;;  %v1662_v47 = vmul.f32 %v3265_v45, %v1622_v20 }
 0x3cb   : > { %v1677_v32 = vadd.f32 %v1661_v51, %v1580_v52  ;;  %v1678_v58 = vadd.f32 %v1662_v47, %v1581_v7  ;;  %v3204_v52 = vld [vmem:[%s7151_s4 + $0x480] sm:$0xff]  ;;  %v3205_v7 = vld [vmem:[%s7151_s4 + $0x488] sm:$0xff] }
 0x3cc   : > { %2495 = vrot.lane.b32.xlu0 %v5775_v53, %s3543_s24  ;;  %2472 = vrot.lane.b32.xlu2 %v5746_v0, %s3539_s18  ;;  %v3188_v47 = vld [vmem:[%s7151_s4 + $0x680] sm:$0xff] }
 0x3cd   : > { %2474 = vrot.lane.b32.xlu1 %v5777_v27, %s3539_s18 }
 0x3ce   : > { %v5881_v14 = vpop.permute.xlu0 %1404  ;;  %v5925_v45 = vpop.permute.xlu2 %1420 }
 0x3cf   : > { %v1694_v61 = vpop.permute.xlu1 %1693 }
 0x3d0   : > { %v1719_v11 = vsel %vm833_vm7, %v1694_v61, %v1710_v15  ;;  %v1727_v55 = vsel %vm833_vm7, %v1710_v15, %v1694_v61  ;;  %v3297_v15 = vld [vmem:[%s7151_s4 + $0x7e8] sm:$0xff] }
 0x3d1   : > { %v1758_v63 = vmul.f32 %v3280_v50, %v1719_v11  ;;  %v1759_v30 = vmul.f32 %v3281_v5, %v1727_v55  ;;  %v1325_v11 = vsel %vm538_vm1, %v5157_v8, %v5153_v37 }
 0x3d3   : > { %v1774_v20 = vadd.f32 %v1758_v63, %v1677_v32  ;;  %v1775_v19 = vadd.f32 %v1759_v30, %v1678_v58  ;;  %v3189_v63 = vld [vmem:[%s7151_s4 + $0x688] sm:$0xff]  ;;  %v1359_v30 = vmul.f32 %v3205_v7, %v1325_v11  ;;  %v1430_v32 = vsel %vm611_vm2, %v5169_v33, %v5114_v34 }
 0x3d4   : > { %2493 = vrot.lane.b32.xlu0 %v5779_v62, %s3543_s24  ;;  %2520 = vrot.lane.b32.xlu2 %v5775_v53, %s3541_s20 }
 0x3d5   : > { %2468 = vrot.lane.b32.xlu1 %v5779_v62, %s3539_s18 }
 0x3d6   : > { %v5911_v36 = vpop.permute.xlu0 %1517 }
 0x3d7   : > { %v1807_v9 = vpop.permute.xlu1 %1806 }
 0x3d8   : > { %v1816_v61 = vsel %vm907_vm4, %v5819_v29, %v1807_v9  ;;  %v1824_v16 = vsel %vm907_vm4, %v1807_v9, %v5819_v29  ;;  %v1333_v29 = vsel %vm538_vm1, %v5153_v37, %v5157_v8  ;;  %v3220_v37 = vld [vmem:[%s7151_s4 + $0x500] sm:$0xff] }
 0x3d9   : > { %v1855_v50 = vmul.f32 %v3296_v17, %v1816_v61  ;;  %v1856_v5 = vmul.f32 %v3297_v15, %v1824_v16  ;;  %v1358_v8 = vmul.f32 %v3204_v52, %v1333_v29  ;;  %v3221_v17 = vld [vmem:[%s7151_s4 + $0x508] sm:$0xff]  ;;  %v1422_v15 = vsel %vm611_vm2, %v5114_v34, %v5169_v33  ;;  %v3312_v9 = vld [vmem:[%s7151_s4 + $0x860] sm:$0xff] }
 0x3da   : > { %v3313_v61 = vld [vmem:[%s7151_s4 + $0x868] sm:$0xff]  ;;  %v1455_v33 = vmul.f32 %v3220_v37, %v1430_v32  ;;  %v6000_v37 = vpop.permute.xlu2 %1598  ;;  %v1519_v32 = vsel %vm685_vm3, %v5165_v31, %v5132_v43 }
 0x3db   : > { %v1871_v55 = vadd.f32 %v1855_v50, %v1774_v20  ;;  %v1872_v51 = vadd.f32 %v1856_v5, %v1775_v19  ;;  %v1278_v20 = vmul.f32 %v3189_v63, %v5010_v59  ;;  %v1277_v19 = vmul.f32 %v3188_v47, %v5008_v26  ;;  %v3190_v59 = vld [vmem:[%s7151_s4 + $0x690] sm:$0xff]  ;;  %v3207_v47 = vld [vmem:[%s7151_s4 + $0x498] sm:$0xff] }
 0x3dc   : > { %2524 = vrot.lane.b32.xlu0 %v5777_v27, %s3541_s20  ;;  %2518 = vrot.lane.b32.xlu2 %v5779_v62, %s3541_s20  ;;  %v1456_v5 = vmul.f32 %v3221_v17, %v1422_v15  ;;  %v3206_v26 = vld [vmem:[%s7151_s4 + $0x490] sm:$0xff]  ;;  %v1334_v63 = vsel %vm538_vm1, %v5239_v12, %v5155_v25  ;;  %v3236_v17 = vld [vmem:[%s7151_s4 + $0x580] sm:$0xff] }
 0x3dd   : > { %2499 = vrot.lane.b32.xlu1 %v5777_v27, %s3543_s24  ;;  %v1374_v11 = vadd.f32 %v1358_v8, %v1277_v19  ;;  %v1375_v29 = vadd.f32 %v1359_v30, %v1278_v20  ;;  %v3237_v15 = vld [vmem:[%s7151_s4 + $0x588] sm:$0xff] }
 0x3de   : > { %v5967_v58 = vpop.permute.xlu0 %1614  ;;  %v1553_v19 = vmul.f32 %v3237_v15, %v1519_v32  ;;  %v1616_v32 = vsel %vm759_vm5, %v5184_v24, %v5201_v23 }
 0x3df   : > { %v1904_v16 = vpop.permute.xlu1 %1903 }
 0x3e0   : > { %v1913_v50 = vsel %vm981_vm6, %v5844_v38, %v1904_v16  ;;  %v1921_v34 = vsel %vm981_vm6, %v1904_v16, %v5844_v38  ;;  %v1326_v38 = vsel %vm538_vm1, %v5155_v25, %v5239_v12  ;;  %v1527_v25 = vsel %vm685_vm3, %v5132_v43, %v5165_v31  ;;  %v3192_v43 = vld [vmem:[%s7151_s4 + $0x6a0] sm:$0xff]  ;;  %v3193_v31 = vld [vmem:[%s7151_s4 + $0x6a8] sm:$0xff] }
 0x3e1   : > { %v1952_v52 = vmul.f32 %v3312_v9, %v1913_v50  ;;  %v1953_v7 = vmul.f32 %v3313_v61, %v1921_v34  ;;  %v1471_v12 = vadd.f32 %v1455_v33, %v1374_v11  ;;  %v1360_v9 = vmul.f32 %v3206_v26, %v1334_v63  ;;  %v3222_v33 = vld [vmem:[%s7151_s4 + $0x510] sm:$0xff] }
 0x3e2   : > { %v1361_v61 = vmul.f32 %v3207_v47, %v1326_v38  ;;  %v1552_v20 = vmul.f32 %v3236_v17, %v1527_v25  ;;  %v1279_v50 = vmul.f32 %v3190_v59, %v5038_v6  ;;  %v3252_v6 = vld [vmem:[%s7151_s4 + $0x600] sm:$0xff]  ;;  %v1624_v11 = vsel %vm759_vm5, %v5201_v23, %v5184_v24  ;;  %v3238_v63 = vld [vmem:[%s7151_s4 + $0x590] sm:$0xff]  ;;  %v3239_v17 = vld [vmem:[%s7151_s4 + $0x598] sm:$0xff] }
 0x3e3   : > { %v6002_v8 = vadd.f32 %v1952_v52, %v1871_v55  ;;  %v6004_v30 = vadd.f32 %v1953_v7, %v1872_v51  ;;  %v1472_v55 = vadd.f32 %v1456_v5, %v1375_v29  ;;  %v3191_v51 = vld [vmem:[%s7151_s4 + $0x698] sm:$0xff]  ;;  %v1423_v52 = vsel %vm611_vm2, %v5197_v49, %v5167_v41  ;;  %v3253_v23 = vld [vmem:[%s7151_s4 + $0x608] sm:$0xff] }
 0x3e4   : > { %2522 = vrot.lane.b32.xlu0 %v5746_v0, %s3541_s20  ;;  %2549 = vrot.lane.b32.xlu2 %v5777_v27, %s7254_s28  ;;  %v3223_v5 = vld [vmem:[%s7151_s4 + $0x518] sm:$0xff]  ;;  %v1431_v7 = vsel %vm611_vm2, %v5167_v41, %v5197_v49  ;;  %v1280_v29 = vmul.f32 %v3191_v51, %v5049_v2  ;;  %v1568_v26 = vadd.f32 %v1552_v20, %v1471_v12  ;;  %v3268_v51 = vld [vmem:[%s7151_s4 + $0x700] sm:$0xff]  ;;  %v6122_v20 = vpop.permute.xlu2 %1992  ;;  %s3547_s20 = smov 30  }
 0x3e5   : > { %2497 = vrot.lane.b32.xlu1 %v5746_v0, %s3543_s24  ;;  %v6060_v59 = vadd.f32 %v1553_v19, %v1472_v55  ;;  %v6063_v47 = vmul.f32 %v3192_v43, %v5086_v48  ;;  %v6066_v38 = vmul.f32 %v3193_v31, %v5088_v1  ;;  %v1376_v41 = vadd.f32 %v1360_v9, %v1279_v50  ;;  %v3254_v55 = vld [vmem:[%s7151_s4 + $0x610] sm:$0xff]  ;;  %v7280_v9 = vld [vmem:[#allocation14_spill] sm:$0xff]  ;;  %s3551_s24 = smov 96  }
 0x3e6   : > { %v6035_v16 = vpop.permute.xlu0 %1695  ;;  %v1377_v49 = vadd.f32 %v1361_v61, %v1280_v29  ;;  %v1520_v2 = vsel %vm685_vm3, %v5256_v22, %v5211_v39  ;;  %v1528_v48 = vsel %vm685_vm3, %v5211_v39, %v5256_v22  ;;  %v1457_v1 = vmul.f32 %v3222_v33, %v1431_v7  ;;  %v3255_v39 = vld [vmem:[%s7151_s4 + $0x618] sm:$0xff]  ;;  %v3270_v19 = vld [vmem:[%s7151_s4 + $0x710] sm:$0xff] }
 0x3e7   : > { %v1324_v34 = vpop.permute.xlu1 %1323  ;;  %7279 = vst [vmem:[#allocation29_spill] sm:$0xff] %v6060_v59  ;;  %v1458_v15 = vmul.f32 %v3223_v5, %v1423_v52  ;;  %v1649_v25 = vmul.f32 %v3252_v6, %v1624_v11  ;;  %v1713_v12 = vsel %vm833_vm7, %v5215_v60, %v5145_v40  ;;  %v1617_v22 = vsel %vm759_vm5, %v5182_v4, %v5276_v46  ;;  %v7281_v61 = vld [vmem:[#allocation9_spill] sm:$0xff]  ;;  %v3218_v5 = vld [vmem:[%s7151_s4 + $0x4f0] sm:$0xff] }
 0x3e8   : > { %v1625_v24 = vsel %vm759_vm5, %v5276_v46, %v5182_v4  ;;  %v1714_v43 = vsel %vm833_vm7, %v7281_v61, %v7280_v9  ;;  %v1722_v4 = vsel %vm833_vm7, %v7280_v9, %v7281_v61  ;;  %v1554_v46 = vmul.f32 %v3238_v63, %v1528_v48  ;;  %v3219_v52 = vld [vmem:[%s7151_s4 + $0x4f8] sm:$0xff]  ;;  %v7282_v63 = vld [vmem:[#allocation11_spill] sm:$0xff]  ;;  %v3202_v59 = vld [vmem:[%s7151_s4 + $0x6f0] sm:$0xff] }
 0x3e9   : > { %v1555_v31 = vmul.f32 %v3239_v17, %v1520_v2  ;;  %v1473_v50 = vadd.f32 %v1457_v1, %v1376_v41  ;;  %v1474_v33 = vadd.f32 %v1458_v15, %v1377_v49  ;;  %v1332_v7 = vsel %vm538_vm1, %v5883_v42, %v1324_v34  ;;  %v3271_v29 = vld [vmem:[%s7151_s4 + $0x718] sm:$0xff]  ;;  %v3208_v41 = vld [vmem:[%s7151_s4 + $0x4a0] sm:$0xff]  ;;  %v3209_v49 = vld [vmem:[%s7151_s4 + $0x4a8] sm:$0xff] }
 0x3ea   : > { %v1340_v6 = vsel %vm538_vm1, %v1324_v34, %v5883_v42  ;;  %v7283_v17 = vld [vmem:[#allocation20_spill] sm:$0xff]  ;;  %v1651_v34 = vmul.f32 %v3254_v55, %v1625_v24  ;;  %v1652_v48 = vmul.f32 %v3255_v39, %v1617_v22  ;;  %v6160_v15 = vmul.f32 %v3253_v23, %v1616_v32  ;;  %v3203_v55 = vld [vmem:[%s7151_s4 + $0x6f8] sm:$0xff] }
 0x3eb   : > { %v1327_v2 = vsel %vm538_vm1, %v7283_v17, %v7282_v63  ;;  %v1335_v42 = vsel %vm538_vm1, %v7282_v63, %v7283_v17  ;;  %v6162_v9 = vadd.f32 %v1649_v25, %v1568_v26  ;;  %v6168_v61 = vsel %vm833_vm7, %v5145_v40, %v5215_v60 }
 0x3ec   : > { %2570 = vrot.lane.b32.xlu0 %v5775_v53, %s7256_s26  ;;  %2547 = vrot.lane.b32.xlu2 %v5746_v0, %s7254_s28  ;;  %v1570_v32 = vadd.f32 %v1554_v46, %v1473_v50  ;;  %v1571_v39 = vadd.f32 %v1555_v31, %v1474_v33  ;;  %v1372_v26 = vmul.f32 %v3218_v5, %v1340_v6  ;;  %v3235_v46 = vld [vmem:[%s7151_s4 + $0x578] sm:$0xff]  ;;  %v7285_v50 = vld [vmem:[#allocation26_spill] sm:$0xff] }
 0x3ed   : > { %2545 = vrot.lane.b32.xlu1 %v5775_v53, %s7254_s28  ;;  %v6170_v53 = vmul.f32 %v3268_v51, %v1713_v12  ;;  %v1373_v25 = vmul.f32 %v3219_v52, %v1332_v7  ;;  %v1748_v22 = vmul.f32 %v3270_v19, %v1714_v43  ;;  %v1749_v24 = vmul.f32 %v3271_v29, %v1722_v4  ;;  %v3234_v12 = vld [vmem:[%s7151_s4 + $0x570] sm:$0xff]  ;;  %v7284_v19 = vld [vmem:[#allocation18_spill] sm:$0xff] }
 0x3ee   : > { %v6141_v11 = vpop.permute.xlu0 %1792  ;;  %v1362_v23 = vmul.f32 %v3208_v41, %v1335_v42  ;;  %v1363_v63 = vmul.f32 %v3209_v49, %v1327_v2  ;;  %v1667_v40 = vadd.f32 %v1651_v34, %v1570_v32  ;;  %v1668_v60 = vadd.f32 %v1652_v48, %v1571_v39  ;;  %v3240_v29 = vld [vmem:[%s7151_s4 + $0x5a0] sm:$0xff]  ;;  %v3241_v41 = vld [vmem:[%s7151_s4 + $0x5a8] sm:$0xff]  ;;  %v7286_v49 = vld [vmem:[#allocation8_spill] sm:$0xff] }
 0x3ef   : > { %v1502_v1 = vpop.permute.xlu1 %1501  ;;  %v1291_v51 = vmul.f32 %v3202_v59, %v5470_v44  ;;  %v1292_v17 = vmul.f32 %v3203_v55, %v5503_v57  ;;  %v1429_v43 = vsel %vm611_vm2, %v5881_v14, %v5925_v45  ;;  %v1437_v4 = vsel %vm611_vm2, %v5925_v45, %v5881_v14  ;;  %v3250_v44 = vld [vmem:[%s7151_s4 + $0x5f0] sm:$0xff]  ;;  %v3251_v57 = vld [vmem:[%s7151_s4 + $0x5f8] sm:$0xff]  ;;  %v3224_v14 = vld [vmem:[%s7151_s4 + $0x520] sm:$0xff] }
 0x3f0   : > { %v1526_v59 = vsel %vm685_vm3, %v1502_v1, %v5911_v36  ;;  %v1534_v31 = vsel %vm685_vm3, %v5911_v36, %v1502_v1  ;;  %v3225_v45 = vld [vmem:[%s7151_s4 + $0x528] sm:$0xff]  ;;  %v1424_v33 = vsel %vm611_vm2, %v7285_v50, %v7284_v19  ;;  %v1432_v36 = vsel %vm611_vm2, %v7284_v19, %v7285_v50  ;;  %v1890_v1 = vpop.permute.xlu2 %1889  ;;  %v3266_v19 = vld [vmem:[%s7151_s4 + $0x670] sm:$0xff] }
 0x3f1   : > { %v1388_v5 = vadd.f32 %v1372_v26, %v1291_v51  ;;  %v1389_v52 = vadd.f32 %v1373_v25, %v1292_v17  ;;  %v1378_v7 = vadd.f32 %v1362_v23, %v6063_v47  ;;  %v1379_v6 = vadd.f32 %v1363_v63, %v6066_v38  ;;  %v7287_v2 = vld [vmem:[#allocation15_spill] sm:$0xff] }
 0x3f2   : > { %v1521_v42 = vsel %vm685_vm3, %v7287_v2, %v7286_v49  ;;  %v1529_v47 = vsel %vm685_vm3, %v7286_v49, %v7287_v2  ;;  %v1469_v38 = vmul.f32 %v3234_v12, %v1437_v4  ;;  %v1470_v48 = vmul.f32 %v3235_v46, %v1429_v43  ;;  %v3267_v12 = vld [vmem:[%s7151_s4 + $0x678] sm:$0xff]  ;;  %v7288_v4 = vld [vmem:[#allocation22_spill] sm:$0xff]  ;;  %v7292_v2 = vld [vmem:[#allocation7_spill] sm:$0xff] }
 0x3f3   : > { %v1566_v55 = vmul.f32 %v3250_v44, %v1534_v31  ;;  %v1567_v32 = vmul.f32 %v3251_v57, %v1526_v59  ;;  %v1459_v26 = vmul.f32 %v3224_v14, %v1432_v36  ;;  %v1460_v25 = vmul.f32 %v3225_v45, %v1424_v33  ;;  %v7289_v44 = vld [vmem:[#allocation24_spill] sm:$0xff]  ;;  %v3257_v45 = vld [vmem:[%s7151_s4 + $0x628] sm:$0xff]  ;;  %v7290_v33 = vld [vmem:[#allocation6_spill] sm:$0xff] }
 0x3f4   : > { %2568 = vrot.lane.b32.xlu0 %v5779_v62, %s7256_s26  ;;  %v6240_v23 = vadd.f32 %v1748_v22, %v1667_v40  ;;  %v6242_v63 = vadd.f32 %v1749_v24, %v1668_v60  ;;  %v1556_v51 = vmul.f32 %v3240_v29, %v1529_v47  ;;  %v1557_v17 = vmul.f32 %v3241_v41, %v1521_v42  ;;  %v3282_v40 = vld [vmem:[%s7151_s4 + $0x770] sm:$0xff]  ;;  %v3283_v60 = vld [vmem:[%s7151_s4 + $0x778] sm:$0xff]  ;;  %v7293_v42 = vld [vmem:[#allocation19_spill] sm:$0xff] }
 0x3f5   : > { %2543 = vrot.lane.b32.xlu1 %v5779_v62, %s7254_s28  ;;  %v1485_v50 = vadd.f32 %v1469_v38, %v1388_v5  ;;  %v1486_v49 = vadd.f32 %v1470_v48, %v1389_v52  ;;  %v1623_v22 = vsel %vm759_vm5, %v6000_v37, %v5967_v58  ;;  %v1631_v24 = vsel %vm759_vm5, %v5967_v58, %v6000_v37  ;;  %v7291_v36 = vld [vmem:[#allocation25_spill] sm:$0xff]  ;;  %s3550_s28 = smov 126  }
 0x3f6   : > { %v1906_v34 = vpop.permute.xlu0 %1905  ;;  %v6274_v58 = vsel %vm907_vm4, %v7289_v44, %v7288_v4  ;;  %v6280_v37 = vsel %vm907_vm4, %v7288_v4, %v7289_v44  ;;  %v1475_v31 = vadd.f32 %v1459_v26, %v1378_v7  ;;  %v1476_v14 = vadd.f32 %v1460_v25, %v1379_v6  ;;  %v3299_v26 = vld [vmem:[%s7151_s4 + $0x7f8] sm:$0xff] }
 0x3f7   : > { %v1712_v39 = vpop.permute.xlu1 %1711  ;;  %v1582_v57 = vadd.f32 %v1566_v55, %v1485_v50  ;;  %v1583_v59 = vadd.f32 %v1567_v32, %v1486_v49  ;;  %v1618_v5 = vsel %vm759_vm5, %v7291_v36, %v7290_v33  ;;  %v1626_v52 = vsel %vm759_vm5, %v7290_v33, %v7291_v36  ;;  %v3273_v36 = vld [vmem:[%s7151_s4 + $0x728] sm:$0xff] }
 0x3f8   : > { %v1720_v46 = vsel %vm833_vm7, %v6035_v16, %v1712_v39  ;;  %v1728_v43 = vsel %vm833_vm7, %v1712_v39, %v6035_v16  ;;  %v3256_v16 = vld [vmem:[%s7151_s4 + $0x620] sm:$0xff]  ;;  %v1663_v7 = vmul.f32 %v3266_v19, %v1631_v24  ;;  %v1664_v6 = vmul.f32 %v3267_v12, %v1623_v22  ;;  %v3298_v39 = vld [vmem:[%s7151_s4 + $0x7f0] sm:$0xff] }
 0x3f9   : > { %v1760_v29 = vmul.f32 %v3282_v40, %v1720_v46  ;;  %v1761_v41 = vmul.f32 %v3283_v60, %v1728_v43  ;;  %v1715_v47 = vsel %vm833_vm7, %v7293_v42, %v7292_v2  ;;  %v1723_v38 = vsel %vm833_vm7, %v7292_v2, %v7293_v42  ;;  %v3314_v22 = vld [vmem:[%s7151_s4 + $0x870] sm:$0xff]  ;;  %v1987_v46 = vpop.permute.xlu2 %1986 }
 0x3fa   : > { %v1572_v48 = vadd.f32 %v1556_v51, %v1475_v31  ;;  %v1573_v55 = vadd.f32 %v1557_v17, %v1476_v14  ;;  %v1653_v25 = vmul.f32 %v3256_v16, %v1626_v52  ;;  %v1654_v19 = vmul.f32 %v3257_v45, %v1618_v5  ;;  %v3315_v51 = vld [vmem:[%s7151_s4 + $0x878] sm:$0xff]  ;;  %v7295_v14 = vld [vmem:[#allocation27_spill] sm:$0xff]  ;;  %v3288_v5 = vld [vmem:[%s7151_s4 + $0x7a0] sm:$0xff] }
 0x3fb   : > { %v1679_v50 = vadd.f32 %v1663_v7, %v1582_v57  ;;  %v1680_v49 = vadd.f32 %v1664_v6, %v1583_v59  ;;  %v1914_v17 = vsel %vm981_vm6, %v1890_v1, %v1906_v34  ;;  %v1922_v24 = vsel %vm981_vm6, %v1906_v34, %v1890_v1  ;;  %v3272_v59 = vld [vmem:[%s7151_s4 + $0x720] sm:$0xff]  ;;  %v7294_v31 = vld [vmem:[#allocation17_spill] sm:$0xff]  ;;  %v3289_v52 = vld [vmem:[%s7151_s4 + $0x7a8] sm:$0xff] }
 0x3fc   : > { %v1812_v34 = vsel %vm907_vm4, %v7295_v14, %v7294_v31  ;;  %v1820_v1 = vsel %vm907_vm4, %v7294_v31, %v7295_v14  ;;  %v3331_v16 = vld [vmem:[%s7151_s4 + $0x8f8] sm:$0xff]  ;;  %v1954_v7 = vmul.f32 %v3314_v22, %v1914_v17  ;;  %v1955_v6 = vmul.f32 %v3315_v51, %v1922_v24 }
 0x3fd   : > { %2574 = vrot.lane.b32.xlu1 %v5777_v27, %s7256_s26  ;;  %v1776_v43 = vadd.f32 %v1760_v29, %v1679_v50  ;;  %v1777_v4 = vadd.f32 %v1761_v41, %v1680_v49  ;;  %v1669_v2 = vadd.f32 %v1653_v25, %v1572_v48  ;;  %v1670_v42 = vadd.f32 %v1654_v19, %v1573_v55  ;;  %v3286_v48 = vld [vmem:[%s7151_s4 + $0x790] sm:$0xff]  ;;  %v3287_v55 = vld [vmem:[%s7151_s4 + $0x798] sm:$0xff] }
 0x3fe   : > { %v2003_v32 = vpop.permute.xlu0 %2002  ;;  %v2018_v50 = vsel %vm1055_vm8, %v5873_v35, %v5869_v56  ;;  %v1750_v22 = vmul.f32 %v3272_v59, %v1715_v47  ;;  %v1751_v51 = vmul.f32 %v3273_v36, %v1723_v38  ;;  %v1847_v17 = vmul.f32 %v3288_v5, %v1812_v34  ;;  %v7297_v31 = vld [vmem:[#allocation21_spill] sm:$0xff]  ;;  %v3304_v38 = vld [vmem:[%s7151_s4 + $0x820] sm:$0xff]  ;;  %v7298_v5 = vld [vmem:[#allocation23_spill] sm:$0xff] }
 0x3ff   : > { %v1809_v12 = vpop.permute.xlu1 %1808  ;;  %v2011_v45 = vsel %vm1055_vm8, %v1987_v46, %v2003_v32  ;;  %v2019_v33 = vsel %vm1055_vm8, %v2003_v32, %v1987_v46  ;;  %v3328_v32 = vld [vmem:[%s7151_s4 + $0x8e0] sm:$0xff]  ;;  %v1848_v24 = vmul.f32 %v3289_v52, %v1820_v1  ;;  %v3303_v36 = vld [vmem:[%s7151_s4 + $0x818] sm:$0xff]  ;;  %v7299_v52 = vld [vmem:[#allocation12_spill] sm:$0xff] }
 0x400   : > { %v1817_v40 = vsel %vm907_vm4, %v6141_v11, %v1809_v12  ;;  %v1825_v60 = vsel %vm907_vm4, %v1809_v12, %v6141_v11  ;;  %v3330_v11 = vld [vmem:[%s7151_s4 + $0x8f0] sm:$0xff]  ;;  %v2052_v19 = vmul.f32 %v3331_v16, %v2019_v33  ;;  %v1766_v47 = vadd.f32 %v1750_v22, %v1669_v2 }
 0x401   : > { %v1857_v44 = vmul.f32 %v3298_v39, %v1817_v40  ;;  %v1858_v57 = vmul.f32 %v3299_v26, %v1825_v60  ;;  %v3329_v39 = vld [vmem:[%s7151_s4 + $0x8e8] sm:$0xff]  ;;  %v2010_v26 = vsel %vm1055_vm8, %v5869_v56, %v5873_v35  ;;  %v2051_v25 = vmul.f32 %v3330_v11, %v2011_v45  ;;  %v3320_v11 = vld [vmem:[%s7151_s4 + $0x8a0] sm:$0xff]  ;;  %v3302_v33 = vld [vmem:[%s7151_s4 + $0x810] sm:$0xff] }
 0x402   : > { %v2049_v35 = vmul.f32 %v3328_v32, %v2010_v26  ;;  %v2050_v40 = vmul.f32 %v3329_v39, %v2018_v50  ;;  %v1767_v1 = vadd.f32 %v1751_v51, %v1670_v42  ;;  %v1863_v45 = vadd.f32 %v1847_v17, %v1766_v47  ;;  %v1975_v50 = vpop.permute.xlu2 %1974  ;;  %v7302_v47 = vld [vmem:[#allocation29_spill] sm:$0xff] }
 0x403   : > { %v1873_v29 = vadd.f32 %v1857_v44, %v1776_v43  ;;  %v1874_v41 = vadd.f32 %v1858_v57, %v1777_v4  ;;  %v1845_v4 = vmul.f32 %v3286_v48, %v6274_v58  ;;  %v1846_v44 = vmul.f32 %v3287_v55, %v6280_v37  ;;  %v7296_v57 = vld [vmem:[#allocation16_spill] sm:$0xff]  ;;  %v3305_v58 = vld [vmem:[%s7151_s4 + $0x828] sm:$0xff] }
 0x404   : > { %v1909_v14 = vsel %vm981_vm6, %v7297_v31, %v7296_v57  ;;  %v2065_v59 = vadd.f32 %v2049_v35, %v6002_v8  ;;  %v2066_v34 = vadd.f32 %v2050_v40, %v6004_v30  ;;  %v1917_v37 = vsel %vm981_vm6, %v7296_v57, %v7297_v31  ;;  %v3321_v8 = vld [vmem:[%s7151_s4 + $0x8a8] sm:$0xff]  ;;  %v3284_v35 = vld [vmem:[%s7151_s4 + $0x780] sm:$0xff] }
 0x405   : > { %2572 = vrot.lane.b32.xlu1 %v5746_v0, %s7256_s26  ;;  %v1970_v49 = vadd.f32 %v1954_v7, %v1873_v29  ;;  %v1971_v12 = vadd.f32 %v1955_v6, %v1874_v41  ;;  %v1908_v7 = vsel %vm981_vm6, %v7299_v52, %v7298_v5  ;;  %v1916_v6 = vsel %vm981_vm6, %v7298_v5, %v7299_v52  ;;  %v7300_v29 = vld [vmem:[#allocation13_spill] sm:$0xff]  ;;  %v7301_v41 = vld [vmem:[#allocation10_spill] sm:$0xff]  ;;  %v3285_v40 = vld [vmem:[%s7151_s4 + $0x788] sm:$0xff] }
 0x406   : > { %v6380_v56 = vpop.permute.xlu0 %1875  ;;  %v1810_v2 = vsel %vm907_vm4, %v7301_v41, %v7300_v29  ;;  %v1944_v42 = vmul.f32 %v3304_v38, %v1909_v14  ;;  %v1861_v32 = vadd.f32 %v1845_v4, %v6240_v23  ;;  %v1862_v39 = vadd.f32 %v1846_v44, %v6242_v63  ;;  %v3269_v23 = vld [vmem:[%s7151_s4 + $0x708] sm:$0xff]  ;;  %v3300_v57 = vld [vmem:[%s7151_s4 + $0x800] sm:$0xff] }
 0x407   : > { %v1977_v60 = vpop.permute.xlu1 %1976  ;;  %v2067_v46 = vadd.f32 %v2051_v25, %v1970_v49  ;;  %v2068_v43 = vadd.f32 %v2052_v19, %v1971_v12  ;;  %v1945_v26 = vmul.f32 %v3305_v58, %v1917_v37  ;;  %v3318_v25 = vld [vmem:[%s7151_s4 + $0x890] sm:$0xff]  ;;  %v3319_v19 = vld [vmem:[%s7151_s4 + $0x898] sm:$0xff]  ;;  %v1818_v63 = vsel %vm907_vm4, %v7300_v29, %v7301_v41  ;;  %v3301_v31 = vld [vmem:[%s7151_s4 + $0x808] sm:$0xff] }
 0x408   : > { %v2006_v30 = vsel %vm1055_vm8, %v1977_v60, %v6122_v20  ;;  %v2014_v16 = vsel %vm1055_vm8, %v6122_v20, %v1977_v60  ;;  %v1864_v20 = vadd.f32 %v1848_v24, %v1767_v1  ;;  %v1943_v49 = vmul.f32 %v3303_v36, %v1916_v6  ;;  %v3332_v29 = vld [vmem:[%s7152_s5 + $0x40] sm:$0xff] }
 0x409   : > { %2127 = vmatpush.msrb.mxu0 %v2067_v46  ;;  %2168 = vmatpush.msrb.mxu1 %v2068_v43  ;;  %v2041_v48 = vmul.f32 %v3320_v11, %v2006_v30  ;;  %v2042_v55 = vmul.f32 %v3321_v8, %v2014_v16  ;;  %v1960_v12 = vadd.f32 %v1944_v42, %v1863_v45 }
 0x40a   : > { %v1961_v24 = vadd.f32 %v1945_v26, %v1864_v20  ;;  %v1959_v4 = vadd.f32 %v1943_v49, %v1862_v39  ;;  %v1747_v44 = vmul.f32 %v3269_v23, %v6168_v61  ;;  %v1666_v38 = vadd.f32 %v6160_v15, %v7302_v47  ;;  %v3317_v15 = vld [vmem:[%s7151_s4 + $0x888] sm:$0xff]  ;;  %v1989_v30 = vpop.permute.xlu2 %1988 }
 0x40b   : > { %2128 = vmatpush.msrb.mxu0 %v2065_v59  ;;  %2169 = vmatpush.msrb.mxu1 %v2066_v34  ;;  %v1843_v59 = vmul.f32 %v3284_v35, %v1810_v2  ;;  %v1844_v34 = vmul.f32 %v3285_v40, %v1818_v63  ;;  %v1762_v1 = vadd.f32 %v6170_v53, %v6162_v9  ;;  %v3410_v35 = vld [vmem:[%s7154_s7 + $0x1b0] sm:$0xff] }
 0x40c   : > { %v1763_v58 = vadd.f32 %v1747_v44, %v1666_v38  ;;  %v3414_v40 = vld [vmem:[%s7154_s7 + $0x130] sm:$0xff] }
 0x40d   : > { %2129 = vmatpush.msrb.mxu0 %v5815_v28  ;;  %2170 = vmatpush.msrb.mxu1 %v5817_v10  ;;  %v1942_v28 = vmul.f32 %v3302_v33, %v1908_v7  ;;  %v1859_v45 = vadd.f32 %v1843_v59, %v1762_v1  ;;  %v3422_v1 = vld [vmem:[%s7154_s7 + $0x170] sm:$0xff] }
 0x40e   : > { %v1991_v10 = vpop.permute.xlu0 %1990  ;;  %v1860_v33 = vadd.f32 %v1844_v34, %v1763_v58 }
 0x40f   : > { %v2005_v22 = vsel %vm1055_vm8, %v1975_v50, %v1991_v10  ;;  %v2013_v51 = vsel %vm1055_vm8, %v1991_v10, %v1975_v50  ;;  %2130 = vmatpush.msrb.mxu0 %v5672_v13  ;;  %2171 = vmatpush.msrb.mxu1 %v5674_v54  ;;  %v1892_v17 = vpop.permute.xlu1 %1891  ;;  %v1958_v43 = vadd.f32 %v1942_v28, %v1861_v32  ;;  %v3333_v32 = vld [vmem:[%s7152_s5 + $0x48] sm:$0xff] }
 0x410   : > { %v2039_v60 = vmul.f32 %v3318_v25, %v2005_v22  ;;  %v2040_v46 = vmul.f32 %v3319_v19, %v2013_v51  ;;  %v2057_v13 = vadd.f32 %v2041_v48, %v1960_v12  ;;  %v2058_v54 = vadd.f32 %v2042_v55, %v1961_v24  ;;  %v3334_v48 = vld [vmem:[%s7152_s5 + $0x50] sm:$0xff]  ;;  %v3335_v19 = vld [vmem:[%s7152_s5 + $0x58] sm:$0xff] }
 0x411   : > { %2131 = vmatpush.msrb.mxu0 %v5527_v18  ;;  %2172 = vmatpush.msrb.mxu1 %v5529_v3  ;;  %v1907_v14 = vsel %vm981_vm6, %v6380_v56, %v1892_v17  ;;  %v1915_v18 = vsel %vm981_vm6, %v1892_v17, %v6380_v56  ;;  %v3316_v56 = vld [vmem:[%s7151_s4 + $0x880] sm:$0xff] }
 0x412   : > { %v2055_v61 = vadd.f32 %v2039_v60, %v1958_v43  ;;  %v2056_v3 = vadd.f32 %v2040_v46, %v1959_v4  ;;  %v1940_v37 = vmul.f32 %v3300_v57, %v1907_v14  ;;  %v1941_v11 = vmul.f32 %v3301_v31, %v1915_v18  ;;  %v2394_v42 = vpop.permute.xlu2 %2393  ;;  %v3411_v43 = vld [vmem:[%s7154_s7 + $0x1b8] sm:$0xff]  ;;  %v3418_v31 = vld [vmem:[%s7154_s7 + $0x150] sm:$0xff] }
 0x413   : > { %2132 = vmatpush.msrb.mxu0 %v2057_v13  ;;  %2173 = vmatpush.msrb.mxu1 %v2058_v54  ;;  %v3415_v4 = vld [vmem:[%s7154_s7 + $0x138] sm:$0xff]  ;;  %v7303_v13 = vld [vmem:[#allocation28_spill] sm:$0xff]  ;;  %v2392_v18 = vmul.f32 %v3411_v43, %v5777_v27 }
 0x414   : > { %v1956_v52 = vadd.f32 %v1940_v37, %v1859_v45  ;;  %v1957_v7 = vadd.f32 %v1941_v11, %v1860_v33  ;;  %v2391_v54 = vmul.f32 %v3410_v35, %v7303_v13  ;;  %v3409_v33 = vld [vmem:[%s7154_s7 + $0x1a8] sm:$0xff]  ;;  %v3430_v35 = vld [vmem:[%s7154_s7 + $0x1d0] sm:$0xff]  ;;  %v3431_v13 = vld [vmem:[%s7154_s7 + $0x1d8] sm:$0xff] }
 0x415   : > { %2133 = vmatpush.msrb.mxu0 %v2055_v61  ;;  %2174 = vmatpush.msrb.mxu1 %v2056_v3  ;;  %v3419_v3 = vld [vmem:[%s7154_s7 + $0x158] sm:$0xff] }
 0x416   : > { %v6484_v8 = vpop.permute.xlu0 %2397 }
 0x417   : > { %v1973_v16 = vpop.permute.xlu1 %1972 }
 0x418   : > { %v2004_v53 = vsel %vm1055_vm8, %v1973_v16, %v1989_v30  ;;  %v2012_v9 = vsel %vm1055_vm8, %v1989_v30, %v1973_v16  ;;  %v2403_v30 = vsel %vm538_vm1, %v6484_v8, %v2394_v42  ;;  %v3423_v16 = vld [vmem:[%s7154_s7 + $0x178] sm:$0xff] }
 0x419   : > { %v2037_v36 = vmul.f32 %v3316_v56, %v2004_v53  ;;  %v2038_v5 = vmul.f32 %v3317_v15, %v2012_v9  ;;  %v3408_v56 = vld [vmem:[%s7154_s7 + $0x1a0] sm:$0xff]  ;;  %v3413_v53 = vld [vmem:[%s7154_s7 + $0x128] sm:$0xff]  ;;  %v2401_v9 = vsel %vm538_vm1, %v2394_v42, %v6484_v8 }
 0x41a   : > { %v2425_v50 = vpop.permute.xlu2 %2424  ;;  %v3412_v15 = vld [vmem:[%s7154_s7 + $0x120] sm:$0xff] }
 0x41b   : > { %v2053_v6 = vadd.f32 %v2037_v36, %v1956_v52  ;;  %v2054_v20 = vadd.f32 %v2038_v5, %v1957_v7  ;;  %v3426_v7 = vld [vmem:[%s7154_s7 + $0x190] sm:$0xff]  ;;  %v3416_v8 = vld [vmem:[%s7154_s7 + $0x140] sm:$0xff] }
 0x41d   : > { %2134 = vmatpush.msrb.mxu0 %v2053_v6  ;;  %2175 = vmatpush.msrb.mxu1 %v2054_v20  ;;  %v2389_v20 = vmul.f32 %v3408_v56, %v5779_v62  ;;  %v3425_v56 = vld [vmem:[%s7154_s7 + $0x188] sm:$0xff] }
 0x41e   : > { %3356 = vmatmul.msk.f32.vlgmr.msrb.gmra.mxu0 %vm1137_vm9, %v3332_v29  ;;  %3364 = vmatmul.msk.f32.vlgmr.msrb.gmra.mxu1 %vm1137_vm9, %v3332_v29  ;;  %v2396_v41 = vpop.permute.xlu0 %2395  ;;  %v2410_v29 = vmul.f32 %v3412_v15, %v2403_v30 }
 0x41f   : > { %v2400_v2 = vpop.permute.xlu1 %2399 }
 0x420   : > { %v2404_v60 = vsel %vm538_vm1, %v2400_v2, %v2396_v41  ;;  %v2402_v44 = vsel %vm538_vm1, %v2396_v41, %v2400_v2  ;;  %vm2808_vm1 = vcmp.lt.s32.totalorder %v3881_v21, 98 }
 0x421   : > { %v2412_v57 = vmul.f32 %v3414_v40, %v2404_v60  ;;  %v2413_v61 = vmul.f32 %v3415_v4, %v2402_v44 }
 0x422   : > { %v2446_v23 = vpop.permute.xlu2 %2445 }
 0x423   : > { %v2416_v38 = vadd.f32 %v2412_v57, %v2391_v54  ;;  %v2417_v27 = vadd.f32 %v2413_v61, %v2392_v18  ;;  %v3421_v57 = vld [vmem:[%s7154_s7 + $0x168] sm:$0xff] }
 0x426   : > { %3357 = vmatmul.msk.f32.gmra.mxu0 %vm1137_vm9, %v3333_v32  ;;  %3365 = vmatmul.msk.f32.gmra.mxu1 %vm1137_vm9, %v3333_v32  ;;  %v6500_v26 = vpop.permute.xlu0 %2418  ;;  %v2390_v32 = vmul.f32 %v3409_v33, %v5746_v0  ;;  %v3417_v0 = vld [vmem:[%s7154_s7 + $0x148] sm:$0xff] }
 0x427   : > { %v2421_v39 = vpop.permute.xlu1 %2420 }
 0x428   : > { %v2429_v14 = vsel %vm611_vm2, %v2425_v50, %v2421_v39  ;;  %v2427_v47 = vsel %vm611_vm2, %v2421_v39, %v2425_v50  ;;  %v2411_v39 = vmul.f32 %v3413_v53, %v2401_v9  ;;  %v3427_v50 = vld [vmem:[%s7154_s7 + $0x198] sm:$0xff] }
 0x429   : > { %v2437_v59 = vmul.f32 %v3418_v31, %v2429_v14  ;;  %v2438_v37 = vmul.f32 %v3419_v3, %v2427_v47  ;;  %v3434_v3 = vld [vmem:[%s7154_s7 + $0x1f0] sm:$0xff] }
 0x42a   : > { %v6516_v49 = vpop.permute.xlu2 %2447  ;;  %v2415_v4 = vadd.f32 %v2411_v39, %v2390_v32  ;;  %v3429_v32 = vld [vmem:[%s7154_s7 + $0x1c8] sm:$0xff] }
 0x42b   : > { %v2441_v36 = vadd.f32 %v2437_v59, %v2416_v38  ;;  %v2442_v41 = vadd.f32 %v2438_v37, %v2417_v27  ;;  %v3424_v37 = vld [vmem:[%s7154_s7 + $0x180] sm:$0xff] }
 0x42e   : > { %3358 = vmatmul.msk.f32.gmra.mxu0 %vm1137_vm9, %v3334_v48  ;;  %3366 = vmatmul.msk.f32.gmra.mxu1 %vm1137_vm9, %v3334_v48  ;;  %v2450_v25 = vpop.permute.xlu0 %2449 }
 0x42f   : > { %v6507_v55 = vpop.permute.xlu1 %2422  ;;  %v2454_v58 = vsel %vm685_vm3, %v2450_v25, %v2446_v23  ;;  %v2452_v45 = vsel %vm685_vm3, %v2446_v23, %v2450_v25 }
 0x430   : > { %v2462_v5 = vmul.f32 %v3422_v1, %v2454_v58  ;;  %v2463_v2 = vmul.f32 %v3423_v16, %v2452_v45  ;;  %v2428_v42 = vsel %vm611_vm2, %v6507_v55, %v6500_v26  ;;  %v2426_v48 = vsel %vm611_vm2, %v6500_v26, %v6507_v55  ;;  %v3420_v26 = vld [vmem:[%s7154_s7 + $0x160] sm:$0xff]  ;;  %v3438_v45 = vld [vmem:[%s7154_s7 + $0x210] sm:$0xff] }
 0x431   : > { %v2435_v40 = vmul.f32 %v3416_v8, %v2428_v42  ;;  %v2436_v44 = vmul.f32 %v3417_v0, %v2426_v48  ;;  %vm2860_vm2 = vcmp.lt.s32.totalorder %v3881_v21, 94  ;;  %v3491_v21 = vld [vmem:[%s7155_s8 + $0x28] sm:$0xff] }
 0x432   : > { %v6520_v22 = vpop.permute.xlu2 %2472  ;;  %v2466_v25 = vadd.f32 %v2462_v5, %v2441_v36  ;;  %v2467_v60 = vadd.f32 %v2463_v2, %v2442_v41  ;;  %v3428_v2 = vld [vmem:[%s7154_s7 + $0x1c0] sm:$0xff] }
 0x433   : > { %v2440_v58 = vadd.f32 %v2436_v44, %v2415_v4 }
 0x436   : > { %3359 = vmatmul.msk.f32.gmra.mxu0 %vm1137_vm9, %v3335_v19  ;;  %3367 = vmatmul.msk.f32.gmra.mxu1 %vm1137_vm9, %v3335_v19  ;;  %v2471_v28 = vpop.permute.xlu0 %2470 }
 0x437   : > { %v6514_v63 = vpop.permute.xlu1 %2443 }
 0x438   : > { %v2453_v55 = vsel %vm685_vm3, %v6516_v49, %v6514_v63  ;;  %v2451_v31 = vsel %vm685_vm3, %v6514_v63, %v6516_v49  ;;  %v3435_v63 = vld [vmem:[%s7154_s7 + $0x1f8] sm:$0xff] }
 0x439   : > { %v2460_v47 = vmul.f32 %v3420_v26, %v2453_v55  ;;  %v2461_v27 = vmul.f32 %v3421_v57, %v2451_v31  ;;  %v3436_v57 = vld [vmem:[%s7154_s7 + $0x200] sm:$0xff] }
 0x43a   : > { %v6536_v46 = vpop.permute.xlu2 %2520 }
 0x43b   : > { %v2465_v5 = vadd.f32 %v2461_v27, %v2440_v58 }
 0x43e   : > { %v6518_v12 = vpop.permute.xlu0 %2495 }
 0x43f   : > { %v2475_v10 = vpop.permute.xlu1 %2474 }
 0x440   : > { %v2479_v6 = vsel %vm759_vm5, %v2475_v10, %v2471_v28  ;;  %v2477_v62 = vsel %vm759_vm5, %v2471_v28, %v2475_v10  ;;  %v2414_v10 = vadd.f32 %v2410_v29, %v2389_v20 }
 0x441   : > { %v2487_v19 = vmul.f32 %v3426_v7, %v2479_v6  ;;  %v2488_v43 = vmul.f32 %v3427_v50, %v2477_v62 }
 0x442   : > { %v6588_v52 = vpop.permute.xlu2 %2518 }
 0x443   : > { %v2491_v14 = vadd.f32 %v2487_v19, %v2466_v25  ;;  %v2492_v38 = vadd.f32 %v2488_v43, %v2467_v60  ;;  %v3442_v25 = vld [vmem:[%s7154_s7 + $0x230] sm:$0xff]  ;;  %v3443_v19 = vld [vmem:[%s7154_s7 + $0x238] sm:$0xff] }
 0x446   : > { %v6524_v17 = vpop.permute.xlu0 %2493 }
 0x447   : > { %v6522_v51 = vpop.permute.xlu1 %2468 }
 0x448   : > { %v2476_v15 = vsel %vm759_vm5, %v6522_v51, %v6520_v22  ;;  %v2478_v30 = vsel %vm759_vm5, %v6520_v22, %v6522_v51  ;;  %v3439_v22 = vld [vmem:[%s7154_s7 + $0x218] sm:$0xff] }
 0x449   : > { %v2485_v7 = vmul.f32 %v3424_v37, %v2478_v30  ;;  %v2486_v6 = vmul.f32 %v3425_v56, %v2476_v15 }
 0x44a   : > { %v2550_v1 = vpop.permute.xlu2 %2549 }
 0x44b   : > { %v2490_v0 = vadd.f32 %v2486_v6, %v2465_v5  ;;  %v3341_v6 = vld [vmem:[%s7153_s6 + $0x88] sm:$0xff] }
 0x44e   : > { %v2525_v11 = vpop.permute.xlu0 %2524 }
 0x44f   : > { %v6526_v24 = vpop.permute.xlu1 %2499  ;;  %v2529_v49 = vsel %vm907_vm4, %v2525_v11, %v6536_v46 }
 0x450   : > { %v2502_v28 = vsel %vm833_vm7, %v6518_v12, %v6526_v24  ;;  %v2504_v54 = vsel %vm833_vm7, %v6526_v24, %v6518_v12  ;;  %v2527_v12 = vsel %vm907_vm4, %v6536_v46, %v2525_v11  ;;  %v2439_v24 = vadd.f32 %v2435_v40, %v2414_v10 }
 0x451   : > { %v2512_v18 = vmul.f32 %v3430_v35, %v2502_v28  ;;  %v2513_v59 = vmul.f32 %v3431_v13, %v2504_v54  ;;  %v2537_v46 = vmul.f32 %v3434_v3, %v2527_v12  ;;  %v2538_v36 = vmul.f32 %v3435_v63, %v2529_v49 }
 0x452   : > { %v2464_v53 = vadd.f32 %v2460_v47, %v2439_v24  ;;  %v2548_v40 = vpop.permute.xlu2 %2547 }
 0x453   : > { %v2516_v16 = vadd.f32 %v2512_v18, %v2491_v14  ;;  %v2517_v9 = vadd.f32 %v2513_v59, %v2492_v38  ;;  %v3440_v59 = vld [vmem:[%s7154_s7 + $0x220] sm:$0xff] }
 0x454   : > { %v2489_v62 = vadd.f32 %v2485_v7, %v2464_v53  ;;  %v3340_v7 = vld [vmem:[%s7153_s6 + $0x80] sm:$0xff] }
 0x455   : > { %v2541_v20 = vadd.f32 %v2537_v46, %v2516_v16  ;;  %v2542_v42 = vadd.f32 %v2538_v36, %v2517_v9 }
 0x456   : > { %v2523_v61 = vpop.permute.xlu0 %2522 }
 0x457   : > { %v6558_v34 = vpop.permute.xlu1 %2497  ;;  %v2526_v48 = vsel %vm907_vm4, %v6588_v52, %v2523_v61  ;;  %v2528_v28 = vsel %vm907_vm4, %v2523_v61, %v6588_v52  ;;  %v3437_v52 = vld [vmem:[%s7154_s7 + $0x208] sm:$0xff] }
 0x458   : > { %v2501_v39 = vsel %vm833_vm7, %v6524_v17, %v6558_v34  ;;  %v2503_v8 = vsel %vm833_vm7, %v6558_v34, %v6524_v17  ;;  %v3432_v17 = vld [vmem:[%s7154_s7 + $0x1e0] sm:$0xff]  ;;  %v3433_v34 = vld [vmem:[%s7154_s7 + $0x1e8] sm:$0xff] }
 0x459   : > { %v2511_v35 = vmul.f32 %v3429_v32, %v2503_v8  ;;  %v2535_v13 = vmul.f32 %v3432_v17, %v2526_v48  ;;  %v2536_v54 = vmul.f32 %v3433_v34, %v2528_v28  ;;  %v3343_v48 = vld [vmem:[%s7153_s6 + $0x98] sm:$0xff] }
 0x45b   : > { %v2515_v61 = vadd.f32 %v2511_v35, %v2490_v0 }
 0x45d   : > { %v2540_v27 = vadd.f32 %v2536_v54, %v2515_v61  ;;  %v3448_v61 = vld [vmem:[%s7156_s9 + $0x30] sm:$0xff] }
 0x45e   : > { %v2571_v41 = vpop.permute.xlu0 %2570 }
 0x45f   : > { %v2546_v23 = vpop.permute.xlu1 %2545 }
 0x460   : > { %v2552_v33 = vsel %vm981_vm6, %v2546_v23, %v2550_v1  ;;  %v2554_v51 = vsel %vm981_vm6, %v2550_v1, %v2546_v23  ;;  %v2510_v23 = vmul.f32 %v3428_v2, %v2501_v39  ;;  %v3441_v1 = vld [vmem:[%s7154_s7 + $0x228] sm:$0xff] }
 0x461   : > { %v2562_v29 = vmul.f32 %v3438_v45, %v2552_v33  ;;  %v2563_v50 = vmul.f32 %v3439_v22, %v2554_v51  ;;  %v3444_v45 = vld [vmem:[%s7155_s8 + $0x10] sm:$0xff]  ;;  %v3445_v33 = vld [vmem:[%s7155_s8 + $0x18] sm:$0xff]  ;;  %v3344_v22 = vld [vmem:[%s7153_s6 + $0xa0] sm:$0xff] }
 0x462   : > { %v2514_v18 = vadd.f32 %v2510_v23, %v2489_v62  ;;  %v3345_v51 = vld [vmem:[%s7153_s6 + $0xa8] sm:$0xff] }
 0x463   : > { %v2566_v10 = vadd.f32 %v2562_v29, %v2541_v20  ;;  %v2567_v44 = vadd.f32 %v2563_v50, %v2542_v42  ;;  %v3342_v50 = vld [vmem:[%s7153_s6 + $0x90] sm:$0xff] }
 0x464   : > { %v2539_v58 = vadd.f32 %v2535_v13, %v2514_v18 }
 0x466   : > { %v2569_v38 = vpop.permute.xlu0 %2568 }
 0x467   : > { %v2544_v11 = vpop.permute.xlu1 %2543 }
 0x468   : > { %v2551_v31 = vsel %vm981_vm6, %v2544_v11, %v2548_v40  ;;  %v2553_v14 = vsel %vm981_vm6, %v2548_v40, %v2544_v11 }
 0x469   : > { %v2560_v24 = vmul.f32 %v3436_v57, %v2551_v31  ;;  %v2561_v47 = vmul.f32 %v3437_v52, %v2553_v14  ;;  %v7304_v52 = vld [vmem:[#allocation2_spill] sm:$0xff]  ;;  %v7305_v14 = vld [vmem:[#allocation3_spill] sm:$0xff] }
 0x46b   : > { %v2564_v56 = vadd.f32 %v2560_v24, %v2539_v58  ;;  %v2565_v15 = vadd.f32 %v2561_v47, %v2540_v27  ;;  %v7307_v58 = vld [vmem:[#allocation4_spill] sm:$0xff] }
 0x46f   : > { %v2575_v60 = vpop.permute.xlu1 %2574 }
 0x470   : > { %v2577_v43 = vsel %vm1055_vm8, %v2571_v41, %v2575_v60  ;;  %v2579_v4 = vsel %vm1055_vm8, %v2575_v60, %v2571_v41 }
 0x471   : > { %v2587_v26 = vmul.f32 %v3442_v25, %v2577_v43  ;;  %v2588_v55 = vmul.f32 %v3443_v19, %v2579_v4  ;;  %v3346_v25 = vld [vmem:[%s7153_s6 + $0xb0] sm:$0xff]  ;;  %v3347_v19 = vld [vmem:[%s7153_s6 + $0xb8] sm:$0xff] }
 0x473   : > { %v2591_v3 = vadd.f32 %v2587_v26, %v2566_v10  ;;  %v2592_v12 = vadd.f32 %v2588_v55, %v2567_v44  ;;  %v3446_v44 = vld [vmem:[%s7156_s9 + $0x20] sm:$0xff]  ;;  %v3447_v26 = vld [vmem:[%s7156_s9 + $0x28] sm:$0xff] }
 0x475   : > { %2621 = vmatpush.msra.mxu2 %v2591_v3  ;;  %2644 = vmatpush.msra.mxu3 %v2592_v12  ;;  %v3449_v3 = vld [vmem:[%s7156_s9 + $0x38] sm:$0xff] }
 0x477   : > { %v2573_v63 = vpop.permute.xlu1 %2572 }
 0x478   : > { %v2576_v49 = vsel %vm1055_vm8, %v2569_v38, %v2573_v63  ;;  %v2578_v37 = vsel %vm1055_vm8, %v2573_v63, %v2569_v38 }
 0x479   : > { %v2585_v30 = vmul.f32 %v3440_v59, %v2576_v49  ;;  %v2586_v16 = vmul.f32 %v3441_v1, %v2578_v37  ;;  %v7306_v59 = vld [vmem:[#allocation5_spill] sm:$0xff] }
 0x47b   : > { %v2589_v46 = vadd.f32 %v2585_v30, %v2564_v56  ;;  %v2590_v11 = vadd.f32 %v2586_v16, %v2565_v15  ;;  %v3454_v56 = vld [vmem:[%s7154_s7 + $0x2c0] sm:$0xff]  ;;  %v3455_v15 = vld [vmem:[%s7154_s7 + $0x2c8] sm:$0xff] }
 0x47c   : > { %v3458_v30 = vld [vmem:[%s7154_s7 + $0x240] sm:$0xff]  ;;  %v3459_v16 = vld [vmem:[%s7154_s7 + $0x248] sm:$0xff] }
 0x47d   : > { %2622 = vmatpush.msra.mxu2 %v2589_v46  ;;  %2645 = vmatpush.msra.mxu3 %v2590_v11 }
 0x47e   : > { %3450 = vmatmul.msk.f32.vlgmr.msra.gmra.mxu2 %vm2327_vm10, %v3444_v45  ;;  %3452 = vmatmul.msk.f32.vlgmr.msra.gmra.mxu3 %vm2327_vm10, %v3444_v45 }
 0x486   : > { %3451 = vmatmul.msk.f32.gmra.mxu2 %vm2327_vm10, %v3445_v33  ;;  %3453 = vmatmul.msk.f32.gmra.mxu3 %vm2327_vm10, %v3445_v33 }
 0x49b   : > { %v2136_v53 = vpop.f32.mrf.mxu0  ;;  %v2177_v9 = vpop.f32.mrf.mxu1 }
 0x49c   : > { %v2137_v41 = vadd.f32 %v3340_v7, %v2136_v53  ;;  %v2178_v2 = vadd.f32 %v3341_v6, %v2177_v9  ;;  %v3462_v53 = vld [vmem:[%s7154_s7 + $0x260] sm:$0xff]  ;;  %v3463_v9 = vld [vmem:[%s7154_s7 + $0x268] sm:$0xff] }
 0x4a3   : > { %v2139_v36 = vpop.f32.mrf.mxu0  ;;  %v2180_v5 = vpop.f32.mrf.mxu1 }
 0x4a4   : > { %v2140_v17 = vadd.f32 %v3342_v50, %v2139_v36  ;;  %v2181_v34 = vadd.f32 %v3343_v48, %v2180_v5  ;;  %v3336_v48 = vld [vmem:[%s7152_s5 + $0x60] sm:$0xff] }
 0x4a5   : > { %3360 = vmatmul.msk.f32.gmra.mxu0 %vm1137_vm9, %v3336_v48  ;;  %3368 = vmatmul.msk.f32.gmra.mxu1 %vm1137_vm9, %v3336_v48  ;;  %v3473_v48 = vld [vmem:[%s7154_s7 + $0x2b8] sm:$0xff] }
 0x4ab   : > { %v2142_v20 = vpop.f32.mrf.mxu0  ;;  %v2183_v29 = vpop.f32.mrf.mxu1 }
 0x4ac   : > { %v2143_v32 = vadd.f32 %v3344_v22, %v2142_v20  ;;  %v2184_v39 = vadd.f32 %v3345_v51, %v2183_v29 }
 0x4ae   : > { %v2201_v8 = vadd.f32 %v2143_v32, %v2137_v41  ;;  %v2202_v42 = vadd.f32 %v2184_v39, %v2178_v2 }
 0x4b0   : > { %v6767_v62 = vmax.f32 %v2201_v8, 0.0  ;;  %2942 = vst [vmem:[%s6762_s16] sm:$0xff] %v2201_v8  ;;  %v6770_v0 = vmax.f32 %v2202_v42, 0.0 }
 0x4b1   : > { %2943 = vst [vmem:[%s6762_s16 + $0x8] sm:$0xff] %v2202_v42 }
 0x4b2   : > { %2674 = vrot.lane.b32.xlu0 %v6770_v0, %s3545_s12  ;;  %2696 = vrot.lane.b32.xlu1 %v6767_v62, %s3546_s17  ;;  %v2666_v6 = vmul.f32 %v3454_v56, %v6767_v62  ;;  %v2667_v22 = vmul.f32 %v3455_v15, %v6770_v0 }
 0x4b3   : > { %2670 = vrot.lane.b32.xlu2 %v6767_v62, %s3545_s12  ;;  %v2145_v23 = vpop.f32.mrf.mxu0  ;;  %v2186_v35 = vpop.f32.mrf.mxu1 }
 0x4b4   : > { %v2146_v28 = vadd.f32 %v3346_v25, %v2145_v23  ;;  %v2187_v10 = vadd.f32 %v3347_v19, %v2186_v35 }
 0x4b6   : > { %v2203_v40 = vadd.f32 %v2146_v28, %v2140_v17  ;;  %v2204_v60 = vadd.f32 %v2187_v10, %v2181_v34  ;;  %v3470_v34 = vld [vmem:[%s7154_s7 + $0x2a0] sm:$0xff]  ;;  %v3471_v28 = vld [vmem:[%s7154_s7 + $0x2a8] sm:$0xff] }
 0x4b8   : > { %2944 = vst [vmem:[%s6762_s16 + $0x10] sm:$0xff] %v2203_v40  ;;  %v6801_v43 = vmax.f32 %v2203_v40, 0.0  ;;  %v6808_v4 = vmax.f32 %v2204_v60, 0.0 }
 0x4b9   : > { %2945 = vst [vmem:[%s6762_s16 + $0x18] sm:$0xff] %v2204_v60  ;;  %v3337_v60 = vld [vmem:[%s7152_s5 + $0x68] sm:$0xff] }
 0x4ba   : > { %2722 = vrot.lane.b32.xlu0 %v6767_v62, %s3547_s20  ;;  %2726 = vrot.lane.b32.xlu1 %v6770_v0, %s3547_s20 }
 0x4bb   : > { %2700 = vrot.lane.b32.xlu2 %v6770_v0, %s3546_s17  ;;  %3361 = vmatmul.msk.f32.gmra.mxu0 %vm1137_vm9, %v3337_v60 }
 0x4bc   : > { %3369 = vmatmul.msk.f32.gmra.mxu1 %vm1137_vm9, %v3337_v60 }
 0x4c2   : > { %2752 = vrot.lane.b32.xlu0 %v6770_v0, %s3548_s19  ;;  %2804 = vrot.lane.b32.xlu1 %v6770_v0, %s3549_s15 }
 0x4c3   : > { %2748 = vrot.lane.b32.xlu2 %v6767_v62, %s3548_s19 }
 0x4ca   : > { %2778 = vrot.lane.b32.xlu0 %v6770_v0, %s3550_s28  ;;  %2826 = vrot.lane.b32.xlu1 %v6767_v62, %s3551_s24 }
 0x4cb   : > { %2774 = vrot.lane.b32.xlu2 %v6767_v62, %s3550_s28 }
 0x4d2   : > { %2800 = vrot.lane.b32.xlu0 %v6767_v62, %s3549_s15  ;;  %2698 = vrot.lane.b32.xlu1 %v6801_v43, %s3546_s17 }
 0x4d3   : > { %2830 = vrot.lane.b32.xlu2 %v6770_v0, %s3551_s24 }
 0x4da   : > { %2676 = vrot.lane.b32.xlu0 %v6808_v4, %s3545_s12  ;;  %2728 = vrot.lane.b32.xlu1 %v6808_v4, %s3547_s20 }
 0x4db   : > { %2672 = vrot.lane.b32.xlu2 %v6801_v43, %s3545_s12 }
 0x4e2   : > { %2724 = vrot.lane.b32.xlu0 %v6801_v43, %s3547_s20  ;;  %2776 = vrot.lane.b32.xlu1 %v6801_v43, %s3550_s28 }
 0x4e3   : > { %2702 = vrot.lane.b32.xlu2 %v6808_v4, %s3546_s17 }
 0x4ea   : > { %2754 = vrot.lane.b32.xlu0 %v6808_v4, %s3548_s19  ;;  %2802 = vrot.lane.b32.xlu1 %v6801_v43, %s3549_s15 }
 0x4eb   : > { %2750 = vrot.lane.b32.xlu2 %v6801_v43, %s3548_s19 }
 0x4f2   : > { %2832 = vrot.lane.b32.xlu0 %v6808_v4, %s3551_s24  ;;  %2858 = vrot.lane.b32.xlu1 %v6808_v4, %s3552_s21 }
 0x4f3   : > { %2780 = vrot.lane.b32.xlu2 %v6808_v4, %s3550_s28 }
 0x4fa   : > { %2854 = vrot.lane.b32.xlu0 %v6801_v43, %s3552_s21 }
 0x4fb   : > { %2806 = vrot.lane.b32.xlu2 %v6808_v4, %s3549_s15 }
 0x501   : > { %v2624_v55 = vpop.f32.mrf.mxu2  ;;  %v2647_v13 = vpop.f32.mrf.mxu3 }
 0x502   : > { %v2625_v54 = vadd.f32 %v3446_v44, %v2624_v55  ;;  %v2648_v57 = vadd.f32 %v3447_v26, %v2647_v13  ;;  %2856 = vrot.lane.b32.xlu0 %v6770_v0, %s3552_s21  ;;  %v3467_v0 = vld [vmem:[%s7154_s7 + $0x288] sm:$0xff] }
 0x503   : > { %2828 = vrot.lane.b32.xlu2 %v6801_v43, %s3551_s24 }
 0x504   : > { %v2653_v31 = vadd.f32 %v2625_v54, %v7304_v52  ;;  %v2654_v18 = vadd.f32 %v2648_v57, %v7305_v14 }
 0x506   : > { %2950 = vst [vmem:[%s6762_s16 + $0x40] sm:$0xff] %v2653_v31 }
 0x507   : > { %2951 = vst [vmem:[%s6762_s16 + $0x48] sm:$0xff] %v2654_v18 }
 0x509   : > { %v2627_v12 = vpop.f32.mrf.mxu2  ;;  %v2650_v24 = vpop.f32.mrf.mxu3 }
 0x50a   : > { %v2628_v47 = vadd.f32 %v3448_v61, %v2627_v12  ;;  %v2651_v38 = vadd.f32 %v3449_v3, %v2650_v24  ;;  %v3338_v24 = vld [vmem:[%s7152_s5 + $0x70] sm:$0xff] }
 0x50b   : > { %2852 = vrot.lane.b32.xlu2 %v6767_v62, %s3552_s21  ;;  %v3466_v62 = vld [vmem:[%s7154_s7 + $0x280] sm:$0xff]  ;;  %3362 = vmatmul.msk.f32.gmra.mxu0 %vm1137_vm9, %v3338_v24 }
 0x50c   : > { %v2655_v1 = vadd.f32 %v2628_v47, %v7306_v59  ;;  %v2656_v27 = vadd.f32 %v2651_v38, %v7307_v58  ;;  %3370 = vmatmul.msk.f32.gmra.mxu1 %vm1137_vm9, %v3338_v24 }
 0x50d   : > { %v2671_v63 = vpop.permute.xlu2 %2670 }
 0x50e   : > { %2952 = vst [vmem:[%s6762_s16 + $0x50] sm:$0xff] %v2655_v1 }
 0x50f   : > { %2953 = vst [vmem:[%s6762_s16 + $0x58] sm:$0xff] %v2656_v27  ;;  %v3339_v27 = vld [vmem:[%s7152_s5 + $0x78] sm:$0xff] }
 0x513   : > { %3363 = vmatmul.msk.f32.gmra.mxu0 %vm1137_vm9, %v3339_v27 }
 0x514   : > { %3371 = vmatmul.msk.f32.gmra.mxu1 %vm1137_vm9, %v3339_v27 }
 0x515   : > { %v2701_v49 = vpop.permute.xlu2 %2700 }
 0x51d   : > { %v2749_v37 = vpop.permute.xlu2 %2748 }
 0x524   : > { %v2675_v46 = vpop.permute.xlu0 %2674  ;;  %v2697_v11 = vpop.permute.xlu1 %2696 }
 0x525   : > { %v2679_v45 = vsel %vm2678_vm11, %v2671_v63, %v2675_v46  ;;  %v2681_v33 = vsel %vm2678_vm11, %v2675_v46, %v2671_v63  ;;  %v2705_v36 = vsel %vm2704_vm12, %v2697_v11, %v2701_v49  ;;  %v2707_v5 = vsel %vm2704_vm12, %v2701_v49, %v2697_v11  ;;  %v6880_v7 = vpop.permute.xlu2 %2774 }
 0x526   : > { %v2688_v51 = vmul.f32 %v3458_v30, %v2681_v33  ;;  %v2689_v20 = vmul.f32 %v3459_v16, %v2679_v45  ;;  %v2714_v2 = vmul.f32 %v3462_v53, %v2707_v5  ;;  %v2715_v32 = vmul.f32 %v3463_v9, %v2705_v36  ;;  %v3460_v30 = vld [vmem:[%s7154_s7 + $0x250] sm:$0xff]  ;;  %v3461_v16 = vld [vmem:[%s7154_s7 + $0x258] sm:$0xff] }
 0x527   : > { %v3456_v45 = vld [vmem:[%s7154_s7 + $0x2d0] sm:$0xff]  ;;  %v3457_v33 = vld [vmem:[%s7154_s7 + $0x2d8] sm:$0xff] }
 0x528   : > { %v2692_v29 = vadd.f32 %v2688_v51, %v2666_v6  ;;  %v2693_v41 = vadd.f32 %v2689_v20, %v2667_v22  ;;  %v3464_v5 = vld [vmem:[%s7154_s7 + $0x270] sm:$0xff]  ;;  %v2668_v6 = vmul.f32 %v3456_v45, %v6801_v43  ;;  %v2669_v22 = vmul.f32 %v3457_v33, %v6808_v4  ;;  %v3465_v51 = vld [vmem:[%s7154_s7 + $0x278] sm:$0xff] }
 0x529   : > { %v3469_v43 = vld [vmem:[%s7154_s7 + $0x298] sm:$0xff] }
 0x52a   : > { %v2718_v39 = vadd.f32 %v2714_v2, %v2692_v29  ;;  %v2719_v8 = vadd.f32 %v2715_v32, %v2693_v41  ;;  %v3468_v41 = vld [vmem:[%s7154_s7 + $0x290] sm:$0xff] }
 0x52c   : > { %v2723_v42 = vpop.permute.xlu0 %2722  ;;  %v2727_v50 = vpop.permute.xlu1 %2726 }
 0x52d   : > { %v6888_v25 = vpop.permute.xlu2 %2830  ;;  %v2731_v19 = vsel %vm2730_vm13, %v2723_v42, %v2727_v50  ;;  %v2733_v23 = vsel %vm2730_vm13, %v2727_v50, %v2723_v42  ;;  %v3472_v50 = vld [vmem:[%s7154_s7 + $0x2b0] sm:$0xff] }
 0x52e   : > { %v2740_v35 = vmul.f32 %v3466_v62, %v2733_v23  ;;  %v2741_v17 = vmul.f32 %v3467_v0, %v2731_v19 }
 0x530   : > { %v2744_v13 = vadd.f32 %v2740_v35, %v2718_v39  ;;  %v2745_v54 = vadd.f32 %v2741_v17, %v2719_v8 }
 0x534   : > { %v2753_v10 = vpop.permute.xlu0 %2752  ;;  %v6909_v40 = vpop.permute.xlu1 %2804 }
 0x535   : > { %v2757_v44 = vsel %vm2756_vm14, %v2749_v37, %v2753_v10  ;;  %v2759_v26 = vsel %vm2756_vm14, %v2753_v10, %v2749_v37  ;;  %v2673_v55 = vpop.permute.xlu2 %2672 }
 0x536   : > { %v2766_v57 = vmul.f32 %v3470_v34, %v2759_v26  ;;  %v2767_v31 = vmul.f32 %v3471_v28, %v2757_v44 }
 0x538   : > { %v6920_v18 = vadd.f32 %v2766_v57, %v2744_v13  ;;  %v6922_v61 = vadd.f32 %v2767_v31, %v2745_v54  ;;  %v3476_v13 = vld [vmem:[%s7154_s7 + $0x2f0] sm:$0xff]  ;;  %v3477_v54 = vld [vmem:[%s7154_s7 + $0x2f8] sm:$0xff] }
 0x53c   : > { %v6924_v3 = vpop.permute.xlu0 %2778  ;;  %v6926_v12 = vpop.permute.xlu1 %2826 }
 0x53d   : > { %v2703_v47 = vpop.permute.xlu2 %2702  ;;  %v2783_v33 = vsel %vm2782_vm15, %v6880_v7, %v6924_v3 }
 0x544   : > { %v6933_v38 = vpop.permute.xlu0 %2800  ;;  %v2699_v1 = vpop.permute.xlu1 %2698 }
 0x545   : > { %v2751_v63 = vpop.permute.xlu2 %2750  ;;  %v2706_v20 = vsel %vm2704_vm12, %v2699_v1, %v2703_v47  ;;  %v2708_v29 = vsel %vm2704_vm12, %v2703_v47, %v2699_v1 }
 0x546   : > { %v2716_v19 = vmul.f32 %v3464_v5, %v2708_v29  ;;  %v2717_v23 = vmul.f32 %v3465_v51, %v2706_v20  ;;  %v3475_v5 = vld [vmem:[%s7154_s7 + $0x2e8] sm:$0xff]  ;;  %v2811_v51 = vsel %vm2808_vm1, %v6909_v40, %v6933_v38  ;;  %v3478_v20 = vld [vmem:[%s7154_s7 + $0x300] sm:$0xff] }
 0x54c   : > { %v2677_v49 = vpop.permute.xlu0 %2676  ;;  %v2729_v37 = vpop.permute.xlu1 %2728 }
 0x54d   : > { %v2781_v56 = vpop.permute.xlu2 %2780  ;;  %v2680_v46 = vsel %vm2678_vm11, %v2673_v55, %v2677_v49  ;;  %v2682_v11 = vsel %vm2678_vm11, %v2677_v49, %v2673_v55  ;;  %v3480_v49 = vld [vmem:[%s7154_s7 + $0x310] sm:$0xff] }
 0x54e   : > { %v2690_v53 = vmul.f32 %v3460_v30, %v2682_v11  ;;  %v2691_v9 = vmul.f32 %v3461_v16, %v2680_v46  ;;  %v3484_v16 = vld [vmem:[%s7154_s7 + $0x330] sm:$0xff]  ;;  %v3485_v46 = vld [vmem:[%s7154_s7 + $0x338] sm:$0xff] }
 0x550   : > { %v2694_v32 = vadd.f32 %v2690_v53, %v2668_v6  ;;  %v2695_v39 = vadd.f32 %v2691_v9, %v2669_v22  ;;  %v2785_v6 = vsel %vm2782_vm15, %v6924_v3, %v6880_v7  ;;  %v2809_v22 = vsel %vm2808_vm1, %v6933_v38, %v6909_v40  ;;  %v3479_v7 = vld [vmem:[%s7154_s7 + $0x308] sm:$0xff]  ;;  %v3489_v40 = vld [vmem:[%s7154_s7 + $0x358] sm:$0xff] }
 0x552   : > { %v2720_v34 = vadd.f32 %v2716_v19, %v2694_v32  ;;  %v2721_v28 = vadd.f32 %v2717_v23, %v2695_v39 }
 0x554   : > { %v2725_v15 = vpop.permute.xlu0 %2724  ;;  %v2777_v36 = vpop.permute.xlu1 %2776 }
 0x555   : > { %v2732_v4 = vsel %vm2730_vm13, %v2725_v15, %v2729_v37  ;;  %v2734_v2 = vsel %vm2730_vm13, %v2729_v37, %v2725_v15  ;;  %v2807_v8 = vpop.permute.xlu2 %2806  ;;  %v2784_v57 = vsel %vm2782_vm15, %v2777_v36, %v2781_v56  ;;  %v2786_v31 = vsel %vm2782_vm15, %v2781_v56, %v2777_v36  ;;  %v3481_v15 = vld [vmem:[%s7154_s7 + $0x318] sm:$0xff]  ;;  %v3474_v36 = vld [vmem:[%s7154_s7 + $0x2e0] sm:$0xff] }
 0x556   : > { %v2742_v35 = vmul.f32 %v3468_v41, %v2734_v2  ;;  %v2743_v17 = vmul.f32 %v3469_v43, %v2732_v4  ;;  %v2794_v27 = vmul.f32 %v3476_v13, %v2784_v57  ;;  %v3488_v4 = vld [vmem:[%s7154_s7 + $0x350] sm:$0xff]  ;;  %v2792_v38 = vmul.f32 %v3474_v36, %v2783_v33  ;;  %v3487_v57 = vld [vmem:[%s7154_s7 + $0x348] sm:$0xff]  ;;  %v3348_v33 = vld [vmem:[%s7153_s6 + $0xc0] sm:$0xff] }
 0x557   : > { %v2793_v2 = vmul.f32 %v3475_v5, %v2785_v6  ;;  %v3353_v5 = vld [vmem:[%s7153_s6 + $0xe8] sm:$0xff] }
 0x558   : > { %v2746_v44 = vadd.f32 %v2742_v35, %v2720_v34  ;;  %v2747_v26 = vadd.f32 %v2743_v17, %v2721_v28  ;;  %v2796_v34 = vadd.f32 %v2792_v38, %v6920_v18  ;;  %v2837_v18 = vsel %vm2834_vm0, %v6888_v25, %v6926_v12  ;;  %v3355_v38 = vld [vmem:[%s7153_s6 + $0xf8] sm:$0xff] }
 0x559   : > { %v2797_v28 = vadd.f32 %v2793_v2, %v6922_v61 }
 0x55c   : > { %v2755_v42 = vpop.permute.xlu0 %2754  ;;  %v2803_v55 = vpop.permute.xlu1 %2802 }
 0x55d   : > { %v2758_v62 = vsel %vm2756_vm14, %v2751_v63, %v2755_v42  ;;  %v2760_v0 = vsel %vm2756_vm14, %v2755_v42, %v2751_v63  ;;  %v2795_v63 = vmul.f32 %v3477_v54, %v2786_v31  ;;  %v2829_v37 = vpop.permute.xlu2 %2828  ;;  %v2810_v56 = vsel %vm2808_vm1, %v2803_v55, %v2807_v8  ;;  %v3486_v54 = vld [vmem:[%s7154_s7 + $0x340] sm:$0xff] }
 0x55e   : > { %v2768_v10 = vmul.f32 %v3472_v50, %v2760_v0  ;;  %v2769_v60 = vmul.f32 %v3473_v48, %v2758_v62  ;;  %v2812_v30 = vsel %vm2808_vm1, %v2807_v8, %v2803_v55  ;;  %v2820_v3 = vmul.f32 %v3480_v49, %v2810_v56 }
 0x55f   : > { %v2821_v29 = vmul.f32 %v3481_v15, %v2812_v30  ;;  %v2818_v50 = vmul.f32 %v3478_v20, %v2809_v22  ;;  %v2819_v48 = vmul.f32 %v3479_v7, %v2811_v51  ;;  %v2835_v55 = vsel %vm2834_vm0, %v6926_v12, %v6888_v25  ;;  %v3490_v30 = vld [vmem:[%s7155_s8 + $0x20] sm:$0xff] }
 0x560   : > { %v2772_v24 = vadd.f32 %v2768_v10, %v2746_v44  ;;  %v2773_v47 = vadd.f32 %v2769_v60, %v2747_v26  ;;  %v3482_v44 = vld [vmem:[%s7154_s7 + $0x320] sm:$0xff]  ;;  %v3483_v26 = vld [vmem:[%s7154_s7 + $0x328] sm:$0xff] }
 0x561   : > { %v2822_v61 = vadd.f32 %v2818_v50, %v2796_v34  ;;  %v2823_v13 = vadd.f32 %v2819_v48, %v2797_v28  ;;  %v2844_v31 = vmul.f32 %v3482_v44, %v2835_v55 }
 0x562   : > { %v2798_v53 = vadd.f32 %v2794_v27, %v2772_v24  ;;  %v2799_v9 = vadd.f32 %v2795_v63, %v2773_v47  ;;  %v2845_v24 = vmul.f32 %v3483_v26, %v2837_v18 }
 0x563   : > { %v2848_v49 = vadd.f32 %v2844_v31, %v2822_v61 }
 0x564   : > { %v2833_v1 = vpop.permute.xlu0 %2832  ;;  %v2824_v32 = vadd.f32 %v2820_v3, %v2798_v53  ;;  %v2825_v39 = vadd.f32 %v2821_v29, %v2799_v9  ;;  %v2859_v8 = vpop.permute.xlu1 %2858  ;;  %v3349_v53 = vld [vmem:[%s7153_s6 + $0xc8] sm:$0xff]  ;;  %v3352_v9 = vld [vmem:[%s7153_s6 + $0xe0] sm:$0xff]  ;;  %v3350_v29 = vld [vmem:[%s7153_s6 + $0xd0] sm:$0xff] }
 0x565   : > { %v2836_v11 = vsel %vm2834_vm0, %v2829_v37, %v2833_v1  ;;  %v2838_v45 = vsel %vm2834_vm0, %v2833_v1, %v2829_v37  ;;  %v2853_v47 = vpop.permute.xlu2 %2852  ;;  %v2849_v37 = vadd.f32 %v2845_v24, %v2823_v13 }
 0x566   : > { %v2846_v41 = vmul.f32 %v3484_v16, %v2836_v11  ;;  %v2847_v43 = vmul.f32 %v3485_v46, %v2838_v45  ;;  %v2148_v16 = vpop.f32.mrf.mxu0  ;;  %v2189_v46 = vpop.f32.mrf.mxu1 }
 0x567   : > { %v2149_v36 = vadd.f32 %v3348_v33, %v2148_v16  ;;  %v2190_v6 = vadd.f32 %v3349_v53, %v2189_v46 }
 0x568   : > { %v2850_v19 = vadd.f32 %v2846_v41, %v2824_v32  ;;  %v2851_v23 = vadd.f32 %v2847_v43, %v2825_v39  ;;  %v3351_v43 = vld [vmem:[%s7153_s6 + $0xd8] sm:$0xff] }
 0x56c   : > { %v2855_v42 = vpop.permute.xlu0 %2854 }
 0x56d   : > { %v2862_v62 = vsel %vm2860_vm2, %v2855_v42, %v2859_v8  ;;  %v2864_v0 = vsel %vm2860_vm2, %v2859_v8, %v2855_v42 }
 0x56e   : > { %v2872_v35 = vmul.f32 %v3488_v4, %v2862_v62  ;;  %v2873_v17 = vmul.f32 %v3489_v40, %v2864_v0  ;;  %v2151_v11 = vpop.f32.mrf.mxu0  ;;  %v2192_v45 = vpop.f32.mrf.mxu1  ;;  %v3354_v4 = vld [vmem:[%s7153_s6 + $0xf0] sm:$0xff]  ;;  %v3492_v62 = vld [vmem:[%s7156_s9 + $0x40] sm:$0xff]  ;;  %v3493_v0 = vld [vmem:[%s7156_s9 + $0x48] sm:$0xff] }
 0x56f   : > { %v2152_v40 = vadd.f32 %v3350_v29, %v2151_v11  ;;  %v2193_v2 = vadd.f32 %v3351_v43, %v2192_v45 }
 0x570   : > { %v2876_v10 = vadd.f32 %v2872_v35, %v2850_v19  ;;  %v2877_v60 = vadd.f32 %v2873_v17, %v2851_v23 }
 0x572   : > { %2906 = vmatpush.msra.mxu0 %v2876_v10  ;;  %2929 = vmatpush.msra.mxu1 %v2877_v60  ;;  %v3494_v10 = vld [vmem:[%s7156_s9 + $0x50] sm:$0xff]  ;;  %v3495_v60 = vld [vmem:[%s7156_s9 + $0x58] sm:$0xff] }
 0x574   : > { %v2857_v1 = vpop.permute.xlu0 %2856 }
 0x575   : > { %v2861_v27 = vsel %vm2860_vm2, %v2853_v47, %v2857_v1  ;;  %v2863_v25 = vsel %vm2860_vm2, %v2857_v1, %v2853_v47 }
 0x576   : > { %v2870_v12 = vmul.f32 %v3486_v54, %v2861_v27  ;;  %v2871_v63 = vmul.f32 %v3487_v57, %v2863_v25 }
 0x578   : > { %v2874_v15 = vadd.f32 %v2870_v12, %v2848_v49  ;;  %v2875_v56 = vadd.f32 %v2871_v63, %v2849_v37 }
 0x57a   : > { %2907 = vmatpush.msra.mxu0 %v2874_v15  ;;  %2930 = vmatpush.msra.mxu1 %v2875_v56 }
 0x57b   : > { %3496 = vmatmul.msk.f32.vlgmr.msra.gmra.mxu0 %vm2327_vm10, %v3490_v30  ;;  %3498 = vmatmul.msk.f32.vlgmr.msra.gmra.mxu1 %vm2327_vm10, %v3490_v30 }
 0x583   : > { %3497 = vmatmul.msk.f32.gmra.mxu0 %vm2327_vm10, %v3491_v21  ;;  %3499 = vmatmul.msk.f32.gmra.mxu1 %vm2327_vm10, %v3491_v21 }
 0x588   : > { %v2154_v22 = vpop.f32.mrf.mxu0 }
 0x589   : > { %v2155_v51 = vadd.f32 %v3352_v9, %v2154_v22  ;;  %v2195_v20 = vpop.f32.mrf.mxu1 }
 0x58a   : > { %v2196_v7 = vadd.f32 %v3353_v5, %v2195_v20 }
 0x58b   : > { %v2205_v3 = vadd.f32 %v2155_v51, %v2149_v36 }
 0x58c   : > { %v2206_v41 = vadd.f32 %v2196_v7, %v2190_v6 }
 0x58d   : > { %2946 = vst [vmem:[%s6762_s16 + $0x20] sm:$0xff] %v2205_v3 }
 0x58e   : > { %2947 = vst [vmem:[%s6762_s16 + $0x28] sm:$0xff] %v2206_v41 }
 0x590   : > { %v2157_v32 = vpop.f32.mrf.mxu0 }
 0x591   : > { %v2158_v39 = vadd.f32 %v3354_v4, %v2157_v32  ;;  %v2198_v8 = vpop.f32.mrf.mxu1 }
 0x592   : > { %v2199_v42 = vadd.f32 %v3355_v38, %v2198_v8 }
 0x593   : > { %v2207_v50 = vadd.f32 %v2158_v39, %v2152_v40 }
 0x594   : > { %v2208_v48 = vadd.f32 %v2199_v42, %v2193_v2 }
 0x595   : > { %2948 = vst [vmem:[%s6762_s16 + $0x30] sm:$0xff] %v2207_v50 }
 0x596   : > { %2949 = vst [vmem:[%s6762_s16 + $0x38] sm:$0xff] %v2208_v48 }
 0x5f8   : > { %v2909_v19 = vpop.f32.mrf.mxu0  ;;  %v2932_v23 = vpop.f32.mrf.mxu1 }
 0x5f9   : > { %v2910_v35 = vadd.f32 %v3492_v62, %v2909_v19  ;;  %v2933_v17 = vadd.f32 %v3493_v0, %v2932_v23 }
 0x5fb   : > { %v2938_v34 = vadd.f32 %v2910_v35, %v7304_v52  ;;  %v2939_v28 = vadd.f32 %v2933_v17, %v7305_v14 }
 0x5fd   : > { %2954 = vst [vmem:[%s6762_s16 + $0x60] sm:$0xff] %v2938_v34 }
 0x5fe   : > { %2955 = vst [vmem:[%s6762_s16 + $0x68] sm:$0xff] %v2939_v28 }
 0x600   : > { %v2912_v44 = vpop.f32.mrf.mxu0  ;;  %v2935_v26 = vpop.f32.mrf.mxu1 }
 0x601   : > { %v2913_v55 = vadd.f32 %v3494_v10, %v2912_v44  ;;  %v2936_v18 = vadd.f32 %v3495_v60, %v2935_v26 }
 0x603   : > { %v2940_v61 = vadd.f32 %v2913_v55, %v7306_v59  ;;  %v2941_v52 = vadd.f32 %v2936_v18, %v7307_v58 }
 0x605   : > { %2956 = vst [vmem:[%s6762_s16 + $0x70] sm:$0xff] %v2940_v61 }
 0x606   : > { %2957 = vst [vmem:[%s6762_s16 + $0x78] sm:$0xff] %v2941_v52 }
 0x607 PF: > { %s20_s13 = sadd.s32 1, %s3535_s13  }
 0x608   : > { %p17_p4 = scmp.ge.s32.totalorder %s20_s13, 4  }
 0x60a   :  { %19 = sbr.rel (!%p17_p4) target bundleno = 1 (0x1), region = 142 }

</bundles_post_ra>
